<compile_context>
chip_gen: v6e
topology: v6e:2x2x1
jax: 0.10.0
libtpu: 0.0.40
codegen_flags: <defaults>
</compile_context>

<pallas_src>
import math
from functools import partial

import jax
import jax.numpy as jnp
from jax.experimental import pallas as pl
from jax.experimental.pallas import tpu as pltpu  # noqa: F401  (not needed: gridless, all-VMEM)

# ---------------------------------------------------------------------------
# Static configuration (scaled down but self-consistent with the module).
# ---------------------------------------------------------------------------
BATCH = 2
SEQ_DEC = 8                   # target sequence length
SEQ_ENC = 8                   # encoder-output sequence length
D_MODEL = 32                  # hidden_size == d_model == d_v
HEADS = 4
HEAD_DIM = D_MODEL // HEADS   # 8
D_K = HEAD_DIM                # softmax scale uses 1/sqrt(d_k); default cfg has d_k = d_model/heads
D_FF = 64                     # FeedForward inner dim (module default 2048, scaled down)
BLOCKS = 2
EPS = 1e-6


# ---------------------------------------------------------------------------
# Fused DecoderBlock kernel:
#   x = Norm(x + SelfAttn(x));  x = Norm(x + CrossAttn(x, enc));  x = Norm(x + FFN(x))
# ---------------------------------------------------------------------------
def _decoder_block_kernel(enc_ref, x_ref,
                          wqkv_ref, wo_t_ref, bo_ref,
                          alpha_ref, beta_ref,
                          w1_t_ref, b1_ref, w2_t_ref, b2_ref,
                          out_ref,
                          *, batch, s_dec, s_enc, heads, head_dim, d_k):
    d_model = heads * head_dim
    scale = 1.0 / math.sqrt(d_k)

    enc = enc_ref[...]        # (B*Se, D)
    x = x_ref[...]            # (B*Sd, D)
    wqkv = wqkv_ref[...]      # (D, 3D) = [Wq^T | Wk^T | Wv^T]   (pre-transposed on host)
    wo_t = wo_t_ref[...]      # (D, D)  = Wo^T
    bo = bo_ref[...]          # (1, D)
    alpha = alpha_ref[...]    # (1, D)
    beta = beta_ref[...]      # (1, D)

    def attention(qp, kp, vp, s_q, s_k):
        """qp: (B*s_q, D); kp, vp: (B*s_k, D). Heads batched via einsum."""
        outs = []
        for b in range(batch):                          # B is tiny and static
            qb = jnp.transpose(
                qp[b * s_q:(b + 1) * s_q].reshape(s_q, heads, head_dim), (1, 0, 2))
            kb = jnp.transpose(
                kp[b * s_k:(b + 1) * s_k].reshape(s_k, heads, head_dim), (1, 0, 2))
            vb = jnp.transpose(
                vp[b * s_k:(b + 1) * s_k].reshape(s_k, heads, head_dim), (1, 0, 2))
            s = jnp.einsum("hqd,hkd->hqk", qb, kb,
                           preferred_element_type=jnp.float32) * scale   # (H, s_q, s_k)
            s = s - jnp.max(s, axis=-1, keepdims=True)
            p = jnp.exp(s)
            p = p * pl.reciprocal(jnp.sum(p, axis=-1, keepdims=True), approx=False)
            oh = jnp.einsum("hqk,hkd->hqd", p, vb,
                            preferred_element_type=jnp.float32)          # (H, s_q, Dh)
            # Head "concat" is a contiguous reshape; fold it straight into the
            # single (s_q, D) x (D, D) output-projection matmul (no lane concat).
            cat = jnp.transpose(oh, (1, 0, 2)).reshape(s_q, d_model)
            outs.append(jnp.dot(cat, wo_t, preferred_element_type=jnp.float32))
        return jnp.concatenate(outs, axis=0) + bo                         # (B*s_q, D)

    def norm(y):
        mu = jnp.mean(y, axis=-1, keepdims=True)
        c = y - mu
        # torch.std is unbiased (ddof=1); the reference subtracts eps from std.
        std = jnp.sqrt(jnp.sum(c * c, axis=-1, keepdims=True) / (d_model - 1))
        return alpha * c / (std - EPS) + beta

    # --- self-attention: fused QKV projection (one MXU pass, N = 3D) --------
    qkv = jnp.dot(x, wqkv, preferred_element_type=jnp.float32)            # (B*Sd, 3D)
    attn = attention(qkv[:, :d_model], qkv[:, d_model:2 * d_model],
                     qkv[:, 2 * d_model:], s_dec, s_dec)
    x = norm(x + attn)

    # --- cross-attention: Q from x, fused K/V projection of encoder output --
    qp = jnp.dot(x, wqkv[:, :d_model], preferred_element_type=jnp.float32)
    kv = jnp.dot(enc, wqkv[:, d_model:], preferred_element_type=jnp.float32)
    attn = attention(qp, kv[:, :d_model], kv[:, d_model:], s_dec, s_enc)
    x = norm(x + attn)

    # --- feed-forward --------------------------------------------------------
    h = jnp.maximum(
        jnp.dot(x, w1_t_ref[...], preferred_element_type=jnp.float32) + b1_ref[...],
        0.0)
    ff = jnp.dot(h, w2_t_ref[...], preferred_element_type=jnp.float32) + b2_ref[...]
    x = norm(x + ff)

    out_ref[...] = x.astype(out_ref.dtype)


def _decoder_block_call(enc_rows, x_rows, p, *, batch, s_dec, s_enc,
                        heads, head_dim, d_k):
    n, d = x_rows.shape
    kernel = partial(_decoder_block_kernel, batch=batch, s_dec=s_dec,
                     s_enc=s_enc, heads=heads, head_dim=head_dim, d_k=d_k)
    # No grid / no BlockSpec tiling: every operand is a whole-array VMEM
    # resident (a few KiB each), so nothing is double-buffered and there is no
    # per-grid-step overhead.
    return pl.pallas_call(
        kernel,
        out_shape=jax.ShapeDtypeStruct((n, d), x_rows.dtype),
    )(enc_rows, x_rows,
      p["w_qkv_t"], p["w_o_t"], p["b_o"],
      p["alpha"], p["beta"],
      p["w1_t"], p["b1"], p["w2_t"], p["b2"])


@partial(jax.jit, static_argnames=("heads",))
def decoder_forward(encoder_output, target, block_params, heads=HEADS):
    """Pallas-backed Decoder.forward (mask=None path only)."""
    # TODO(synk): enc_mask/dec_mask are not supported (reference applies the
    # mask AFTER softmax@V; only the mask=None path is implemented).
    b, s_dec, d = target.shape
    _, s_enc, _ = encoder_output.shape
    head_dim = d // heads
    enc_rows = encoder_output.reshape(b * s_enc, d)
    x_rows = target.reshape(b * s_dec, d)
    for p in block_params:                    # BLOCKS is small and static
        x_rows = _decoder_block_call(enc_rows, x_rows, p,
                                     batch=b, s_dec=s_dec, s_enc=s_enc,
                                     heads=heads, head_dim=head_dim,
                                     d_k=head_dim)
    return x_rows.reshape(b, s_dec, d)


def pack_block_params(raw):
    """Host-side packing: pre-transpose and fuse weights so the kernel never
    transposes and does one QKV matmul instead of three."""
    d = raw["w_q"].shape[0]
    return dict(
        w_qkv_t=jnp.concatenate([raw["w_q"].T, raw["w_k"].T, raw["w_v"].T], axis=1),
        w_o_t=raw["w_o"].T,
        b_o=raw["b_o"].reshape(1, d),
        alpha=raw["alpha"].reshape(1, d),
        beta=raw["beta"].reshape(1, d),
        w1_t=raw["w1"].T,
        b1=raw["b1"].reshape(1, -1),
        w2_t=raw["w2"].T,
        b2=raw["b2"].reshape(1, d),
    )


# ---------------------------------------------------------------------------
# Pure-JAX reference of the intended PyTorch forward.
# ---------------------------------------------------------------------------
def _ref_mha(q, k, v, w_q, w_k, w_v, w_o, b_o, heads, d_k):
    bsz, sq, d = q.shape
    sk = k.shape[1]
    dh = d // heads
    qh = (q @ w_q.T).reshape(bsz, sq, heads, dh).transpose(0, 2, 1, 3)
    kh = (k @ w_k.T).reshape(bsz, sk, heads, dh).transpose(0, 2, 1, 3)
    vh = (v @ w_v.T).reshape(bsz, sk, heads, dh).transpose(0, 2, 1, 3)
    s = jnp.einsum("bhqd,bhkd->bhqk", qh, kh) / math.sqrt(d_k)
    p = jax.nn.softmax(s, axis=-1)
    o = jnp.einsum("bhqk,bhkd->bhqd", p, vh)
    o = o.transpose(0, 2, 1, 3).reshape(bsz, sq, d)
    return o @ w_o.T + b_o


def _ref_norm(x, alpha, bias):
    mu = jnp.mean(x, axis=-1, keepdims=True)
    std = jnp.std(x, axis=-1, keepdims=True, ddof=1)
    return alpha * (x - mu) / (std - EPS) + bias


def _ref_ff(x, w1, b1, w2, b2):
    return jnp.maximum(x @ w1.T + b1, 0.0) @ w2.T + b2


def _ref_decoder(enc, tgt, raw_blocks, heads, d_k):
    x = tgt
    for r in raw_blocks:
        a = _ref_mha(x, x, x, r["w_q"], r["w_k"], r["w_v"], r["w_o"], r["b_o"], heads, d_k)
        x = _ref_norm(x + a, r["alpha"], r["beta"])
        a = _ref_mha(x, enc, enc, r["w_q"], r["w_k"], r["w_v"], r["w_o"], r["b_o"], heads, d_k)
        x = _ref_norm(x + a, r["alpha"], r["beta"])
        x = _ref_norm(x + _ref_ff(x, r["w1"], r["b1"], r["w2"], r["b2"]),
                      r["alpha"], r["beta"])
    return x


if __name__ == "__main__":
    key = jax.random.PRNGKey(0)

    def lin_w(rng, out_f, in_f):
        bound = 1.0 / math.sqrt(in_f)
        return jax.random.uniform(rng, (out_f, in_f), jnp.float32, -bound, bound)

    def lin_b(rng, out_f, in_f):
        bound = 1.0 / math.sqrt(in_f)
        return jax.random.uniform(rng, (out_f,), jnp.float32, -bound, bound)

    key, ke, kt = jax.random.split(key, 3)
    enc = jax.random.normal(ke, (BATCH, SEQ_ENC, D_MODEL), jnp.float32)
    tgt = jax.random.normal(kt, (BATCH, SEQ_DEC, D_MODEL), jnp.float32)

    raw_blocks = []
    for _ in range(BLOCKS):
        key, *ks = jax.random.split(key, 12)
        raw_blocks.append(dict(
            w_q=lin_w(ks[0], D_MODEL, D_MODEL),
            w_k=lin_w(ks[1], D_MODEL, D_MODEL),
            w_v=lin_w(ks[2], D_MODEL, D_MODEL),
            w_o=lin_w(ks[3], D_MODEL, D_MODEL),        # d_v == d_model
            b_o=lin_b(ks[4], D_MODEL, D_MODEL),
            # NOTE: the PyTorch init is zeros (which would zero the whole
            # forward); random values give a meaningful numerical check.
            alpha=jax.random.uniform(ks[5], (D_MODEL,), jnp.float32, -1.0, 1.0),
            beta=jax.random.uniform(ks[6], (D_MODEL,), jnp.float32, -1.0, 1.0),
            w1=lin_w(ks[7], D_FF, D_MODEL),
            b1=lin_b(ks[8], D_FF, D_MODEL),
            w2=lin_w(ks[9], D_MODEL, D_FF),
            b2=lin_b(ks[10], D_MODEL, D_FF),
        ))

    packed = tuple(pack_block_params(r) for r in raw_blocks)

    out = decoder_forward(enc, tgt, packed, heads=HEADS)
    out = jax.block_until_ready(out)

    ref = _ref_decoder(enc, tgt, raw_blocks, HEADS, D_K)
    assert out.shape == (BATCH, SEQ_DEC, D_MODEL)
    assert jnp.allclose(out, ref, atol=1e-4, rtol=1e-4), (
        f"mismatch vs pure-JAX reference: max abs err "
        f"{float(jnp.max(jnp.abs(out - ref)))}")

    print("KERNEL_OK")
</pallas_src>

<mosaic_0001>
module attributes {stable_mosaic.version = 11 : i64} {
  func.func @_decoder_block_kernel(%arg0: memref<16x32xf32, #tpu.memory_space<vmem>>, %arg1: memref<16x32xf32, #tpu.memory_space<vmem>>, %arg2: memref<32x96xf32, #tpu.memory_space<vmem>>, %arg3: memref<32x32xf32, #tpu.memory_space<vmem>>, %arg4: memref<1x32xf32, #tpu.memory_space<vmem>>, %arg5: memref<1x32xf32, #tpu.memory_space<vmem>>, %arg6: memref<1x32xf32, #tpu.memory_space<vmem>>, %arg7: memref<32x64xf32, #tpu.memory_space<vmem>>, %arg8: memref<1x64xf32, #tpu.memory_space<vmem>>, %arg9: memref<64x32xf32, #tpu.memory_space<vmem>>, %arg10: memref<1x32xf32, #tpu.memory_space<vmem>>, %arg11: memref<16x32xf32, #tpu.memory_space<vmem>>) attributes {dimension_semantics = [], scalar_prefetch = 0 : i64, scratch_operands = 0 : i64, tpu.core_type = #tpu.core_type<tc>} {
    %c0 = arith.constant 0 : index
    %c0_0 = arith.constant 0 : index
    %0 = vector.load %arg0[%c0, %c0_0] : memref<16x32xf32, #tpu.memory_space<vmem>>, vector<16x32xf32>
    %c0_1 = arith.constant 0 : index
    %c0_2 = arith.constant 0 : index
    %1 = vector.load %arg1[%c0_1, %c0_2] : memref<16x32xf32, #tpu.memory_space<vmem>>, vector<16x32xf32>
    %c0_3 = arith.constant 0 : index
    %c0_4 = arith.constant 0 : index
    %2 = vector.load %arg2[%c0_3, %c0_4] : memref<32x96xf32, #tpu.memory_space<vmem>>, vector<32x96xf32>
    %c0_5 = arith.constant 0 : index
    %c0_6 = arith.constant 0 : index
    %3 = vector.load %arg3[%c0_5, %c0_6] : memref<32x32xf32, #tpu.memory_space<vmem>>, vector<32x32xf32>
    %c0_7 = arith.constant 0 : index
    %c0_8 = arith.constant 0 : index
    %4 = vector.load %arg4[%c0_7, %c0_8] : memref<1x32xf32, #tpu.memory_space<vmem>>, vector<1x32xf32>
    %c0_9 = arith.constant 0 : index
    %c0_10 = arith.constant 0 : index
    %5 = vector.load %arg5[%c0_9, %c0_10] : memref<1x32xf32, #tpu.memory_space<vmem>>, vector<1x32xf32>
    %c0_11 = arith.constant 0 : index
    %c0_12 = arith.constant 0 : index
    %6 = vector.load %arg6[%c0_11, %c0_12] : memref<1x32xf32, #tpu.memory_space<vmem>>, vector<1x32xf32>
    %cst = arith.constant dense<0.000000e+00> : vector<16x96xf32>
    %7 = tpu.matmul %1, %2, %cst {dimension_numbers = #tpu.dot_dimension_numbers<[1], [0], [0], [1], [0, 0, 1, 1], [], []>} : vector<16x32xf32>, vector<32x96xf32>, vector<16x96xf32> -> vector<16x96xf32>
    %8 = vector.extract_strided_slice %7 {offsets = [0, 0], sizes = [16, 32], strides = [1, 1]} : vector<16x96xf32> to vector<16x32xf32>
    %9 = vector.extract_strided_slice %7 {offsets = [0, 32], sizes = [16, 32], strides = [1, 1]} : vector<16x96xf32> to vector<16x32xf32>
    %10 = vector.extract_strided_slice %7 {offsets = [0, 64], sizes = [16, 32], strides = [1, 1]} : vector<16x96xf32> to vector<16x32xf32>
    %11 = vector.extract_strided_slice %8 {offsets = [0, 0], sizes = [8, 32], strides = [1, 1]} : vector<16x32xf32> to vector<8x32xf32>
    %12 = vector.shape_cast %11 : vector<8x32xf32> to vector<8x4x8xf32>
    %13 = tpu.transpose %12, [1, 0, 2] : vector<8x4x8xf32> -> vector<4x8x8xf32>
    %14 = vector.extract_strided_slice %9 {offsets = [0, 0], sizes = [8, 32], strides = [1, 1]} : vector<16x32xf32> to vector<8x32xf32>
    %15 = vector.shape_cast %14 : vector<8x32xf32> to vector<8x4x8xf32>
    %16 = tpu.transpose %15, [1, 0, 2] : vector<8x4x8xf32> -> vector<4x8x8xf32>
    %17 = vector.extract_strided_slice %10 {offsets = [0, 0], sizes = [8, 32], strides = [1, 1]} : vector<16x32xf32> to vector<8x32xf32>
    %18 = vector.shape_cast %17 : vector<8x32xf32> to vector<8x4x8xf32>
    %19 = tpu.transpose %18, [1, 0, 2] : vector<8x4x8xf32> -> vector<4x8x8xf32>
    "tpu.trace_start"() <{level = 10 : i32, message = "hqd,hkd->hqk"}> : () -> ()
    %cst_13 = arith.constant dense<0.000000e+00> : vector<4x8x8xf32>
    %20 = tpu.matmul %13, %16, %cst_13 {dimension_numbers = #tpu.dot_dimension_numbers<[2], [2], [1], [1], [0, 0, 0, 1, 1, 1], [0], [0]>} : vector<4x8x8xf32>, vector<4x8x8xf32>, vector<4x8x8xf32> -> vector<4x8x8xf32>
    "tpu.trace_stop"() : () -> ()
    %cst_14 = arith.constant 0.353553385 : f32
    %21 = vector.broadcast %cst_14 : f32 to vector<4x8x8xf32>
    %22 = arith.mulf %20, %21 : vector<4x8x8xf32>
    %cst_15 = arith.constant dense<0xFF800000> : vector<4x8xf32>
    %23 = vector.multi_reduction <maximumf>, %22, %cst_15 [2] : vector<4x8x8xf32> to vector<4x8xf32>
    %24 = vector.shape_cast %23 : vector<4x8xf32> to vector<4x8x1xf32>
    %25 = vector.broadcast %24 : vector<4x8x1xf32> to vector<4x8x8xf32>
    %26 = arith.subf %22, %25 : vector<4x8x8xf32>
    %27 = math.exp %26 : vector<4x8x8xf32>
    %cst_16 = arith.constant dense<0.000000e+00> : vector<4x8xf32>
    %28 = vector.multi_reduction <add>, %27, %cst_16 [2] : vector<4x8x8xf32> to vector<4x8xf32>
    %29 = vector.shape_cast %28 : vector<4x8xf32> to vector<4x8x1xf32>
    %30 = tpu.reciprocal %29 : vector<4x8x1xf32> -> vector<4x8x1xf32>
    %31 = vector.broadcast %30 : vector<4x8x1xf32> to vector<4x8x8xf32>
    %32 = arith.mulf %27, %31 : vector<4x8x8xf32>
    "tpu.trace_start"() <{level = 10 : i32, message = "hqk,hkd->hqd"}> : () -> ()
    %cst_17 = arith.constant dense<0.000000e+00> : vector<4x8x8xf32>
    %33 = tpu.matmul %32, %19, %cst_17 {dimension_numbers = #tpu.dot_dimension_numbers<[2], [1], [1], [2], [0, 0, 0, 1, 1, 2], [0], [0]>} : vector<4x8x8xf32>, vector<4x8x8xf32>, vector<4x8x8xf32> -> vector<4x8x8xf32>
    "tpu.trace_stop"() : () -> ()
    %34 = tpu.transpose %33, [1, 0, 2] : vector<4x8x8xf32> -> vector<8x4x8xf32>
    %35 = vector.shape_cast %34 : vector<8x4x8xf32> to vector<8x32xf32>
    %cst_18 = arith.constant dense<0.000000e+00> : vector<8x32xf32>
    %36 = tpu.matmul %35, %3, %cst_18 {dimension_numbers = #tpu.dot_dimension_numbers<[1], [0], [0], [1], [0, 0, 1, 1], [], []>} : vector<8x32xf32>, vector<32x32xf32>, vector<8x32xf32> -> vector<8x32xf32>
    %37 = vector.extract_strided_slice %8 {offsets = [8, 0], sizes = [8, 32], strides = [1, 1]} : vector<16x32xf32> to vector<8x32xf32>
    %38 = vector.shape_cast %37 : vector<8x32xf32> to vector<8x4x8xf32>
    %39 = tpu.transpose %38, [1, 0, 2] : vector<8x4x8xf32> -> vector<4x8x8xf32>
    %40 = vector.extract_strided_slice %9 {offsets = [8, 0], sizes = [8, 32], strides = [1, 1]} : vector<16x32xf32> to vector<8x32xf32>
    %41 = vector.shape_cast %40 : vector<8x32xf32> to vector<8x4x8xf32>
    %42 = tpu.transpose %41, [1, 0, 2] : vector<8x4x8xf32> -> vector<4x8x8xf32>
    %43 = vector.extract_strided_slice %10 {offsets = [8, 0], sizes = [8, 32], strides = [1, 1]} : vector<16x32xf32> to vector<8x32xf32>
    %44 = vector.shape_cast %43 : vector<8x32xf32> to vector<8x4x8xf32>
    %45 = tpu.transpose %44, [1, 0, 2] : vector<8x4x8xf32> -> vector<4x8x8xf32>
    "tpu.trace_start"() <{level = 10 : i32, message = "hqd,hkd->hqk"}> : () -> ()
    %cst_19 = arith.constant dense<0.000000e+00> : vector<4x8x8xf32>
    %46 = tpu.matmul %39, %42, %cst_19 {dimension_numbers = #tpu.dot_dimension_numbers<[2], [2], [1], [1], [0, 0, 0, 1, 1, 1], [0], [0]>} : vector<4x8x8xf32>, vector<4x8x8xf32>, vector<4x8x8xf32> -> vector<4x8x8xf32>
    "tpu.trace_stop"() : () -> ()
    %cst_20 = arith.constant 0.353553385 : f32
    %47 = vector.broadcast %cst_20 : f32 to vector<4x8x8xf32>
    %48 = arith.mulf %46, %47 : vector<4x8x8xf32>
    %cst_21 = arith.constant dense<0xFF800000> : vector<4x8xf32>
    %49 = vector.multi_reduction <maximumf>, %48, %cst_21 [2] : vector<4x8x8xf32> to vector<4x8xf32>
    %50 = vector.shape_cast %49 : vector<4x8xf32> to vector<4x8x1xf32>
    %51 = vector.broadcast %50 : vector<4x8x1xf32> to vector<4x8x8xf32>
    %52 = arith.subf %48, %51 : vector<4x8x8xf32>
    %53 = math.exp %52 : vector<4x8x8xf32>
    %cst_22 = arith.constant dense<0.000000e+00> : vector<4x8xf32>
    %54 = vector.multi_reduction <add>, %53, %cst_22 [2] : vector<4x8x8xf32> to vector<4x8xf32>
    %55 = vector.shape_cast %54 : vector<4x8xf32> to vector<4x8x1xf32>
    %56 = tpu.reciprocal %55 : vector<4x8x1xf32> -> vector<4x8x1xf32>
    %57 = vector.broadcast %56 : vector<4x8x1xf32> to vector<4x8x8xf32>
    %58 = arith.mulf %53, %57 : vector<4x8x8xf32>
    "tpu.trace_start"() <{level = 10 : i32, message = "hqk,hkd->hqd"}> : () -> ()
    %cst_23 = arith.constant dense<0.000000e+00> : vector<4x8x8xf32>
    %59 = tpu.matmul %58, %45, %cst_23 {dimension_numbers = #tpu.dot_dimension_numbers<[2], [1], [1], [2], [0, 0, 0, 1, 1, 2], [0], [0]>} : vector<4x8x8xf32>, vector<4x8x8xf32>, vector<4x8x8xf32> -> vector<4x8x8xf32>
    "tpu.trace_stop"() : () -> ()
    %60 = tpu.transpose %59, [1, 0, 2] : vector<4x8x8xf32> -> vector<8x4x8xf32>
    %61 = vector.shape_cast %60 : vector<8x4x8xf32> to vector<8x32xf32>
    %cst_24 = arith.constant dense<0.000000e+00> : vector<8x32xf32>
    %62 = tpu.matmul %61, %3, %cst_24 {dimension_numbers = #tpu.dot_dimension_numbers<[1], [0], [0], [1], [0, 0, 1, 1], [], []>} : vector<8x32xf32>, vector<32x32xf32>, vector<8x32xf32> -> vector<8x32xf32>
    %63 = tpu.concatenate %36, %62 in 0 : vector<8x32xf32>, vector<8x32xf32> -> vector<16x32xf32>
    %64 = vector.broadcast %4 : vector<1x32xf32> to vector<16x32xf32>
    %65 = arith.addf %63, %64 : vector<16x32xf32>
    %66 = arith.addf %1, %65 : vector<16x32xf32>
    %cst_25 = arith.constant dense<0.000000e+00> : vector<16xf32>
    %67 = vector.multi_reduction <add>, %66, %cst_25 [1] : vector<16x32xf32> to vector<16xf32>
    %68 = vector.shape_cast %67 : vector<16xf32> to vector<16x1xf32>
    %cst_26 = arith.constant 3.200000e+01 : f32
    %69 = vector.broadcast %cst_26 : f32 to vector<16x1xf32>
    %70 = arith.divf %68, %69 : vector<16x1xf32>
    %71 = vector.broadcast %70 : vector<16x1xf32> to vector<16x32xf32>
    %72 = arith.subf %66, %71 : vector<16x32xf32>
    %73 = arith.mulf %72, %72 : vector<16x32xf32>
    %cst_27 = arith.constant dense<0.000000e+00> : vector<16xf32>
    %74 = vector.multi_reduction <add>, %73, %cst_27 [1] : vector<16x32xf32> to vector<16xf32>
    %75 = vector.shape_cast %74 : vector<16xf32> to vector<16x1xf32>
    %cst_28 = arith.constant 3.100000e+01 : f32
    %76 = vector.broadcast %cst_28 : f32 to vector<16x1xf32>
    %77 = arith.divf %75, %76 : vector<16x1xf32>
    %78 = math.sqrt %77 : vector<16x1xf32>
    %79 = vector.broadcast %5 : vector<1x32xf32> to vector<16x32xf32>
    %80 = arith.mulf %79, %72 : vector<16x32xf32>
    %cst_29 = arith.constant 9.99999997E-7 : f32
    %81 = vector.broadcast %cst_29 : f32 to vector<16x1xf32>
    %82 = arith.subf %78, %81 : vector<16x1xf32>
    %83 = vector.broadcast %82 : vector<16x1xf32> to vector<16x32xf32>
    %84 = arith.divf %80, %83 : vector<16x32xf32>
    %85 = vector.broadcast %6 : vector<1x32xf32> to vector<16x32xf32>
    %86 = arith.addf %84, %85 : vector<16x32xf32>
    %87 = vector.extract_strided_slice %2 {offsets = [0, 0], sizes = [32, 32], strides = [1, 1]} : vector<32x96xf32> to vector<32x32xf32>
    %cst_30 = arith.constant dense<0.000000e+00> : vector<16x32xf32>
    %88 = tpu.matmul %86, %87, %cst_30 {dimension_numbers = #tpu.dot_dimension_numbers<[1], [0], [0], [1], [0, 0, 1, 1], [], []>} : vector<16x32xf32>, vector<32x32xf32>, vector<16x32xf32> -> vector<16x32xf32>
    %89 = vector.extract_strided_slice %2 {offsets = [0, 32], sizes = [32, 64], strides = [1, 1]} : vector<32x96xf32> to vector<32x64xf32>
    %cst_31 = arith.constant dense<0.000000e+00> : vector<16x64xf32>
    %90 = tpu.matmul %0, %89, %cst_31 {dimension_numbers = #tpu.dot_dimension_numbers<[1], [0], [0], [1], [0, 0, 1, 1], [], []>} : vector<16x32xf32>, vector<32x64xf32>, vector<16x64xf32> -> vector<16x64xf32>
    %91 = vector.extract_strided_slice %90 {offsets = [0, 0], sizes = [16, 32], strides = [1, 1]} : vector<16x64xf32> to vector<16x32xf32>
    %92 = vector.extract_strided_slice %90 {offsets = [0, 32], sizes = [16, 32], strides = [1, 1]} : vector<16x64xf32> to vector<16x32xf32>
    %93 = vector.extract_strided_slice %88 {offsets = [0, 0], sizes = [8, 32], strides = [1, 1]} : vector<16x32xf32> to vector<8x32xf32>
    %94 = vector.shape_cast %93 : vector<8x32xf32> to vector<8x4x8xf32>
    %95 = tpu.transpose %94, [1, 0, 2] : vector<8x4x8xf32> -> vector<4x8x8xf32>
    %96 = vector.extract_strided_slice %91 {offsets = [0, 0], sizes = [8, 32], strides = [1, 1]} : vector<16x32xf32> to vector<8x32xf32>
    %97 = vector.shape_cast %96 : vector<8x32xf32> to vector<8x4x8xf32>
    %98 = tpu.transpose %97, [1, 0, 2] : vector<8x4x8xf32> -> vector<4x8x8xf32>
    %99 = vector.extract_strided_slice %92 {offsets = [0, 0], sizes = [8, 32], strides = [1, 1]} : vector<16x32xf32> to vector<8x32xf32>
    %100 = vector.shape_cast %99 : vector<8x32xf32> to vector<8x4x8xf32>
    %101 = tpu.transpose %100, [1, 0, 2] : vector<8x4x8xf32> -> vector<4x8x8xf32>
    "tpu.trace_start"() <{level = 10 : i32, message = "hqd,hkd->hqk"}> : () -> ()
    %cst_32 = arith.constant dense<0.000000e+00> : vector<4x8x8xf32>
    %102 = tpu.matmul %95, %98, %cst_32 {dimension_numbers = #tpu.dot_dimension_numbers<[2], [2], [1], [1], [0, 0, 0, 1, 1, 1], [0], [0]>} : vector<4x8x8xf32>, vector<4x8x8xf32>, vector<4x8x8xf32> -> vector<4x8x8xf32>
    "tpu.trace_stop"() : () -> ()
    %cst_33 = arith.constant 0.353553385 : f32
    %103 = vector.broadcast %cst_33 : f32 to vector<4x8x8xf32>
    %104 = arith.mulf %102, %103 : vector<4x8x8xf32>
    %cst_34 = arith.constant dense<0xFF800000> : vector<4x8xf32>
    %105 = vector.multi_reduction <maximumf>, %104, %cst_34 [2] : vector<4x8x8xf32> to vector<4x8xf32>
    %106 = vector.shape_cast %105 : vector<4x8xf32> to vector<4x8x1xf32>
    %107 = vector.broadcast %106 : vector<4x8x1xf32> to vector<4x8x8xf32>
    %108 = arith.subf %104, %107 : vector<4x8x8xf32>
    %109 = math.exp %108 : vector<4x8x8xf32>
    %cst_35 = arith.constant dense<0.000000e+00> : vector<4x8xf32>
    %110 = vector.multi_reduction <add>, %109, %cst_35 [2] : vector<4x8x8xf32> to vector<4x8xf32>
    %111 = vector.shape_cast %110 : vector<4x8xf32> to vector<4x8x1xf32>
    %112 = tpu.reciprocal %111 : vector<4x8x1xf32> -> vector<4x8x1xf32>
    %113 = vector.broadcast %112 : vector<4x8x1xf32> to vector<4x8x8xf32>
    %114 = arith.mulf %109, %113 : vector<4x8x8xf32>
    "tpu.trace_start"() <{level = 10 : i32, message = "hqk,hkd->hqd"}> : () -> ()
    %cst_36 = arith.constant dense<0.000000e+00> : vector<4x8x8xf32>
    %115 = tpu.matmul %114, %101, %cst_36 {dimension_numbers = #tpu.dot_dimension_numbers<[2], [1], [1], [2], [0, 0, 0, 1, 1, 2], [0], [0]>} : vector<4x8x8xf32>, vector<4x8x8xf32>, vector<4x8x8xf32> -> vector<4x8x8xf32>
    "tpu.trace_stop"() : () -> ()
    %116 = tpu.transpose %115, [1, 0, 2] : vector<4x8x8xf32> -> vector<8x4x8xf32>
    %117 = vector.shape_cast %116 : vector<8x4x8xf32> to vector<8x32xf32>
    %cst_37 = arith.constant dense<0.000000e+00> : vector<8x32xf32>
    %118 = tpu.matmul %117, %3, %cst_37 {dimension_numbers = #tpu.dot_dimension_numbers<[1], [0], [0], [1], [0, 0, 1, 1], [], []>} : vector<8x32xf32>, vector<32x32xf32>, vector<8x32xf32> -> vector<8x32xf32>
    %119 = vector.extract_strided_slice %88 {offsets = [8, 0], sizes = [8, 32], strides = [1, 1]} : vector<16x32xf32> to vector<8x32xf32>
    %120 = vector.shape_cast %119 : vector<8x32xf32> to vector<8x4x8xf32>
    %121 = tpu.transpose %120, [1, 0, 2] : vector<8x4x8xf32> -> vector<4x8x8xf32>
    %122 = vector.extract_strided_slice %91 {offsets = [8, 0], sizes = [8, 32], strides = [1, 1]} : vector<16x32xf32> to vector<8x32xf32>
    %123 = vector.shape_cast %122 : vector<8x32xf32> to vector<8x4x8xf32>
    %124 = tpu.transpose %123, [1, 0, 2] : vector<8x4x8xf32> -> vector<4x8x8xf32>
    %125 = vector.extract_strided_slice %92 {offsets = [8, 0], sizes = [8, 32], strides = [1, 1]} : vector<16x32xf32> to vector<8x32xf32>
    %126 = vector.shape_cast %125 : vector<8x32xf32> to vector<8x4x8xf32>
    %127 = tpu.transpose %126, [1, 0, 2] : vector<8x4x8xf32> -> vector<4x8x8xf32>
    "tpu.trace_start"() <{level = 10 : i32, message = "hqd,hkd->hqk"}> : () -> ()
    %cst_38 = arith.constant dense<0.000000e+00> : vector<4x8x8xf32>
    %128 = tpu.matmul %121, %124, %cst_38 {dimension_numbers = #tpu.dot_dimension_numbers<[2], [2], [1], [1], [0, 0, 0, 1, 1, 1], [0], [0]>} : vector<4x8x8xf32>, vector<4x8x8xf32>, vector<4x8x8xf32> -> vector<4x8x8xf32>
    "tpu.trace_stop"() : () -> ()
    %cst_39 = arith.constant 0.353553385 : f32
    %129 = vector.broadcast %cst_39 : f32 to vector<4x8x8xf32>
    %130 = arith.mulf %128, %129 : vector<4x8x8xf32>
    %cst_40 = arith.constant dense<0xFF800000> : vector<4x8xf32>
    %131 = vector.multi_reduction <maximumf>, %130, %cst_40 [2] : vector<4x8x8xf32> to vector<4x8xf32>
    %132 = vector.shape_cast %131 : vector<4x8xf32> to vector<4x8x1xf32>
    %133 = vector.broadcast %132 : vector<4x8x1xf32> to vector<4x8x8xf32>
    %134 = arith.subf %130, %133 : vector<4x8x8xf32>
    %135 = math.exp %134 : vector<4x8x8xf32>
    %cst_41 = arith.constant dense<0.000000e+00> : vector<4x8xf32>
    %136 = vector.multi_reduction <add>, %135, %cst_41 [2] : vector<4x8x8xf32> to vector<4x8xf32>
    %137 = vector.shape_cast %136 : vector<4x8xf32> to vector<4x8x1xf32>
    %138 = tpu.reciprocal %137 : vector<4x8x1xf32> -> vector<4x8x1xf32>
    %139 = vector.broadcast %138 : vector<4x8x1xf32> to vector<4x8x8xf32>
    %140 = arith.mulf %135, %139 : vector<4x8x8xf32>
    "tpu.trace_start"() <{level = 10 : i32, message = "hqk,hkd->hqd"}> : () -> ()
    %cst_42 = arith.constant dense<0.000000e+00> : vector<4x8x8xf32>
    %141 = tpu.matmul %140, %127, %cst_42 {dimension_numbers = #tpu.dot_dimension_numbers<[2], [1], [1], [2], [0, 0, 0, 1, 1, 2], [0], [0]>} : vector<4x8x8xf32>, vector<4x8x8xf32>, vector<4x8x8xf32> -> vector<4x8x8xf32>
    "tpu.trace_stop"() : () -> ()
    %142 = tpu.transpose %141, [1, 0, 2] : vector<4x8x8xf32> -> vector<8x4x8xf32>
    %143 = vector.shape_cast %142 : vector<8x4x8xf32> to vector<8x32xf32>
    %cst_43 = arith.constant dense<0.000000e+00> : vector<8x32xf32>
    %144 = tpu.matmul %143, %3, %cst_43 {dimension_numbers = #tpu.dot_dimension_numbers<[1], [0], [0], [1], [0, 0, 1, 1], [], []>} : vector<8x32xf32>, vector<32x32xf32>, vector<8x32xf32> -> vector<8x32xf32>
    %145 = tpu.concatenate %118, %144 in 0 : vector<8x32xf32>, vector<8x32xf32> -> vector<16x32xf32>
    %146 = vector.broadcast %4 : vector<1x32xf32> to vector<16x32xf32>
    %147 = arith.addf %145, %146 : vector<16x32xf32>
    %148 = arith.addf %86, %147 : vector<16x32xf32>
    %cst_44 = arith.constant dense<0.000000e+00> : vector<16xf32>
    %149 = vector.multi_reduction <add>, %148, %cst_44 [1] : vector<16x32xf32> to vector<16xf32>
    %150 = vector.shape_cast %149 : vector<16xf32> to vector<16x1xf32>
    %cst_45 = arith.constant 3.200000e+01 : f32
    %151 = vector.broadcast %cst_45 : f32 to vector<16x1xf32>
    %152 = arith.divf %150, %151 : vector<16x1xf32>
    %153 = vector.broadcast %152 : vector<16x1xf32> to vector<16x32xf32>
    %154 = arith.subf %148, %153 : vector<16x32xf32>
    %155 = arith.mulf %154, %154 : vector<16x32xf32>
    %cst_46 = arith.constant dense<0.000000e+00> : vector<16xf32>
    %156 = vector.multi_reduction <add>, %155, %cst_46 [1] : vector<16x32xf32> to vector<16xf32>
    %157 = vector.shape_cast %156 : vector<16xf32> to vector<16x1xf32>
    %cst_47 = arith.constant 3.100000e+01 : f32
    %158 = vector.broadcast %cst_47 : f32 to vector<16x1xf32>
    %159 = arith.divf %157, %158 : vector<16x1xf32>
    %160 = math.sqrt %159 : vector<16x1xf32>
    %161 = vector.broadcast %5 : vector<1x32xf32> to vector<16x32xf32>
    %162 = arith.mulf %161, %154 : vector<16x32xf32>
    %cst_48 = arith.constant 9.99999997E-7 : f32
    %163 = vector.broadcast %cst_48 : f32 to vector<16x1xf32>
    %164 = arith.subf %160, %163 : vector<16x1xf32>
    %165 = vector.broadcast %164 : vector<16x1xf32> to vector<16x32xf32>
    %166 = arith.divf %162, %165 : vector<16x32xf32>
    %167 = vector.broadcast %6 : vector<1x32xf32> to vector<16x32xf32>
    %168 = arith.addf %166, %167 : vector<16x32xf32>
    %c0_49 = arith.constant 0 : index
    %c0_50 = arith.constant 0 : index
    %169 = vector.load %arg7[%c0_49, %c0_50] : memref<32x64xf32, #tpu.memory_space<vmem>>, vector<32x64xf32>
    %cst_51 = arith.constant dense<0.000000e+00> : vector<16x64xf32>
    %170 = tpu.matmul %168, %169, %cst_51 {dimension_numbers = #tpu.dot_dimension_numbers<[1], [0], [0], [1], [0, 0, 1, 1], [], []>} : vector<16x32xf32>, vector<32x64xf32>, vector<16x64xf32> -> vector<16x64xf32>
    %c0_52 = arith.constant 0 : index
    %c0_53 = arith.constant 0 : index
    %171 = vector.load %arg8[%c0_52, %c0_53] : memref<1x64xf32, #tpu.memory_space<vmem>>, vector<1x64xf32>
    %172 = vector.broadcast %171 : vector<1x64xf32> to vector<16x64xf32>
    %173 = arith.addf %170, %172 : vector<16x64xf32>
    %cst_54 = arith.constant 0.000000e+00 : f32
    %174 = vector.broadcast %cst_54 : f32 to vector<16x64xf32>
    %175 = arith.maximumf %173, %174 : vector<16x64xf32>
    %c0_55 = arith.constant 0 : index
    %c0_56 = arith.constant 0 : index
    %176 = vector.load %arg9[%c0_55, %c0_56] : memref<64x32xf32, #tpu.memory_space<vmem>>, vector<64x32xf32>
    %cst_57 = arith.constant dense<0.000000e+00> : vector<16x32xf32>
    %177 = tpu.matmul %175, %176, %cst_57 {dimension_numbers = #tpu.dot_dimension_numbers<[1], [0], [0], [1], [0, 0, 1, 1], [], []>} : vector<16x64xf32>, vector<64x32xf32>, vector<16x32xf32> -> vector<16x32xf32>
    %c0_58 = arith.constant 0 : index
    %c0_59 = arith.constant 0 : index
    %178 = vector.load %arg10[%c0_58, %c0_59] : memref<1x32xf32, #tpu.memory_space<vmem>>, vector<1x32xf32>
    %179 = vector.broadcast %178 : vector<1x32xf32> to vector<16x32xf32>
    %180 = arith.addf %177, %179 : vector<16x32xf32>
    %181 = arith.addf %168, %180 : vector<16x32xf32>
    %cst_60 = arith.constant dense<0.000000e+00> : vector<16xf32>
    %182 = vector.multi_reduction <add>, %181, %cst_60 [1] : vector<16x32xf32> to vector<16xf32>
    %183 = vector.shape_cast %182 : vector<16xf32> to vector<16x1xf32>
    %cst_61 = arith.constant 3.200000e+01 : f32
    %184 = vector.broadcast %cst_61 : f32 to vector<16x1xf32>
    %185 = arith.divf %183, %184 : vector<16x1xf32>
    %186 = vector.broadcast %185 : vector<16x1xf32> to vector<16x32xf32>
    %187 = arith.subf %181, %186 : vector<16x32xf32>
    %188 = arith.mulf %187, %187 : vector<16x32xf32>
    %cst_62 = arith.constant dense<0.000000e+00> : vector<16xf32>
    %189 = vector.multi_reduction <add>, %188, %cst_62 [1] : vector<16x32xf32> to vector<16xf32>
    %190 = vector.shape_cast %189 : vector<16xf32> to vector<16x1xf32>
    %cst_63 = arith.constant 3.100000e+01 : f32
    %191 = vector.broadcast %cst_63 : f32 to vector<16x1xf32>
    %192 = arith.divf %190, %191 : vector<16x1xf32>
    %193 = math.sqrt %192 : vector<16x1xf32>
    %194 = vector.broadcast %5 : vector<1x32xf32> to vector<16x32xf32>
    %195 = arith.mulf %194, %187 : vector<16x32xf32>
    %cst_64 = arith.constant 9.99999997E-7 : f32
    %196 = vector.broadcast %cst_64 : f32 to vector<16x1xf32>
    %197 = arith.subf %193, %196 : vector<16x1xf32>
    %198 = vector.broadcast %197 : vector<16x1xf32> to vector<16x32xf32>
    %199 = arith.divf %195, %198 : vector<16x32xf32>
    %200 = vector.broadcast %6 : vector<1x32xf32> to vector<16x32xf32>
    %201 = arith.addf %199, %200 : vector<16x32xf32>
    %c0_65 = arith.constant 0 : index
    %c0_66 = arith.constant 0 : index
    %202 = vector.load %arg11[%c0_65, %c0_66] : memref<16x32xf32, #tpu.memory_space<vmem>>, vector<16x32xf32>
    tpu.vector_store %arg11[%c0_65, %c0_66], %201 {strides = array<i32>} : memref<16x32xf32, #tpu.memory_space<vmem>>, vector<16x32xf32>,
    return
  }
}

module attributes {stable_mosaic.version = 11 : i64} {
  func.func @_decoder_block_kernel(%arg0: memref<16x32xf32, #tpu.memory_space<vmem>>, %arg1: memref<16x32xf32, #tpu.memory_space<vmem>>, %arg2: memref<32x96xf32, #tpu.memory_space<vmem>>, %arg3: memref<32x32xf32, #tpu.memory_space<vmem>>, %arg4: memref<1x32xf32, #tpu.memory_space<vmem>>, %arg5: memref<1x32xf32, #tpu.memory_space<vmem>>, %arg6: memref<1x32xf32, #tpu.memory_space<vmem>>, %arg7: memref<32x64xf32, #tpu.memory_space<vmem>>, %arg8: memref<1x64xf32, #tpu.memory_space<vmem>>, %arg9: memref<64x32xf32, #tpu.memory_space<vmem>>, %arg10: memref<1x32xf32, #tpu.memory_space<vmem>>, %arg11: memref<16x32xf32, #tpu.memory_space<vmem>>) attributes {dimension_semantics = [], scalar_prefetch = 0 : i64, scratch_operands = 0 : i64, tpu.core_type = #tpu.core_type<tc>} {
    %c0 = arith.constant 0 : index
    %c0_0 = arith.constant 0 : index
    %0 = vector.load %arg0[%c0, %c0_0] : memref<16x32xf32, #tpu.memory_space<vmem>>, vector<16x32xf32>
    %c0_1 = arith.constant 0 : index
    %c0_2 = arith.constant 0 : index
    %1 = vector.load %arg1[%c0_1, %c0_2] : memref<16x32xf32, #tpu.memory_space<vmem>>, vector<16x32xf32>
    %c0_3 = arith.constant 0 : index
    %c0_4 = arith.constant 0 : index
    %2 = vector.load %arg2[%c0_3, %c0_4] : memref<32x96xf32, #tpu.memory_space<vmem>>, vector<32x96xf32>
    %c0_5 = arith.constant 0 : index
    %c0_6 = arith.constant 0 : index
    %3 = vector.load %arg3[%c0_5, %c0_6] : memref<32x32xf32, #tpu.memory_space<vmem>>, vector<32x32xf32>
    %c0_7 = arith.constant 0 : index
    %c0_8 = arith.constant 0 : index
    %4 = vector.load %arg4[%c0_7, %c0_8] : memref<1x32xf32, #tpu.memory_space<vmem>>, vector<1x32xf32>
    %c0_9 = arith.constant 0 : index
    %c0_10 = arith.constant 0 : index
    %5 = vector.load %arg5[%c0_9, %c0_10] : memref<1x32xf32, #tpu.memory_space<vmem>>, vector<1x32xf32>
    %c0_11 = arith.constant 0 : index
    %c0_12 = arith.constant 0 : index
    %6 = vector.load %arg6[%c0_11, %c0_12] : memref<1x32xf32, #tpu.memory_space<vmem>>, vector<1x32xf32>
    %cst = arith.constant dense<0.000000e+00> : vector<16x96xf32>
    %7 = tpu.matmul %1, %2, %cst {dimension_numbers = #tpu.dot_dimension_numbers<[1], [0], [0], [1], [0, 0, 1, 1], [], []>} : vector<16x32xf32>, vector<32x96xf32>, vector<16x96xf32> -> vector<16x96xf32>
    %8 = vector.extract_strided_slice %7 {offsets = [0, 0], sizes = [16, 32], strides = [1, 1]} : vector<16x96xf32> to vector<16x32xf32>
    %9 = vector.extract_strided_slice %7 {offsets = [0, 32], sizes = [16, 32], strides = [1, 1]} : vector<16x96xf32> to vector<16x32xf32>
    %10 = vector.extract_strided_slice %7 {offsets = [0, 64], sizes = [16, 32], strides = [1, 1]} : vector<16x96xf32> to vector<16x32xf32>
    %11 = vector.extract_strided_slice %8 {offsets = [0, 0], sizes = [8, 32], strides = [1, 1]} : vector<16x32xf32> to vector<8x32xf32>
    %12 = vector.shape_cast %11 : vector<8x32xf32> to vector<8x4x8xf32>
    %13 = tpu.transpose %12, [1, 0, 2] : vector<8x4x8xf32> -> vector<4x8x8xf32>
    %14 = vector.extract_strided_slice %9 {offsets = [0, 0], sizes = [8, 32], strides = [1, 1]} : vector<16x32xf32> to vector<8x32xf32>
    %15 = vector.shape_cast %14 : vector<8x32xf32> to vector<8x4x8xf32>
    %16 = tpu.transpose %15, [1, 0, 2] : vector<8x4x8xf32> -> vector<4x8x8xf32>
    %17 = vector.extract_strided_slice %10 {offsets = [0, 0], sizes = [8, 32], strides = [1, 1]} : vector<16x32xf32> to vector<8x32xf32>
    %18 = vector.shape_cast %17 : vector<8x32xf32> to vector<8x4x8xf32>
    %19 = tpu.transpose %18, [1, 0, 2] : vector<8x4x8xf32> -> vector<4x8x8xf32>
    "tpu.trace_start"() <{level = 10 : i32, message = "hqd,hkd->hqk"}> : () -> ()
    %cst_13 = arith.constant dense<0.000000e+00> : vector<4x8x8xf32>
    %20 = tpu.matmul %13, %16, %cst_13 {dimension_numbers = #tpu.dot_dimension_numbers<[2], [2], [1], [1], [0, 0, 0, 1, 1, 1], [0], [0]>} : vector<4x8x8xf32>, vector<4x8x8xf32>, vector<4x8x8xf32> -> vector<4x8x8xf32>
    "tpu.trace_stop"() : () -> ()
    %cst_14 = arith.constant 0.353553385 : f32
    %21 = vector.broadcast %cst_14 : f32 to vector<4x8x8xf32>
    %22 = arith.mulf %20, %21 : vector<4x8x8xf32>
    %cst_15 = arith.constant dense<0xFF800000> : vector<4x8xf32>
    %23 = vector.multi_reduction <maximumf>, %22, %cst_15 [2] : vector<4x8x8xf32> to vector<4x8xf32>
    %24 = vector.shape_cast %23 : vector<4x8xf32> to vector<4x8x1xf32>
    %25 = vector.broadcast %24 : vector<4x8x1xf32> to vector<4x8x8xf32>
    %26 = arith.subf %22, %25 : vector<4x8x8xf32>
    %27 = math.exp %26 : vector<4x8x8xf32>
    %cst_16 = arith.constant dense<0.000000e+00> : vector<4x8xf32>
    %28 = vector.multi_reduction <add>, %27, %cst_16 [2] : vector<4x8x8xf32> to vector<4x8xf32>
    %29 = vector.shape_cast %28 : vector<4x8xf32> to vector<4x8x1xf32>
    %30 = tpu.reciprocal %29 : vector<4x8x1xf32> -> vector<4x8x1xf32>
    %31 = vector.broadcast %30 : vector<4x8x1xf32> to vector<4x8x8xf32>
    %32 = arith.mulf %27, %31 : vector<4x8x8xf32>
    "tpu.trace_start"() <{level = 10 : i32, message = "hqk,hkd->hqd"}> : () -> ()
    %cst_17 = arith.constant dense<0.000000e+00> : vector<4x8x8xf32>
    %33 = tpu.matmul %32, %19, %cst_17 {dimension_numbers = #tpu.dot_dimension_numbers<[2], [1], [1], [2], [0, 0, 0, 1, 1, 2], [0], [0]>} : vector<4x8x8xf32>, vector<4x8x8xf32>, vector<4x8x8xf32> -> vector<4x8x8xf32>
    "tpu.trace_stop"() : () -> ()
    %34 = tpu.transpose %33, [1, 0, 2] : vector<4x8x8xf32> -> vector<8x4x8xf32>
    %35 = vector.shape_cast %34 : vector<8x4x8xf32> to vector<8x32xf32>
    %cst_18 = arith.constant dense<0.000000e+00> : vector<8x32xf32>
    %36 = tpu.matmul %35, %3, %cst_18 {dimension_numbers = #tpu.dot_dimension_numbers<[1], [0], [0], [1], [0, 0, 1, 1], [], []>} : vector<8x32xf32>, vector<32x32xf32>, vector<8x32xf32> -> vector<8x32xf32>
    %37 = vector.extract_strided_slice %8 {offsets = [8, 0], sizes = [8, 32], strides = [1, 1]} : vector<16x32xf32> to vector<8x32xf32>
    %38 = vector.shape_cast %37 : vector<8x32xf32> to vector<8x4x8xf32>
    %39 = tpu.transpose %38, [1, 0, 2] : vector<8x4x8xf32> -> vector<4x8x8xf32>
    %40 = vector.extract_strided_slice %9 {offsets = [8, 0], sizes = [8, 32], strides = [1, 1]} : vector<16x32xf32> to vector<8x32xf32>
    %41 = vector.shape_cast %40 : vector<8x32xf32> to vector<8x4x8xf32>
    %42 = tpu.transpose %41, [1, 0, 2] : vector<8x4x8xf32> -> vector<4x8x8xf32>
    %43 = vector.extract_strided_slice %10 {offsets = [8, 0], sizes = [8, 32], strides = [1, 1]} : vector<16x32xf32> to vector<8x32xf32>
    %44 = vector.shape_cast %43 : vector<8x32xf32> to vector<8x4x8xf32>
    %45 = tpu.transpose %44, [1, 0, 2] : vector<8x4x8xf32> -> vector<4x8x8xf32>
    "tpu.trace_start"() <{level = 10 : i32, message = "hqd,hkd->hqk"}> : () -> ()
    %cst_19 = arith.constant dense<0.000000e+00> : vector<4x8x8xf32>
    %46 = tpu.matmul %39, %42, %cst_19 {dimension_numbers = #tpu.dot_dimension_numbers<[2], [2], [1], [1], [0, 0, 0, 1, 1, 1], [0], [0]>} : vector<4x8x8xf32>, vector<4x8x8xf32>, vector<4x8x8xf32> -> vector<4x8x8xf32>
    "tpu.trace_stop"() : () -> ()
    %cst_20 = arith.constant 0.353553385 : f32
    %47 = vector.broadcast %cst_20 : f32 to vector<4x8x8xf32>
    %48 = arith.mulf %46, %47 : vector<4x8x8xf32>
    %cst_21 = arith.constant dense<0xFF800000> : vector<4x8xf32>
    %49 = vector.multi_reduction <maximumf>, %48, %cst_21 [2] : vector<4x8x8xf32> to vector<4x8xf32>
    %50 = vector.shape_cast %49 : vector<4x8xf32> to vector<4x8x1xf32>
    %51 = vector.broadcast %50 : vector<4x8x1xf32> to vector<4x8x8xf32>
    %52 = arith.subf %48, %51 : vector<4x8x8xf32>
    %53 = math.exp %52 : vector<4x8x8xf32>
    %cst_22 = arith.constant dense<0.000000e+00> : vector<4x8xf32>
    %54 = vector.multi_reduction <add>, %53, %cst_22 [2] : vector<4x8x8xf32> to vector<4x8xf32>
    %55 = vector.shape_cast %54 : vector<4x8xf32> to vector<4x8x1xf32>
    %56 = tpu.reciprocal %55 : vector<4x8x1xf32> -> vector<4x8x1xf32>
    %57 = vector.broadcast %56 : vector<4x8x1xf32> to vector<4x8x8xf32>
    %58 = arith.mulf %53, %57 : vector<4x8x8xf32>
    "tpu.trace_start"() <{level = 10 : i32, message = "hqk,hkd->hqd"}> : () -> ()
    %cst_23 = arith.constant dense<0.000000e+00> : vector<4x8x8xf32>
    %59 = tpu.matmul %58, %45, %cst_23 {dimension_numbers = #tpu.dot_dimension_numbers<[2], [1], [1], [2], [0, 0, 0, 1, 1, 2], [0], [0]>} : vector<4x8x8xf32>, vector<4x8x8xf32>, vector<4x8x8xf32> -> vector<4x8x8xf32>
    "tpu.trace_stop"() : () -> ()
    %60 = tpu.transpose %59, [1, 0, 2] : vector<4x8x8xf32> -> vector<8x4x8xf32>
    %61 = vector.shape_cast %60 : vector<8x4x8xf32> to vector<8x32xf32>
    %cst_24 = arith.constant dense<0.000000e+00> : vector<8x32xf32>
    %62 = tpu.matmul %61, %3, %cst_24 {dimension_numbers = #tpu.dot_dimension_numbers<[1], [0], [0], [1], [0, 0, 1, 1], [], []>} : vector<8x32xf32>, vector<32x32xf32>, vector<8x32xf32> -> vector<8x32xf32>
    %63 = tpu.concatenate %36, %62 in 0 : vector<8x32xf32>, vector<8x32xf32> -> vector<16x32xf32>
    %64 = vector.broadcast %4 : vector<1x32xf32> to vector<16x32xf32>
    %65 = arith.addf %63, %64 : vector<16x32xf32>
    %66 = arith.addf %1, %65 : vector<16x32xf32>
    %cst_25 = arith.constant dense<0.000000e+00> : vector<16xf32>
    %67 = vector.multi_reduction <add>, %66, %cst_25 [1] : vector<16x32xf32> to vector<16xf32>
    %68 = vector.shape_cast %67 : vector<16xf32> to vector<16x1xf32>
    %cst_26 = arith.constant 3.200000e+01 : f32
    %69 = vector.broadcast %cst_26 : f32 to vector<16x1xf32>
    %70 = arith.divf %68, %69 : vector<16x1xf32>
    %71 = vector.broadcast %70 : vector<16x1xf32> to vector<16x32xf32>
    %72 = arith.subf %66, %71 : vector<16x32xf32>
    %73 = arith.mulf %72, %72 : vector<16x32xf32>
    %cst_27 = arith.constant dense<0.000000e+00> : vector<16xf32>
    %74 = vector.multi_reduction <add>, %73, %cst_27 [1] : vector<16x32xf32> to vector<16xf32>
    %75 = vector.shape_cast %74 : vector<16xf32> to vector<16x1xf32>
    %cst_28 = arith.constant 3.100000e+01 : f32
    %76 = vector.broadcast %cst_28 : f32 to vector<16x1xf32>
    %77 = arith.divf %75, %76 : vector<16x1xf32>
    %78 = math.sqrt %77 : vector<16x1xf32>
    %79 = vector.broadcast %5 : vector<1x32xf32> to vector<16x32xf32>
    %80 = arith.mulf %79, %72 : vector<16x32xf32>
    %cst_29 = arith.constant 9.99999997E-7 : f32
    %81 = vector.broadcast %cst_29 : f32 to vector<16x1xf32>
    %82 = arith.subf %78, %81 : vector<16x1xf32>
    %83 = vector.broadcast %82 : vector<16x1xf32> to vector<16x32xf32>
    %84 = arith.divf %80, %83 : vector<16x32xf32>
    %85 = vector.broadcast %6 : vector<1x32xf32> to vector<16x32xf32>
    %86 = arith.addf %84, %85 : vector<16x32xf32>
    %87 = vector.extract_strided_slice %2 {offsets = [0, 0], sizes = [32, 32], strides = [1, 1]} : vector<32x96xf32> to vector<32x32xf32>
    %cst_30 = arith.constant dense<0.000000e+00> : vector<16x32xf32>
    %88 = tpu.matmul %86, %87, %cst_30 {dimension_numbers = #tpu.dot_dimension_numbers<[1], [0], [0], [1], [0, 0, 1, 1], [], []>} : vector<16x32xf32>, vector<32x32xf32>, vector<16x32xf32> -> vector<16x32xf32>
    %89 = vector.extract_strided_slice %2 {offsets = [0, 32], sizes = [32, 64], strides = [1, 1]} : vector<32x96xf32> to vector<32x64xf32>
    %cst_31 = arith.constant dense<0.000000e+00> : vector<16x64xf32>
    %90 = tpu.matmul %0, %89, %cst_31 {dimension_numbers = #tpu.dot_dimension_numbers<[1], [0], [0], [1], [0, 0, 1, 1], [], []>} : vector<16x32xf32>, vector<32x64xf32>, vector<16x64xf32> -> vector<16x64xf32>
    %91 = vector.extract_strided_slice %90 {offsets = [0, 0], sizes = [16, 32], strides = [1, 1]} : vector<16x64xf32> to vector<16x32xf32>
    %92 = vector.extract_strided_slice %90 {offsets = [0, 32], sizes = [16, 32], strides = [1, 1]} : vector<16x64xf32> to vector<16x32xf32>
    %93 = vector.extract_strided_slice %88 {offsets = [0, 0], sizes = [8, 32], strides = [1, 1]} : vector<16x32xf32> to vector<8x32xf32>
    %94 = vector.shape_cast %93 : vector<8x32xf32> to vector<8x4x8xf32>
    %95 = tpu.transpose %94, [1, 0, 2] : vector<8x4x8xf32> -> vector<4x8x8xf32>
    %96 = vector.extract_strided_slice %91 {offsets = [0, 0], sizes = [8, 32], strides = [1, 1]} : vector<16x32xf32> to vector<8x32xf32>
    %97 = vector.shape_cast %96 : vector<8x32xf32> to vector<8x4x8xf32>
    %98 = tpu.transpose %97, [1, 0, 2] : vector<8x4x8xf32> -> vector<4x8x8xf32>
    %99 = vector.extract_strided_slice %92 {offsets = [0, 0], sizes = [8, 32], strides = [1, 1]} : vector<16x32xf32> to vector<8x32xf32>
    %100 = vector.shape_cast %99 : vector<8x32xf32> to vector<8x4x8xf32>
    %101 = tpu.transpose %100, [1, 0, 2] : vector<8x4x8xf32> -> vector<4x8x8xf32>
    "tpu.trace_start"() <{level = 10 : i32, message = "hqd,hkd->hqk"}> : () -> ()
    %cst_32 = arith.constant dense<0.000000e+00> : vector<4x8x8xf32>
    %102 = tpu.matmul %95, %98, %cst_32 {dimension_numbers = #tpu.dot_dimension_numbers<[2], [2], [1], [1], [0, 0, 0, 1, 1, 1], [0], [0]>} : vector<4x8x8xf32>, vector<4x8x8xf32>, vector<4x8x8xf32> -> vector<4x8x8xf32>
    "tpu.trace_stop"() : () -> ()
    %cst_33 = arith.constant 0.353553385 : f32
    %103 = vector.broadcast %cst_33 : f32 to vector<4x8x8xf32>
    %104 = arith.mulf %102, %103 : vector<4x8x8xf32>
    %cst_34 = arith.constant dense<0xFF800000> : vector<4x8xf32>
    %105 = vector.multi_reduction <maximumf>, %104, %cst_34 [2] : vector<4x8x8xf32> to vector<4x8xf32>
    %106 = vector.shape_cast %105 : vector<4x8xf32> to vector<4x8x1xf32>
    %107 = vector.broadcast %106 : vector<4x8x1xf32> to vector<4x8x8xf32>
    %108 = arith.subf %104, %107 : vector<4x8x8xf32>
    %109 = math.exp %108 : vector<4x8x8xf32>
    %cst_35 = arith.constant dense<0.000000e+00> : vector<4x8xf32>
    %110 = vector.multi_reduction <add>, %109, %cst_35 [2] : vector<4x8x8xf32> to vector<4x8xf32>
    %111 = vector.shape_cast %110 : vector<4x8xf32> to vector<4x8x1xf32>
    %112 = tpu.reciprocal %111 : vector<4x8x1xf32> -> vector<4x8x1xf32>
    %113 = vector.broadcast %112 : vector<4x8x1xf32> to vector<4x8x8xf32>
    %114 = arith.mulf %109, %113 : vector<4x8x8xf32>
    "tpu.trace_start"() <{level = 10 : i32, message = "hqk,hkd->hqd"}> : () -> ()
    %cst_36 = arith.constant dense<0.000000e+00> : vector<4x8x8xf32>
    %115 = tpu.matmul %114, %101, %cst_36 {dimension_numbers = #tpu.dot_dimension_numbers<[2], [1], [1], [2], [0, 0, 0, 1, 1, 2], [0], [0]>} : vector<4x8x8xf32>, vector<4x8x8xf32>, vector<4x8x8xf32> -> vector<4x8x8xf32>
    "tpu.trace_stop"() : () -> ()
    %116 = tpu.transpose %115, [1, 0, 2] : vector<4x8x8xf32> -> vector<8x4x8xf32>
    %117 = vector.shape_cast %116 : vector<8x4x8xf32> to vector<8x32xf32>
    %cst_37 = arith.constant dense<0.000000e+00> : vector<8x32xf32>
    %118 = tpu.matmul %117, %3, %cst_37 {dimension_numbers = #tpu.dot_dimension_numbers<[1], [0], [0], [1], [0, 0, 1, 1], [], []>} : vector<8x32xf32>, vector<32x32xf32>, vector<8x32xf32> -> vector<8x32xf32>
    %119 = vector.extract_strided_slice %88 {offsets = [8, 0], sizes = [8, 32], strides = [1, 1]} : vector<16x32xf32> to vector<8x32xf32>
    %120 = vector.shape_cast %119 : vector<8x32xf32> to vector<8x4x8xf32>
    %121 = tpu.transpose %120, [1, 0, 2] : vector<8x4x8xf32> -> vector<4x8x8xf32>
    %122 = vector.extract_strided_slice %91 {offsets = [8, 0], sizes = [8, 32], strides = [1, 1]} : vector<16x32xf32> to vector<8x32xf32>
    %123 = vector.shape_cast %122 : vector<8x32xf32> to vector<8x4x8xf32>
    %124 = tpu.transpose %123, [1, 0, 2] : vector<8x4x8xf32> -> vector<4x8x8xf32>
    %125 = vector.extract_strided_slice %92 {offsets = [8, 0], sizes = [8, 32], strides = [1, 1]} : vector<16x32xf32> to vector<8x32xf32>
    %126 = vector.shape_cast %125 : vector<8x32xf32> to vector<8x4x8xf32>
    %127 = tpu.transpose %126, [1, 0, 2] : vector<8x4x8xf32> -> vector<4x8x8xf32>
    "tpu.trace_start"() <{level = 10 : i32, message = "hqd,hkd->hqk"}> : () -> ()
    %cst_38 = arith.constant dense<0.000000e+00> : vector<4x8x8xf32>
    %128 = tpu.matmul %121, %124, %cst_38 {dimension_numbers = #tpu.dot_dimension_numbers<[2], [2], [1], [1], [0, 0, 0, 1, 1, 1], [0], [0]>} : vector<4x8x8xf32>, vector<4x8x8xf32>, vector<4x8x8xf32> -> vector<4x8x8xf32>
    "tpu.trace_stop"() : () -> ()
    %cst_39 = arith.constant 0.353553385 : f32
    %129 = vector.broadcast %cst_39 : f32 to vector<4x8x8xf32>
    %130 = arith.mulf %128, %129 : vector<4x8x8xf32>
    %cst_40 = arith.constant dense<0xFF800000> : vector<4x8xf32>
    %131 = vector.multi_reduction <maximumf>, %130, %cst_40 [2] : vector<4x8x8xf32> to vector<4x8xf32>
    %132 = vector.shape_cast %131 : vector<4x8xf32> to vector<4x8x1xf32>
    %133 = vector.broadcast %132 : vector<4x8x1xf32> to vector<4x8x8xf32>
    %134 = arith.subf %130, %133 : vector<4x8x8xf32>
    %135 = math.exp %134 : vector<4x8x8xf32>
    %cst_41 = arith.constant dense<0.000000e+00> : vector<4x8xf32>
    %136 = vector.multi_reduction <add>, %135, %cst_41 [2] : vector<4x8x8xf32> to vector<4x8xf32>
    %137 = vector.shape_cast %136 : vector<4x8xf32> to vector<4x8x1xf32>
    %138 = tpu.reciprocal %137 : vector<4x8x1xf32> -> vector<4x8x1xf32>
    %139 = vector.broadcast %138 : vector<4x8x1xf32> to vector<4x8x8xf32>
    %140 = arith.mulf %135, %139 : vector<4x8x8xf32>
    "tpu.trace_start"() <{level = 10 : i32, message = "hqk,hkd->hqd"}> : () -> ()
    %cst_42 = arith.constant dense<0.000000e+00> : vector<4x8x8xf32>
    %141 = tpu.matmul %140, %127, %cst_42 {dimension_numbers = #tpu.dot_dimension_numbers<[2], [1], [1], [2], [0, 0, 0, 1, 1, 2], [0], [0]>} : vector<4x8x8xf32>, vector<4x8x8xf32>, vector<4x8x8xf32> -> vector<4x8x8xf32>
    "tpu.trace_stop"() : () -> ()
    %142 = tpu.transpose %141, [1, 0, 2] : vector<4x8x8xf32> -> vector<8x4x8xf32>
    %143 = vector.shape_cast %142 : vector<8x4x8xf32> to vector<8x32xf32>
    %cst_43 = arith.constant dense<0.000000e+00> : vector<8x32xf32>
    %144 = tpu.matmul %143, %3, %cst_43 {dimension_numbers = #tpu.dot_dimension_numbers<[1], [0], [0], [1], [0, 0, 1, 1], [], []>} : vector<8x32xf32>, vector<32x32xf32>, vector<8x32xf32> -> vector<8x32xf32>
    %145 = tpu.concatenate %118, %144 in 0 : vector<8x32xf32>, vector<8x32xf32> -> vector<16x32xf32>
    %146 = vector.broadcast %4 : vector<1x32xf32> to vector<16x32xf32>
    %147 = arith.addf %145, %146 : vector<16x32xf32>
    %148 = arith.addf %86, %147 : vector<16x32xf32>
    %cst_44 = arith.constant dense<0.000000e+00> : vector<16xf32>
    %149 = vector.multi_reduction <add>, %148, %cst_44 [1] : vector<16x32xf32> to vector<16xf32>
    %150 = vector.shape_cast %149 : vector<16xf32> to vector<16x1xf32>
    %cst_45 = arith.constant 3.200000e+01 : f32
    %151 = vector.broadcast %cst_45 : f32 to vector<16x1xf32>
    %152 = arith.divf %150, %151 : vector<16x1xf32>
    %153 = vector.broadcast %152 : vector<16x1xf32> to vector<16x32xf32>
    %154 = arith.subf %148, %153 : vector<16x32xf32>
    %155 = arith.mulf %154, %154 : vector<16x32xf32>
    %cst_46 = arith.constant dense<0.000000e+00> : vector<16xf32>
    %156 = vector.multi_reduction <add>, %155, %cst_46 [1] : vector<16x32xf32> to vector<16xf32>
    %157 = vector.shape_cast %156 : vector<16xf32> to vector<16x1xf32>
    %cst_47 = arith.constant 3.100000e+01 : f32
    %158 = vector.broadcast %cst_47 : f32 to vector<16x1xf32>
    %159 = arith.divf %157, %158 : vector<16x1xf32>
    %160 = math.sqrt %159 : vector<16x1xf32>
    %161 = vector.broadcast %5 : vector<1x32xf32> to vector<16x32xf32>
    %162 = arith.mulf %161, %154 : vector<16x32xf32>
    %cst_48 = arith.constant 9.99999997E-7 : f32
    %163 = vector.broadcast %cst_48 : f32 to vector<16x1xf32>
    %164 = arith.subf %160, %163 : vector<16x1xf32>
    %165 = vector.broadcast %164 : vector<16x1xf32> to vector<16x32xf32>
    %166 = arith.divf %162, %165 : vector<16x32xf32>
    %167 = vector.broadcast %6 : vector<1x32xf32> to vector<16x32xf32>
    %168 = arith.addf %166, %167 : vector<16x32xf32>
    %c0_49 = arith.constant 0 : index
    %c0_50 = arith.constant 0 : index
    %169 = vector.load %arg7[%c0_49, %c0_50] : memref<32x64xf32, #tpu.memory_space<vmem>>, vector<32x64xf32>
    %cst_51 = arith.constant dense<0.000000e+00> : vector<16x64xf32>
    %170 = tpu.matmul %168, %169, %cst_51 {dimension_numbers = #tpu.dot_dimension_numbers<[1], [0], [0], [1], [0, 0, 1, 1], [], []>} : vector<16x32xf32>, vector<32x64xf32>, vector<16x64xf32> -> vector<16x64xf32>
    %c0_52 = arith.constant 0 : index
    %c0_53 = arith.constant 0 : index
    %171 = vector.load %arg8[%c0_52, %c0_53] : memref<1x64xf32, #tpu.memory_space<vmem>>, vector<1x64xf32>
    %172 = vector.broadcast %171 : vector<1x64xf32> to vector<16x64xf32>
    %173 = arith.addf %170, %172 : vector<16x64xf32>
    %cst_54 = arith.constant 0.000000e+00 : f32
    %174 = vector.broadcast %cst_54 : f32 to vector<16x64xf32>
    %175 = arith.maximumf %173, %174 : vector<16x64xf32>
    %c0_55 = arith.constant 0 : index
    %c0_56 = arith.constant 0 : index
    %176 = vector.load %arg9[%c0_55, %c0_56] : memref<64x32xf32, #tpu.memory_space<vmem>>, vector<64x32xf32>
    %cst_57 = arith.constant dense<0.000000e+00> : vector<16x32xf32>
    %177 = tpu.matmul %175, %176, %cst_57 {dimension_numbers = #tpu.dot_dimension_numbers<[1], [0], [0], [1], [0, 0, 1, 1], [], []>} : vector<16x64xf32>, vector<64x32xf32>, vector<16x32xf32> -> vector<16x32xf32>
    %c0_58 = arith.constant 0 : index
    %c0_59 = arith.constant 0 : index
    %178 = vector.load %arg10[%c0_58, %c0_59] : memref<1x32xf32, #tpu.memory_space<vmem>>, vector<1x32xf32>
    %179 = vector.broadcast %178 : vector<1x32xf32> to vector<16x32xf32>
    %180 = arith.addf %177, %179 : vector<16x32xf32>
    %181 = arith.addf %168, %180 : vector<16x32xf32>
    %cst_60 = arith.constant dense<0.000000e+00> : vector<16xf32>
    %182 = vector.multi_reduction <add>, %181, %cst_60 [1] : vector<16x32xf32> to vector<16xf32>
    %183 = vector.shape_cast %182 : vector<16xf32> to vector<16x1xf32>
    %cst_61 = arith.constant 3.200000e+01 : f32
    %184 = vector.broadcast %cst_61 : f32 to vector<16x1xf32>
    %185 = arith.divf %183, %184 : vector<16x1xf32>
    %186 = vector.broadcast %185 : vector<16x1xf32> to vector<16x32xf32>
    %187 = arith.subf %181, %186 : vector<16x32xf32>
    %188 = arith.mulf %187, %187 : vector<16x32xf32>
    %cst_62 = arith.constant dense<0.000000e+00> : vector<16xf32>
    %189 = vector.multi_reduction <add>, %188, %cst_62 [1] : vector<16x32xf32> to vector<16xf32>
    %190 = vector.shape_cast %189 : vector<16xf32> to vector<16x1xf32>
    %cst_63 = arith.constant 3.100000e+01 : f32
    %191 = vector.broadcast %cst_63 : f32 to vector<16x1xf32>
    %192 = arith.divf %190, %191 : vector<16x1xf32>
    %193 = math.sqrt %192 : vector<16x1xf32>
    %194 = vector.broadcast %5 : vector<1x32xf32> to vector<16x32xf32>
    %195 = arith.mulf %194, %187 : vector<16x32xf32>
    %cst_64 = arith.constant 9.99999997E-7 : f32
    %196 = vector.broadcast %cst_64 : f32 to vector<16x1xf32>
    %197 = arith.subf %193, %196 : vector<16x1xf32>
    %198 = vector.broadcast %197 : vector<16x1xf32> to vector<16x32xf32>
    %199 = arith.divf %195, %198 : vector<16x32xf32>
    %200 = vector.broadcast %6 : vector<1x32xf32> to vector<16x32xf32>
    %201 = arith.addf %199, %200 : vector<16x32xf32>
    %c0_65 = arith.constant 0 : index
    %c0_66 = arith.constant 0 : index
    %202 = vector.load %arg11[%c0_65, %c0_66] : memref<16x32xf32, #tpu.memory_space<vmem>>, vector<16x32xf32>
    tpu.vector_store %arg11[%c0_65, %c0_66], %201 {strides = array<i32>} : memref<16x32xf32, #tpu.memory_space<vmem>>, vector<16x32xf32>,
    return
  }
}

</mosaic_0001>

<bundles_post_ra>
// kernel: decoder_forward.3
= control target key start
LH: loop header
LB: loop body
LE: loop exit
PB: predicated region body
PF: predicated region fallthrough
CT: control target
= control target key end

     0   :  { %vm54_vm0 = vcmask 261120   ;;  %s7632_s0 = inlined_call_operand.vmem [shape: f32[16,32], index: 0, kind: input, shape index: {}]   ;;  %s7633_s1 = inlined_call_operand.vmem [shape: f32[16,32], index: 1, kind: input, shape index: {}]   ;;  %s7634_s2 = inlined_call_operand.vmem [shape: f32[32,96], index: 2, kind: input, shape index: {}]   ;;  %s7635_s3 = inlined_call_operand.vmem [shape: f32[32,32], index: 3, kind: input, shape index: {}]   ;;  %s7636_s4 = inlined_call_operand.vmem [shape: f32[1,32], index: 4, kind: input, shape index: {}]   ;;  %s7637_s5 = inlined_call_operand.vmem [shape: f32[1,32], index: 5, kind: input, shape index: {}]   ;;  %s7638_s6 = inlined_call_operand.vmem [shape: f32[1,32], index: 6, kind: input, shape index: {}]   ;;  %s7639_s7 = inlined_call_operand.vmem [shape: f32[32,64], index: 7, kind: input, shape index: {}]   ;;  %s7640_s8 = inlined_call_operand.vmem [shape: f32[1,64], index: 8, kind: input, shape index: {}]   ;;  %s7641_s9 = inlined_call_operand.vmem [shape: f32[64,32], index: 9, kind: input, shape index: {}]   ;;  %s7642_s10 = inlined_call_operand.vmem [shape: f32[1,32], index: 10, kind: input, shape index: {}]   ;;  %s7643_s11 = inlined_call_operand.hbm [shape: f32[16,32], index: 11, kind: output, shape index: {}]  }
   0x1   :  { %v46_v0 = vld [vmem:[%s7634_s2 + $0x18] sm:$0xff]  ;;  %v45_v1 = vld [vmem:[%s7634_s2 + $0x10] sm:$0xff]  ;;  %v41_v2 = vld [vmem:[%s7633_s1] sm:$0xff] }
   0x2   :  { %6147 = vmatprep.subr.mxu1 %v46_v0  ;;  %v44_v3 = vld [vmem:[%s7634_s2 + $0x8] sm:$0xff]  ;;  %6155 = vmatprep.mubr.msk.f32.mxu1 %vm54_vm0, %v41_v2 }
   0x3   :  { %6148 = vmatpush3.msra.mxu1 %v46_v0 }
   0x4   :  { %16 = vsyncpa [#allocation3], 0  ;;  %6149 = vmatprep.subr.mxu1 %v45_v1  ;;  %v43_v4 = vld [vmem:[%s7634_s2] sm:$0xff]  ;;  %v42_v5 = vld [vmem:[%s7633_s1 + $0x8] sm:$0xff]  ;;  %s6551_s29 = smov 104   ;;  %s6552_s30 = smov 120   ;;  %v151_v14 = vlaneseq }
   0x5   :  { %6150 = vmatpush3.msra.mxu1 %v45_v1  ;;  %s6553_s12 = smov 96   ;;  %s6554_s13 = smov 112   ;;  %v6555_v11 = vmov 0.0   ;;  %vm6556_vm1 = vmmov 0   ;;  %v6557_v12 = vmov 1983009808  }
   0x6   :  { %6151 = vmatprep.subr.mxu1 %v44_v3  ;;  %6168 = vmatprep.subr.mxu0 %v6555_v11  ;;  %v149_v13 = vunpack.c.l.s4 %v6557_v12  ;;  %v152_v16 = vshrl.u32 %v151_v14, 7  ;;  %v6558_v17 = vmov 1934713408   ;;  %vm578_vm2 = vcmask 64512   ;;  %s6559_s14 = smov 64   ;;  %s6560_s23 = smov 16  }
   0x7   :  { %6152 = vmatpush3.msra.mxu1 %v44_v3  ;;  %6170 = vmatprep.mubr.msk.f32.mxu0 %vm6556_vm1, %v6555_v11  ;;  %v181_v18 = vunpack.c.l.s4 %v6558_v17  ;;  %s6561_s24 = smov 8   ;;  %s6562_s25 = smov 24   ;;  %vm1372_vm3 = vcmask 130048   ;;  %vm1374_vm4 = vcmask 195584   ;;  %vm5778_vm13 = vcmask 523264  }
   0x8   :  { %6153 = vmatprep.subr.mxu1 %v43_v4  ;;  %v150_v15 = vunpack.c.0.s8 %v149_v13 }
   0x9   :  { %6154 = vmatpush3.msra.mxu1 %v43_v4  ;;  %v182_v24 = vunpack.c.0.s8 %v181_v18 }
   0xa   :  { %6156 = vmatmul.mubr.msk.f32.vlgmr.msra.gmra.mxu1 %vm54_vm0, %v42_v5  ;;  %6158 = vmatprep.subr.mxu1 %v6555_v11  ;;  %v6679_v21 = vsub.s32 %v150_v15, %v152_v16 }
   0xb   :  { %6160 = vmatprep.mubr.msk.f32.mxu1 %vm6556_vm1, %v6555_v11  ;;  %v6689_v29 = vsub.s32 %v182_v24, %v152_v16 }
  0xca   :  { %v6645_v6 = vpop.f32.mrf.mxu1 }
  0xcc   :  { %v6647_v7 = vpop.f32.mrf.mxu1 }
  0xcd   :  { %143 = vrot.lane.b32.xlu1 %v6647_v7, %s6551_s29  ;;  %137 = vrot.lane.b32.xlu0 %v6647_v7, %s6552_s30 }
  0xd1   :  { %282 = vrot.lane.b32.xlu1 %v6647_v7, %s6553_s12  ;;  %140 = vrot.lane.b32.xlu0 %v6647_v7, %s6554_s13 }
 0x13f   :  { %v6657_v8 = vpop.permute.xlu0 %137  ;;  %v6661_v9 = vpop.permute.xlu1 %143 }
 0x140   :  { %284 = vrot.lane.b32.xlu0 %v6657_v8, %s6553_s12  ;;  %v162_v22 = vcombine.low %v6657_v8, %v6661_v9  ;;  %v163_v23 = vcombine.high %v6657_v8, %v6661_v9 }
 0x142   :  { %v170_v27 = vrot.slane %v162_v22, %v6679_v21  ;;  %v177_v28 = vrot.slane %v163_v23, %v6679_v21 }
 0x143   :  { %v6663_v10 = vpop.permute.xlu0 %140  ;;  %v283_v30 = vpop.permute.xlu1 %282 }
 0x144   :  { %288 = vrot.lane.b32.xlu0 %v6661_v9, %s6553_s12  ;;  %286 = vrot.lane.b32.xlu1 %v6663_v10, %s6553_s12  ;;  %v146_v19 = vcombine.low %v6647_v7, %v6663_v10  ;;  %v147_v20 = vcombine.high %v6647_v7, %v6663_v10 }
 0x146   :  { %v154_v25 = vrot.slane %v146_v19, %v6679_v21  ;;  %v161_v26 = vrot.slane %v147_v20, %v6679_v21 }
 0x148   :  { %v178_v31 = vcombine.low %v154_v25, %v170_v27  ;;  %v179_v32 = vcombine.high %v154_v25, %v170_v27  ;;  %v194_v33 = vcombine.low %v161_v26, %v177_v28  ;;  %v195_v34 = vcombine.high %v161_v26, %v177_v28 }
 0x14a   :  { %v186_v36 = vrot.slane %v178_v31, %v6689_v29  ;;  %v193_v37 = vrot.slane %v179_v32, %v6689_v29  ;;  %v202_v38 = vrot.slane %v194_v33, %v6689_v29  ;;  %v209_v39 = vrot.slane %v195_v34, %v6689_v29 }
 0x14c   :  { %v214_v50 = vcombine.low %v186_v36, %v193_v37  ;;  %v5926_v51 = vcombine.high %v186_v36, %v193_v37  ;;  %v230_v52 = vcombine.low %v202_v38, %v209_v39  ;;  %v5927_v53 = vcombine.high %v202_v38, %v209_v39 }
 0x14e   :  { %v221_v62 = vrot.slane %v214_v50, %v6679_v21  ;;  %v229_v63 = vrot.slane %v5926_v51, %v6679_v21  ;;  %v237_v0 = vrot.slane %v230_v52, %v6679_v21  ;;  %v245_v1 = vrot.slane %v5927_v53, %v6679_v21 }
 0x150   :  { %v246_v16 = vcombine.low %v221_v62, %v229_v63  ;;  %v262_v17 = vcombine.low %v237_v0, %v245_v1  ;;  %v247_v18 = vcombine.high %v221_v62, %v229_v63  ;;  %v263_v19 = vcombine.high %v237_v0, %v245_v1 }
 0x152   :  { %v270_v31 = vrot.slane %v262_v17, %v6689_v29  ;;  %v261_v32 = vrot.slane %v247_v18, %v6689_v29  ;;  %v277_v33 = vrot.slane %v263_v19, %v6689_v29 }
 0x154   :  { %v280_v37 = vcombine.low %v261_v32, %v277_v33 }
 0x1b2   :  { %v285_v35 = vpop.permute.xlu0 %284 }
 0x1b6   :  { %v287_v40 = vpop.permute.xlu1 %286  ;;  %v289_v41 = vpop.permute.xlu0 %288 }
 0x1b7   :  { %v294_v42 = vcombine.low %v283_v30, %v287_v40  ;;  %v295_v43 = vcombine.high %v283_v30, %v287_v40  ;;  %v310_v44 = vcombine.low %v285_v35, %v289_v41  ;;  %v311_v45 = vcombine.high %v285_v35, %v289_v41 }
 0x1b8   :  { %v254_v30 = vrot.slane %v246_v16, %v6689_v29  ;;  %v281_v41 = vcombine.high %v261_v32, %v277_v33 }
 0x1b9   :  { %v302_v46 = vrot.slane %v294_v42, %v6679_v21  ;;  %v309_v47 = vrot.slane %v295_v43, %v6679_v21  ;;  %v318_v48 = vrot.slane %v310_v44, %v6679_v21  ;;  %v325_v49 = vrot.slane %v311_v45, %v6679_v21 }
 0x1ba   :  { %v278_v36 = vcombine.low %v254_v30, %v270_v31  ;;  %v279_v39 = vcombine.high %v254_v30, %v270_v31 }
 0x1bb   :  { %v326_v54 = vcombine.low %v302_v46, %v318_v48  ;;  %v327_v55 = vcombine.high %v302_v46, %v318_v48  ;;  %v342_v56 = vcombine.low %v309_v47, %v325_v49  ;;  %v343_v57 = vcombine.high %v309_v47, %v325_v49 }
 0x1bd   :  { %v334_v58 = vrot.slane %v326_v54, %v6689_v29  ;;  %v341_v59 = vrot.slane %v327_v55, %v6689_v29  ;;  %v350_v60 = vrot.slane %v342_v56, %v6689_v29  ;;  %v357_v61 = vrot.slane %v343_v57, %v6689_v29 }
 0x1bf   :  { %v362_v2 = vcombine.low %v334_v58, %v341_v59  ;;  %v5928_v3 = vcombine.high %v334_v58, %v341_v59  ;;  %v378_v4 = vcombine.low %v350_v60, %v357_v61  ;;  %v5929_v5 = vcombine.high %v350_v60, %v357_v61 }
 0x1c1   :  { %v369_v12 = vrot.slane %v362_v2, %v6679_v21  ;;  %v377_v13 = vrot.slane %v5928_v3, %v6679_v21  ;;  %v385_v14 = vrot.slane %v378_v4, %v6679_v21  ;;  %v393_v15 = vrot.slane %v5929_v5, %v6679_v21 }
 0x1c3   :  { %v394_v20 = vcombine.low %v369_v12, %v377_v13  ;;  %v410_v22 = vcombine.low %v385_v14, %v393_v15  ;;  %v395_v23 = vcombine.high %v369_v12, %v377_v13  ;;  %v411_v24 = vcombine.high %v385_v14, %v393_v15 }
 0x1c5   :  { %v402_v25 = vrot.slane %v394_v20, %v6689_v29  ;;  %v418_v26 = vrot.slane %v410_v22, %v6689_v29  ;;  %v409_v27 = vrot.slane %v395_v23, %v6689_v29  ;;  %v425_v28 = vrot.slane %v411_v24, %v6689_v29 }
 0x1c7   :  { %v426_v34 = vcombine.low %v402_v25, %v418_v26  ;;  %v428_v35 = vcombine.low %v409_v27, %v425_v28  ;;  %v427_v38 = vcombine.high %v402_v25, %v418_v26  ;;  %v429_v40 = vcombine.high %v409_v27, %v425_v28 }
 0x1c9   :  { %6159 = vmatpush3.xpose.msk.msra.mxu1 %vm578_vm2, %v426_v34  ;;  %6169 = vmatpush3.xpose.msk.msra.mxu0 %vm578_vm2, %v428_v35 }
 0x1ca   :  { %6163 = vmatprep.subr.mxu1 %v6555_v11  ;;  %6178 = vmatprep.subr.mxu0 %v6555_v11 }
 0x1cc   :  { %6161 = vmatmul.mubr.msk.f32.vlgmr.msra.gmra.mxu1 %vm578_vm2, %v278_v36  ;;  %6171 = vmatmul.mubr.msk.f32.vlgmr.msra.gmra.mxu0 %vm578_vm2, %v280_v37 }
 0x1cd   :  { %6164 = vmatpush3.xpose.msk.msra.mxu1 %vm578_vm2, %v427_v38  ;;  %6165 = vmatprep.mubr.msk.f32.mxu1 %vm6556_vm1, %v6555_v11 }
 0x1ce   :  { %6173 = vmatprep.subr.mxu1 %v6555_v11  ;;  %6180 = vmatprep.mubr.msk.f32.mxu0 %vm6556_vm1, %v6555_v11 }
 0x1d0   :  { %6166 = vmatmul.mubr.msk.f32.vlgmr.msra.gmra.mxu1 %vm578_vm2, %v279_v39 }
 0x1d1   :  { %6174 = vmatpush3.xpose.msk.msra.mxu1 %vm578_vm2, %v429_v40  ;;  %6175 = vmatprep.mubr.msk.f32.mxu1 %vm6556_vm1, %v6555_v11 }
 0x1d2   :  { %6183 = vmatprep.subr.mxu1 %v6555_v11 }
 0x1d4   :  { %6176 = vmatmul.mubr.msk.f32.vlgmr.msra.gmra.mxu1 %vm578_vm2, %v281_v41 }
 0x1d5   :  { %6185 = vmatprep.mubr.msk.f32.mxu1 %vm6556_vm1, %v6555_v11 }
 0x28c   :  { %v651_v42 = vpop.f32.mrf.mxu1  ;;  %v803_v43 = vpop.f32.mrf.mxu0 }
 0x28d   :  { %v883_v44 = vmul.f32 0.35355338, %v651_v42  ;;  %v885_v51 = vmul.f32 0.35355338, %v803_v43 }
 0x28e   :  { %v6162_v45 = vpop.f32.mrf.mxu1  ;;  %v6172_v46 = vpop.f32.mrf.mxu0 }
 0x28f   :  { %v887_v47 = vsel %vm578_vm2, %v883_v44, -inf  ;;  %v893_v56 = vsel %vm578_vm2, %v885_v51, -inf }
 0x290   :  { %888 = vmax.xlane.f32.xlu1 %v887_v47  ;;  %v727_v48 = vpop.f32.mrf.mxu1 }
 0x291   :  { %v884_v49 = vmul.f32 0.35355338, %v727_v48 }
 0x292   :  { %v6167_v50 = vpop.f32.mrf.mxu1 }
 0x293   :  { %v890_v52 = vsel %vm578_vm2, %v884_v49, -inf }
 0x294   :  { %891 = vmax.xlane.f32.xlu0 %v890_v52  ;;  %v879_v53 = vpop.f32.mrf.mxu1 }
 0x295   :  { %v886_v54 = vmul.f32 0.35355338, %v879_v53 }
 0x296   :  { %v6177_v55 = vpop.f32.mrf.mxu1 }
 0x297   :  { %v896_v57 = vsel %vm578_vm2, %v886_v54, -inf }
 0x298   :  { %894 = vmax.xlane.f32.xlu0 %v893_v56  ;;  %897 = vmax.xlane.f32.xlu1 %v896_v57 }
 0x2a9   :  { %432 = vrot.lane.b32.xlu1 %v6657_v8, %s6559_s14 }
 0x2ae   :  { %430 = vrot.lane.b32.xlu0 %v6647_v7, %s6559_s14 }
 0x319   :  { %v889_v58 = vpop.xlane.xlu1 %888 }
 0x31a   :  { %v899_v59 = vsub.f32 %v883_v44, %v889_v58 }
 0x31c   :  { %v903_v60 = vmul.f32 1.442695, %v899_v59 }
 0x31d   :  { %v892_v61 = vpop.xlane.xlu0 %891 }
 0x31e   :  { %6428 = vpow2.f32 %v903_v60  ;;  %v900_v62 = vsub.f32 %v884_v49, %v892_v61 }
 0x320   :  { %v905_v63 = vmul.f32 1.442695, %v900_v62 }
 0x321   :  { %v895_v0 = vpop.xlane.xlu0 %894  ;;  %v898_v1 = vpop.xlane.xlu1 %897 }
 0x322   :  { %6430 = vpow2.f32 %v905_v63  ;;  %v901_v2 = vsub.f32 %v885_v51, %v895_v0  ;;  %v902_v3 = vsub.f32 %v886_v54, %v898_v1 }
 0x324   :  { %v907_v4 = vmul.f32 1.442695, %v901_v2  ;;  %v909_v5 = vmul.f32 1.442695, %v902_v3 }
 0x325   :  { %v431_v18 = vpop.permute.xlu0 %430  ;;  %v433_v19 = vpop.permute.xlu1 %432 }
 0x326   :  { %6432 = vpow2.f32 %v907_v4 }
 0x327   :  { %6434 = vpow2.f32 %v909_v5 }
 0x32b   :  { %v6747_v8 = vpop.eup %6428 }
 0x32c   :  { %v911_v7 = vsel %vm578_vm2, %v6747_v8, 0.0 }
 0x32d   :  { %912 = vadd.xlane.f32.xlu0 %v911_v7 }
 0x32f   :  { %v6751_v12 = vpop.eup %6430 }
 0x330   :  { %v914_v13 = vsel %vm578_vm2, %v6751_v12, 0.0 }
 0x331   :  { %915 = vadd.xlane.f32.xlu1 %v914_v13 }
 0x333   :  { %v6755_v14 = vpop.eup %6432 }
 0x334   :  { %v6757_v15 = vpop.eup %6434  ;;  %v917_v16 = vsel %vm578_vm2, %v6755_v14, 0.0 }
 0x335   :  { %918 = vadd.xlane.f32.xlu0 %v917_v16  ;;  %v920_v17 = vsel %vm578_vm2, %v6757_v15, 0.0 }
 0x336   :  { %921 = vadd.xlane.f32.xlu1 %v920_v17 }
 0x347   :  { %434 = vrot.lane.b32.xlu1 %v6663_v10, %s6559_s14 }
 0x34b   :  { %1450 = vrot.lane.b32.xlu1 %v6645_v6, %s6552_s30  ;;  %436 = vrot.lane.b32.xlu0 %v6661_v9, %s6559_s14 }
 0x34f   :  { %1456 = vrot.lane.b32.xlu1 %v6645_v6, %s6551_s29  ;;  %1453 = vrot.lane.b32.xlu0 %v6645_v6, %s6554_s13 }
 0x353   :  { %1595 = vrot.lane.b32.xlu0 %v6645_v6, %s6553_s12 }
 0x3b6   :  { %v913_v20 = vpop.xlane.xlu0 %912 }
 0x3b7   :  { %6436 = vrcp.f32 %v913_v20 }
 0x3ba   :  { %v916_v22 = vpop.xlane.xlu1 %915 }
 0x3bb   :  { %6438 = vrcp.f32 %v916_v22 }
 0x3be   :  { %v919_v10 = vpop.xlane.xlu0 %918 }
 0x3bf   :  { %v922_v23 = vpop.xlane.xlu1 %921  ;;  %6440 = vrcp.f32 %v919_v10 }
 0x3c0   :  { %6442 = vrcp.f32 %v922_v23 }
 0x3c2   :  { %v437_v24 = vpop.permute.xlu0 %436 }
 0x3c3   :  { %v458_v25 = vcombine.low %v433_v19, %v437_v24  ;;  %v459_v26 = vcombine.high %v433_v19, %v437_v24  ;;  %v435_v27 = vpop.permute.xlu1 %434 }
 0x3c4   :  { %v442_v9 = vcombine.low %v431_v18, %v435_v27  ;;  %v443_v28 = vcombine.high %v431_v18, %v435_v27  ;;  %v6437_v1 = vpop.eup %6436 }
 0x3c5   :  { %v466_v30 = vrot.slane %v458_v25, %v6679_v21  ;;  %v473_v31 = vrot.slane %v459_v26, %v6679_v21  ;;  %v927_v26 = vmul.f32 %v6437_v1, %v6747_v8 }
 0x3c6   :  { %v450_v32 = vrot.slane %v442_v9, %v6679_v21  ;;  %v457_v33 = vrot.slane %v443_v28, %v6679_v21  ;;  %v6779_v34 = vpop.permute.xlu0 %1453 }
 0x3c7   :  { %v6781_v35 = vpop.permute.xlu1 %1450  ;;  %1599 = vrot.lane.b32.xlu0 %v6779_v34, %s6553_s12  ;;  %v1459_v44 = vcombine.low %v6645_v6, %v6779_v34  ;;  %v1460_v45 = vcombine.high %v6645_v6, %v6779_v34 }
 0x3c8   :  { %v474_v36 = vcombine.low %v450_v32, %v466_v30  ;;  %v475_v37 = vcombine.high %v450_v32, %v466_v30  ;;  %v490_v38 = vcombine.low %v457_v33, %v473_v31  ;;  %v491_v39 = vcombine.high %v457_v33, %v473_v31  ;;  %1597 = vrot.lane.b32.xlu1 %v6781_v35, %s6553_s12  ;;  %v6439_v18 = vpop.eup %6438 }
 0x3c9   :  { %v1467_v57 = vrot.slane %v1459_v44, %v6679_v21  ;;  %v1474_v58 = vrot.slane %v1460_v45, %v6679_v21  ;;  %v928_v32 = vmul.f32 %v6439_v18, %v6751_v12 }
 0x3ca   :  { %v482_v40 = vrot.slane %v474_v36, %v6689_v29  ;;  %v489_v41 = vrot.slane %v475_v37, %v6689_v29  ;;  %v498_v42 = vrot.slane %v490_v38, %v6689_v29  ;;  %v505_v43 = vrot.slane %v491_v39, %v6689_v29  ;;  %v1596_v44 = vpop.permute.xlu0 %1595 }
 0x3cb   :  { %v6795_v46 = vpop.permute.xlu1 %1456 }
 0x3cc   :  { %v510_v47 = vcombine.low %v482_v40, %v489_v41  ;;  %v5930_v48 = vcombine.high %v482_v40, %v489_v41  ;;  %v526_v49 = vcombine.low %v498_v42, %v505_v43  ;;  %v5931_v50 = vcombine.high %v498_v42, %v505_v43  ;;  %1601 = vrot.lane.b32.xlu1 %v6795_v46, %s6553_s12  ;;  %v6441_v23 = vpop.eup %6440 }
 0x3cd   :  { %v1475_v51 = vcombine.low %v6781_v35, %v6795_v46  ;;  %v1476_v52 = vcombine.high %v6781_v35, %v6795_v46  ;;  %v6443_v31 = vpop.eup %6442  ;;  %v929_v39 = vmul.f32 %v6441_v23, %v6755_v14 }
 0x3ce   :  { %v517_v53 = vrot.slane %v510_v47, %v6679_v21  ;;  %v525_v54 = vrot.slane %v5930_v48, %v6679_v21  ;;  %v533_v55 = vrot.slane %v526_v49, %v6679_v21  ;;  %v541_v56 = vrot.slane %v5931_v50, %v6679_v21 }
 0x3cf   :  { %v1483_v59 = vrot.slane %v1475_v51, %v6679_v21  ;;  %v1490_v60 = vrot.slane %v1476_v52, %v6679_v21  ;;  %v930_v41 = vmul.f32 %v6443_v31, %v6757_v15 }
 0x3d0   :  { %v542_v61 = vcombine.low %v517_v53, %v525_v54  ;;  %v558_v62 = vcombine.low %v533_v55, %v541_v56  ;;  %v543_v63 = vcombine.high %v517_v53, %v525_v54  ;;  %v559_v0 = vcombine.high %v533_v55, %v541_v56 }
 0x3d1   :  { %v1491_v2 = vcombine.low %v1467_v57, %v1483_v59  ;;  %v1492_v3 = vcombine.high %v1467_v57, %v1483_v59  ;;  %v1507_v4 = vcombine.low %v1474_v58, %v1490_v60  ;;  %v1508_v5 = vcombine.high %v1474_v58, %v1490_v60 }
 0x3d2   :  { %v550_v7 = vrot.slane %v542_v61, %v6689_v29  ;;  %v566_v13 = vrot.slane %v558_v62, %v6689_v29  ;;  %v557_v16 = vrot.slane %v543_v63, %v6689_v29  ;;  %v573_v17 = vrot.slane %v559_v0, %v6689_v29 }
 0x3d3   :  { %v1499_v19 = vrot.slane %v1491_v2, %v6689_v29  ;;  %v1506_v20 = vrot.slane %v1492_v3, %v6689_v29  ;;  %v1515_v22 = vrot.slane %v1507_v4, %v6689_v29  ;;  %v1522_v10 = vrot.slane %v1508_v5, %v6689_v29 }
 0x3d4   :  { %v574_v24 = vcombine.low %v550_v7, %v566_v13  ;;  %v575_v25 = vcombine.high %v550_v7, %v566_v13  ;;  %v576_v33 = vcombine.low %v557_v16, %v573_v17  ;;  %v577_v12 = vcombine.high %v557_v16, %v573_v17 }
 0x3d5   :  { %v1527_v27 = vcombine.low %v1499_v19, %v1506_v20  ;;  %v5947_v9 = vcombine.high %v1499_v19, %v1506_v20  ;;  %v1543_v28 = vcombine.low %v1515_v22, %v1522_v10  ;;  %v5948_v30 = vcombine.high %v1515_v22, %v1522_v10 }
 0x3d6   :  { %6179 = vmatpush3.msra.mxu0 %v574_v24  ;;  %6184 = vmatpush3.msra.mxu1 %v575_v25 }
 0x3d7   :  { %v6822_v36 = vrot.slane %v1527_v27, %v6679_v21  ;;  %v6825_v37 = vrot.slane %v5947_v9, %v6679_v21  ;;  %v6828_v38 = vrot.slane %v1543_v28, %v6679_v21  ;;  %v6831_v8 = vrot.slane %v5948_v30, %v6679_v21  ;;  %6181 = vmatmul.mubr.msk.f32.vlgmr.msra.gmra.mxu0 %vm578_vm2, %v927_v26 }
 0x3d8   :  { %6186 = vmatmul.mubr.msk.f32.vlgmr.msra.gmra.mxu1 %vm578_vm2, %v928_v32  ;;  %6188 = vmatprep.subr.mxu0 %v6555_v11 }
 0x3d9   :  { %6193 = vmatprep.subr.mxu1 %v6555_v11  ;;  %6189 = vmatpush3.msra.mxu0 %v576_v33  ;;  %v1560_v40 = vcombine.high %v6822_v36, %v6825_v37  ;;  %v1576_v42 = vcombine.high %v6828_v38, %v6831_v8  ;;  %v1559_v17 = vcombine.low %v6822_v36, %v6825_v37 }
 0x3da   :  { %6194 = vmatpush3.msra.mxu1 %v577_v12  ;;  %6190 = vmatprep.mubr.msk.f32.mxu0 %vm6556_vm1, %v6555_v11  ;;  %v1575_v18 = vcombine.low %v6828_v38, %v6831_v8 }
 0x3db   :  { %6195 = vmatprep.mubr.msk.f32.mxu1 %vm6556_vm1, %v6555_v11  ;;  %6191 = vmatmul.mubr.msk.f32.vlgmr.msra.gmra.mxu0 %vm578_vm2, %v929_v39  ;;  %v6849_v43 = vrot.slane %v1560_v40, %v6689_v29  ;;  %v6854_v14 = vrot.slane %v1576_v42, %v6689_v29  ;;  %v1567_v27 = vrot.slane %v1559_v17, %v6689_v29 }
 0x3dc   :  { %6196 = vmatmul.mubr.msk.f32.vlgmr.msra.gmra.mxu1 %vm578_vm2, %v930_v41  ;;  %6209 = vmatprep.subr.mxu1 %v6555_v11  ;;  %v1583_v9 = vrot.slane %v1575_v18, %v6689_v29 }
 0x3dd   :  { %6211 = vmatprep.mubr.msk.f32.mxu1 %vm6556_vm1, %v6555_v11  ;;  %6198 = vmatprep.subr.mxu0 %v6555_v11  ;;  %v1593_v15 = vcombine.low %v6849_v43, %v6854_v14  ;;  %v1594_v37 = vcombine.high %v6849_v43, %v6854_v14 }
 0x3de   :  { %6206 = vmatprep.mubr.msk.f32.mxu0 %vm6556_vm1, %v6555_v11  ;;  %v1591_v31 = vcombine.low %v1567_v27, %v1583_v9  ;;  %v1592_v33 = vcombine.high %v1567_v27, %v1583_v9 }
 0x439   :  { %v1600_v45 = vpop.permute.xlu0 %1599 }
 0x43a   :  { %v1598_v47 = vpop.permute.xlu1 %1597  ;;  %v1607_v48 = vcombine.low %v1596_v44, %v1600_v45  ;;  %v1608_v49 = vcombine.high %v1596_v44, %v1600_v45 }
 0x43c   :  { %v1615_v53 = vrot.slane %v1607_v48, %v6679_v21  ;;  %v1622_v54 = vrot.slane %v1608_v49, %v6679_v21  ;;  %v6913_v49 = vld [vmem:[%s7635_s3 + $0x18] sm:$0xff] }
 0x43d   :  { %6199 = vmatpush3.msra.mxu0 %v6913_v49 }
 0x43e   :  { %v1602_v50 = vpop.permute.xlu1 %1601  ;;  %6200 = vmatprep.subr.mxu0 %v6555_v11 }
 0x43f   :  { %v1623_v51 = vcombine.low %v1598_v47, %v1602_v50  ;;  %v1624_v52 = vcombine.high %v1598_v47, %v1602_v50 }
 0x441   :  { %v1631_v55 = vrot.slane %v1623_v51, %v6679_v21  ;;  %v1638_v56 = vrot.slane %v1624_v52, %v6679_v21 }
 0x443   :  { %v1639_v57 = vcombine.low %v1615_v53, %v1631_v55  ;;  %v1640_v58 = vcombine.high %v1615_v53, %v1631_v55  ;;  %v1655_v59 = vcombine.low %v1622_v54, %v1638_v56  ;;  %v1656_v60 = vcombine.high %v1622_v54, %v1638_v56  ;;  %v6921_v53 = vld [vmem:[%s7635_s3 + $0x10] sm:$0xff] }
 0x444   :  { %6201 = vmatpush3.msra.mxu0 %v6921_v53 }
 0x445   :  { %v1647_v61 = vrot.slane %v1639_v57, %v6689_v29  ;;  %v1654_v62 = vrot.slane %v1640_v58, %v6689_v29  ;;  %v1663_v63 = vrot.slane %v1655_v59, %v6689_v29  ;;  %v1670_v0 = vrot.slane %v1656_v60, %v6689_v29  ;;  %6202 = vmatprep.subr.mxu0 %v6555_v11  ;;  %v6931_v60 = vld [vmem:[%s7635_s3 + $0x8] sm:$0xff] }
 0x446   :  { %6203 = vmatpush3.msra.mxu0 %v6931_v60 }
 0x447   :  { %v1675_v1 = vcombine.low %v1647_v61, %v1654_v62  ;;  %v5949_v2 = vcombine.high %v1647_v61, %v1654_v62  ;;  %v1691_v3 = vcombine.low %v1663_v63, %v1670_v0  ;;  %v5950_v4 = vcombine.high %v1663_v63, %v1670_v0  ;;  %v6936_v61 = vld [vmem:[%s7635_s3] sm:$0xff]  ;;  %6204 = vmatprep.subr.mxu0 %v6555_v11 }
 0x448   :  { %6205 = vmatpush3.msra.mxu0 %v6936_v61 }
 0x449   :  { %v1682_v5 = vrot.slane %v1675_v1, %v6679_v21  ;;  %v1690_v7 = vrot.slane %v5949_v2, %v6679_v21  ;;  %v1698_v13 = vrot.slane %v1691_v3, %v6679_v21  ;;  %v1706_v16 = vrot.slane %v5950_v4, %v6679_v21  ;;  %6219 = vmatprep.subr.mxu0 %v6555_v11 }
 0x44b   :  { %v1707_v19 = vcombine.low %v1682_v5, %v1690_v7  ;;  %v1708_v20 = vcombine.high %v1682_v5, %v1690_v7  ;;  %v1723_v22 = vcombine.low %v1698_v13, %v1706_v16  ;;  %v1724_v10 = vcombine.high %v1698_v13, %v1706_v16 }
 0x44d   :  { %v1715_v23 = vrot.slane %v1707_v19, %v6689_v29  ;;  %v1731_v24 = vrot.slane %v1723_v22, %v6689_v29  ;;  %v6882_v25 = vrot.slane %v1708_v20, %v6689_v29  ;;  %v6885_v26 = vrot.slane %v1724_v10, %v6689_v29 }
 0x44f   :  { %v1739_v28 = vcombine.low %v1715_v23, %v1731_v24  ;;  %v1741_v30 = vcombine.low %v6882_v25, %v6885_v26  ;;  %v1740_v32 = vcombine.high %v1715_v23, %v1731_v24  ;;  %v1742_v36 = vcombine.high %v6882_v25, %v6885_v26 }
 0x451   :  { %6210 = vmatpush3.xpose.msk.msra.mxu1 %vm578_vm2, %v1739_v28 }
 0x452   :  { %6214 = vmatprep.subr.mxu1 %v6555_v11 }
 0x454   :  { %6212 = vmatmul.mubr.msk.f32.vlgmr.msra.gmra.mxu1 %vm578_vm2, %v1591_v31 }
 0x455   :  { %6215 = vmatpush3.xpose.msk.msra.mxu1 %vm578_vm2, %v1740_v32  ;;  %6216 = vmatprep.mubr.msk.f32.mxu1 %vm6556_vm1, %v6555_v11 }
 0x456   :  { %6224 = vmatprep.subr.mxu1 %v6555_v11 }
 0x458   :  { %6217 = vmatmul.mubr.msk.f32.vlgmr.msra.gmra.mxu1 %vm578_vm2, %v1592_v33 }
 0x459   :  { %6225 = vmatpush3.xpose.msk.msra.mxu1 %vm578_vm2, %v1742_v36  ;;  %6226 = vmatprep.mubr.msk.f32.mxu1 %vm6556_vm1, %v6555_v11 }
 0x45a   :  { %6234 = vmatprep.subr.mxu1 %v6555_v11 }
 0x45c   :  { %6227 = vmatmul.mubr.msk.f32.vlgmr.msra.gmra.mxu1 %vm578_vm2, %v1594_v37 }
 0x45d   :  { %6236 = vmatprep.mubr.msk.f32.mxu1 %vm6556_vm1, %v6555_v11 }
 0x497   :  { %v1000_v38 = vpop.f32.mrf.mxu0 }
 0x498   :  { %v1073_v8 = vpop.f32.mrf.mxu1 }
 0x499   :  { %v6182_v12 = vpop.f32.mrf.mxu0 }
 0x49a   :  { %v6187_v39 = vpop.f32.mrf.mxu1 }
 0x49b   :  { %v1146_v40 = vpop.f32.mrf.mxu0 }
 0x49c   :  { %v1223_v41 = vcombine.low %v1000_v38, %v1146_v40  ;;  %v1224_v42 = vcombine.high %v1000_v38, %v1146_v40  ;;  %v1219_v44 = vpop.f32.mrf.mxu1 }
 0x49d   :  { %v1239_v45 = vcombine.low %v1073_v8, %v1219_v44  ;;  %v1240_v47 = vcombine.high %v1073_v8, %v1219_v44  ;;  %v6192_v48 = vpop.f32.mrf.mxu0 }
 0x49e   :  { %v1231_v50 = vrot.slane %v1223_v41, %v6679_v21  ;;  %v1238_v51 = vrot.slane %v1224_v42, %v6679_v21  ;;  %v6197_v52 = vpop.f32.mrf.mxu1 }
 0x49f   :  { %v1247_v54 = vrot.slane %v1239_v45, %v6679_v21  ;;  %v1254_v55 = vrot.slane %v1240_v47, %v6679_v21 }
 0x4a1   :  { %v1255_v56 = vcombine.low %v1231_v50, %v1247_v54  ;;  %v1256_v57 = vcombine.high %v1231_v50, %v1247_v54  ;;  %v1271_v58 = vcombine.low %v1238_v51, %v1254_v55  ;;  %v1272_v59 = vcombine.high %v1238_v51, %v1254_v55 }
 0x4a3   :  { %v1263_v62 = vrot.slane %v1255_v56, %v6689_v29  ;;  %v1270_v63 = vrot.slane %v1256_v57, %v6689_v29  ;;  %v1279_v0 = vrot.slane %v1271_v58, %v6689_v29  ;;  %v1286_v1 = vrot.slane %v1272_v59, %v6689_v29 }
 0x4a5   :  { %v1291_v2 = vcombine.low %v1263_v62, %v1270_v63  ;;  %v5944_v3 = vcombine.high %v1263_v62, %v1270_v63  ;;  %v1307_v4 = vcombine.low %v1279_v0, %v1286_v1  ;;  %v5945_v5 = vcombine.high %v1279_v0, %v1286_v1 }
 0x4a7   :  { %v1298_v7 = vrot.slane %v1291_v2, %v6679_v21  ;;  %v1306_v13 = vrot.slane %v5944_v3, %v6679_v21  ;;  %v1314_v16 = vrot.slane %v1307_v4, %v6679_v21  ;;  %v1322_v17 = vrot.slane %v5945_v5, %v6679_v21 }
 0x4a9   :  { %v1324_v18 = vcombine.high %v1298_v7, %v1306_v13  ;;  %v1340_v19 = vcombine.high %v1314_v16, %v1322_v17  ;;  %v1323_v20 = vcombine.low %v1298_v7, %v1306_v13  ;;  %v1339_v22 = vcombine.low %v1314_v16, %v1322_v17 }
 0x4ab   :  { %v1338_v10 = vrot.slane %v1324_v18, %v6689_v29  ;;  %v1354_v23 = vrot.slane %v1340_v19, %v6689_v29  ;;  %v1331_v24 = vrot.slane %v1323_v20, %v6689_v29  ;;  %v1347_v27 = vrot.slane %v1339_v22, %v6689_v29 }
 0x4ad   :  { %v1357_v9 = vcombine.low %v1338_v10, %v1354_v23  ;;  %v1356_v28 = vcombine.high %v1331_v24, %v1347_v27  ;;  %v1355_v31 = vcombine.low %v1331_v24, %v1347_v27  ;;  %v1358_v32 = vcombine.high %v1338_v10, %v1354_v23 }
 0x4af   :  { %1364 = vrot.lane.b32.xlu1 %v1357_v9, %s6560_s23  ;;  %1360 = vrot.lane.b32.xlu0 %v1356_v28, %s6561_s24 }
 0x4b3   :  { %1368 = vrot.lane.b32.xlu0 %v1358_v32, %s6562_s25 }
 0x514   :  { %v1963_v33 = vpop.f32.mrf.mxu1 }
 0x515   :  { %v2195_v36 = vmul.f32 0.35355338, %v1963_v33 }
 0x516   :  { %v6213_v37 = vpop.f32.mrf.mxu1 }
 0x517   :  { %v2199_v38 = vsel %vm578_vm2, %v2195_v36, -inf }
 0x518   :  { %2200 = vmax.xlane.f32.xlu1 %v2199_v38  ;;  %v2039_v8 = vpop.f32.mrf.mxu1 }
 0x519   :  { %v2196_v12 = vmul.f32 0.35355338, %v2039_v8 }
 0x51a   :  { %v6218_v39 = vpop.f32.mrf.mxu1 }
 0x51b   :  { %v2202_v40 = vsel %vm578_vm2, %v2196_v12, -inf }
 0x51c   :  { %2203 = vmax.xlane.f32.xlu0 %v2202_v40  ;;  %v2191_v41 = vpop.f32.mrf.mxu1 }
 0x51d   :  { %v2198_v42 = vmul.f32 0.35355338, %v2191_v41 }
 0x51e   :  { %v6228_v44 = vpop.f32.mrf.mxu1 }
 0x51f   :  { %v2208_v45 = vsel %vm578_vm2, %v2198_v42, -inf }
 0x520   :  { %2209 = vmax.xlane.f32.xlu1 %v2208_v45 }
 0x521   :  { %v1361_v47 = vpop.permute.xlu0 %1360  ;;  %v1365_v48 = vpop.permute.xlu1 %1364 }
 0x522   :  { %v1371_v50 = vsel %vm578_vm2, %v1355_v31, %v1361_v47 }
 0x523   :  { %v1373_v52 = vsel %vm1372_vm3, %v1371_v50, %v1365_v48 }
 0x525   :  { %v1369_v51 = vpop.permute.xlu0 %1368 }
 0x526   :  { %v1375_v54 = vsel %vm1374_vm4, %v1373_v52, %v1369_v51 }
 0x527   :  { %6207 = vmatmul.mubr.msk.f32.vlgmr.msra.gmra.mxu0 %vm54_vm0, %v1375_v54 }
 0x528   :  { %6220 = vmatpush3.xpose.msk.msra.mxu0 %vm578_vm2, %v1741_v30  ;;  %6221 = vmatprep.mubr.msk.f32.mxu0 %vm6556_vm1, %v6555_v11 }
 0x529   :  { %6229 = vmatprep.subr.mxu0 %v6555_v11 }
 0x52b   :  { %6222 = vmatmul.mubr.msk.f32.vlgmr.msra.gmra.mxu0 %vm578_vm2, %v1593_v15 }
 0x52c   :  { %6231 = vmatprep.mubr.msk.f32.mxu0 %vm6556_vm1, %v6555_v11 }
 0x5a1   :  { %v2201_v55 = vpop.xlane.xlu1 %2200 }
 0x5a2   :  { %v2211_v15 = vsub.f32 %v2195_v36, %v2201_v55 }
 0x5a4   :  { %v2215_v63 = vmul.f32 1.442695, %v2211_v15 }
 0x5a5   :  { %v2204_v56 = vpop.xlane.xlu0 %2203 }
 0x5a6   :  { %v2212_v57 = vsub.f32 %v2196_v12, %v2204_v56 }
 0x5a8   :  { %v2217_v58 = vmul.f32 1.442695, %v2212_v57 }
 0x5a9   :  { %v2210_v25 = vpop.xlane.xlu1 %2209 }
 0x5aa   :  { %6444 = vpow2.f32 %v2217_v58  ;;  %v2214_v26 = vsub.f32 %v2198_v42, %v2210_v25 }
 0x5ac   :  { %v2221_v30 = vmul.f32 1.442695, %v2214_v26 }
 0x5ae   :  { %6446 = vpow2.f32 %v2221_v30 }
 0x5af   :  { %6448 = vpow2.f32 %v2215_v63 }
 0x5b7   :  { %v6977_v59 = vpop.eup %6444 }
 0x5b8   :  { %v2226_v62 = vsel %vm578_vm2, %v6977_v59, 0.0 }
 0x5b9   :  { %2227 = vadd.xlane.f32.xlu1 %v2226_v62 }
 0x5bb   :  { %v6981_v43 = vpop.eup %6446 }
 0x5bc   :  { %v2232_v14 = vsel %vm578_vm2, %v6981_v43, 0.0  ;;  %v6449_v7 = vpop.eup %6448 }
 0x5bd   :  { %2233 = vadd.xlane.f32.xlu1 %v2232_v14  ;;  %v2223_v13 = vsel %vm578_vm2, %v6449_v7, 0.0 }
 0x5ce   :  { %1745 = vrot.lane.b32.xlu1 %v6781_v35, %s6559_s14 }
 0x5d2   :  { %1747 = vrot.lane.b32.xlu1 %v6779_v34, %s6559_s14 }
 0x5e7   :  { %v6989_v0 = vpop.f32.mrf.mxu0 }
 0x5e9   :  { %v6208_v1 = vpop.f32.mrf.mxu0 }
 0x5eb   :  { %v2115_v2 = vpop.f32.mrf.mxu0 }
 0x5ec   :  { %v2197_v3 = vmul.f32 0.35355338, %v2115_v2 }
 0x5ed   :  { %v6223_v4 = vpop.f32.mrf.mxu0 }
 0x5ee   :  { %v2205_v5 = vsel %vm578_vm2, %v2197_v3, -inf }
 0x5ef   :  { %2206 = vmax.xlane.f32.xlu0 %v2205_v5 }
 0x5f3   :  { %2224 = vadd.xlane.f32.xlu0 %v2223_v13 }
 0x609   :  { %1743 = vrot.lane.b32.xlu0 %v6645_v6, %s6559_s14 }
 0x642   :  { %v2228_v19 = vpop.xlane.xlu1 %2227 }
 0x646   :  { %v2234_v20 = vpop.xlane.xlu1 %2233 }
 0x64a   :  { %v1746_v10 = vpop.permute.xlu1 %1745 }
 0x64e   :  { %v1748_v6 = vpop.permute.xlu1 %1747 }
 0x678   :  { %v2207_v34 = vpop.xlane.xlu0 %2206 }
 0x679   :  { %v2213_v35 = vsub.f32 %v2197_v3, %v2207_v34 }
 0x67b   :  { %v2219_v16 = vmul.f32 1.442695, %v2213_v35 }
 0x67c   :  { %v2225_v22 = vpop.xlane.xlu0 %2224 }
 0x67d   :  { %6450 = vpow2.f32 %v2219_v16 }
 0x67e   :  { %6452 = vrcp.f32 %v2228_v19 }
 0x67f   :  { %6454 = vrcp.f32 %v2225_v22 }
 0x680   :  { %v1744_v23 = vpop.permute.xlu0 %1743  ;;  %6456 = vrcp.f32 %v2234_v20 }
 0x681   :  { %v1755_v27 = vcombine.low %v1744_v23, %v1748_v6  ;;  %v1756_v9 = vcombine.high %v1744_v23, %v1748_v6 }
 0x683   :  { %v1763_v33 = vrot.slane %v1755_v27, %v6679_v21  ;;  %v1770_v36 = vrot.slane %v1756_v9, %v6679_v21 }
 0x68a   :  { %v6995_v17 = vpop.eup %6450 }
 0x68b   :  { %v2229_v18 = vsel %vm578_vm2, %v6995_v17, 0.0  ;;  %v6453_v26 = vpop.eup %6452 }
 0x68c   :  { %2230 = vadd.xlane.f32.xlu0 %v2229_v18  ;;  %v6455_v30 = vpop.eup %6454  ;;  %v2240_v5 = vmul.f32 %v6453_v26, %v6977_v59  ;;  %v7037_v59 = vld [vmem:[%s7634_s2 + $0x18] sm:$0xff] }
 0x68d   :  { %v6457_v1 = vpop.eup %6456  ;;  %v2239_v4 = vmul.f32 %v6455_v30, %v6449_v7 }
 0x68e   :  { %v2242_v7 = vmul.f32 %v6457_v1, %v6981_v43  ;;  %v7046_v43 = vld [vmem:[%s7634_s2 + $0x10] sm:$0xff]  ;;  %v6520_v1 = vld [vmem:[%s7633_s1] sm:$0xff] }
 0x6a2   :  { %1749 = vrot.lane.b32.xlu0 %v6795_v46, %s6559_s14 }
 0x715   :  { %v2231_v24 = vpop.xlane.xlu0 %2230 }
 0x716   :  { %6458 = vrcp.f32 %v2231_v24 }
 0x719   :  { %v1750_v28 = vpop.permute.xlu0 %1749 }
 0x71a   :  { %v1771_v31 = vcombine.low %v1746_v10, %v1750_v28  ;;  %v1772_v32 = vcombine.high %v1746_v10, %v1750_v28 }
 0x71c   :  { %v1779_v46 = vrot.slane %v1771_v31, %v6679_v21  ;;  %v1786_v37 = vrot.slane %v1772_v32, %v6679_v21 }
 0x71e   :  { %v1787_v38 = vcombine.low %v1763_v33, %v1779_v46  ;;  %v1788_v8 = vcombine.high %v1763_v33, %v1779_v46  ;;  %v1803_v12 = vcombine.low %v1770_v36, %v1786_v37  ;;  %v1804_v39 = vcombine.high %v1770_v36, %v1786_v37 }
 0x720   :  { %v1795_v40 = vrot.slane %v1787_v38, %v6689_v29  ;;  %v1802_v41 = vrot.slane %v1788_v8, %v6689_v29  ;;  %v1811_v42 = vrot.slane %v1803_v12, %v6689_v29  ;;  %v1818_v44 = vrot.slane %v1804_v39, %v6689_v29 }
 0x722   :  { %v1823_v45 = vcombine.low %v1795_v40, %v1802_v41  ;;  %v5951_v47 = vcombine.high %v1795_v40, %v1802_v41  ;;  %v1839_v48 = vcombine.low %v1811_v42, %v1818_v44  ;;  %v5952_v50 = vcombine.high %v1811_v42, %v1818_v44 }
 0x723   :  { %v6459_v13 = vpop.eup %6458 }
 0x724   :  { %v1830_v51 = vrot.slane %v1823_v45, %v6679_v21  ;;  %v1838_v52 = vrot.slane %v5951_v47, %v6679_v21  ;;  %v1846_v54 = vrot.slane %v1839_v48, %v6679_v21  ;;  %v1854_v55 = vrot.slane %v5952_v50, %v6679_v21 }
 0x725   :  { %v2241_v16 = vmul.f32 %v6459_v13, %v6995_v17 }
 0x726   :  { %v1855_v56 = vcombine.low %v1830_v51, %v1838_v52  ;;  %v1871_v57 = vcombine.low %v1846_v54, %v1854_v55  ;;  %v1856_v58 = vcombine.high %v1830_v51, %v1838_v52  ;;  %v1872_v25 = vcombine.high %v1846_v54, %v1854_v55 }
 0x728   :  { %v1863_v62 = vrot.slane %v1855_v56, %v6689_v29  ;;  %v1879_v14 = vrot.slane %v1871_v57, %v6689_v29  ;;  %v1870_v15 = vrot.slane %v1856_v58, %v6689_v29  ;;  %v1886_v63 = vrot.slane %v1872_v25, %v6689_v29 }
 0x72a   :  { %v1887_v2 = vcombine.low %v1863_v62, %v1879_v14  ;;  %v1888_v3 = vcombine.high %v1863_v62, %v1879_v14  ;;  %v1889_v34 = vcombine.low %v1870_v15, %v1886_v63  ;;  %v1890_v35 = vcombine.high %v1870_v15, %v1886_v63  ;;  %v5968_v15 = vld [vmem:[%s7636_s4] ss:$0 sm:$0xff] }
 0x72b   :  { %v2765_v63 = vadd.f32 %v5968_v15, %v6989_v0 }
 0x72c   :  { %6230 = vmatpush3.msra.mxu0 %v1887_v2  ;;  %6235 = vmatpush3.msra.mxu1 %v1888_v3 }
 0x72d   :  { %6232 = vmatmul.mubr.msk.f32.vlgmr.msra.gmra.mxu0 %vm578_vm2, %v2239_v4  ;;  %6237 = vmatmul.mubr.msk.f32.vlgmr.msra.gmra.mxu1 %vm578_vm2, %v2240_v5  ;;  %v2767_v2 = vadd.f32 %v6520_v1, %v2765_v63 }
 0x72e   :  { %6239 = vmatprep.subr.mxu0 %v6555_v11  ;;  %6244 = vmatprep.subr.mxu1 %v6555_v11 }
 0x72f   :  { %6240 = vmatpush3.msra.mxu0 %v1889_v34  ;;  %6245 = vmatpush3.msra.mxu1 %v1890_v35  ;;  %v2769_v3 = vsel %vm54_vm0, %v2767_v2, 0.0 }
 0x730   :  { %6241 = vmatprep.mubr.msk.f32.mxu0 %vm6556_vm1, %v6555_v11  ;;  %6246 = vmatprep.mubr.msk.f32.mxu1 %vm6556_vm1, %v6555_v11 }
 0x731   :  { %6242 = vmatmul.mubr.msk.f32.vlgmr.msra.gmra.mxu0 %vm578_vm2, %v2241_v16  ;;  %6247 = vmatmul.mubr.msk.f32.vlgmr.msra.gmra.mxu1 %vm578_vm2, %v2242_v7 }
 0x732   :  { %6249 = vmatprep.subr.mxu0 %v6555_v11  ;;  %6257 = vmatprep.mubr.msk.f32.mxu0 %vm6556_vm1, %v6555_v11 }
 0x733   :  { %6250 = vmatpush3.msra.mxu0 %v6913_v49  ;;  %6260 = vmatprep.subr.mxu1 %v7037_v59  ;;  %v7055_v49 = vld [vmem:[%s7634_s2 + $0x8] sm:$0xff] }
 0x734   :  { %6251 = vmatprep.subr.mxu0 %v6555_v11  ;;  %6261 = vmatpush3.msra.mxu1 %v7037_v59 }
 0x735   :  { %6252 = vmatpush3.msra.mxu0 %v6921_v53  ;;  %6262 = vmatprep.subr.mxu1 %v7046_v43  ;;  %v7064_v53 = vld [vmem:[%s7634_s2] sm:$0xff] }
 0x736   :  { %6253 = vmatprep.subr.mxu0 %v6555_v11  ;;  %6263 = vmatpush3.msra.mxu1 %v7046_v43 }
 0x737   :  { %6254 = vmatpush3.msra.mxu0 %v6931_v60  ;;  %6264 = vmatprep.subr.mxu1 %v7055_v49 }
 0x738   :  { %6255 = vmatprep.subr.mxu0 %v6555_v11  ;;  %6265 = vmatpush3.msra.mxu1 %v7055_v49 }
 0x739   :  { %6256 = vmatpush3.msra.mxu0 %v6936_v61  ;;  %6266 = vmatprep.subr.mxu1 %v7064_v53 }
 0x73a   :  { %6267 = vmatpush3.msra.mxu1 %v7064_v53 }
 0x73b   :  { %6282 = vmatprep.subr.mxu1 %v6555_v11 }
 0x7ed   :  { %v2312_v60 = vpop.f32.mrf.mxu0  ;;  %v2385_v17 = vpop.f32.mrf.mxu1 }
 0x7ef   :  { %v6233_v18 = vpop.f32.mrf.mxu0  ;;  %v6238_v19 = vpop.f32.mrf.mxu1 }
 0x7f1   :  { %v2458_v20 = vpop.f32.mrf.mxu0  ;;  %v2531_v22 = vpop.f32.mrf.mxu1 }
 0x7f2   :  { %v2535_v10 = vcombine.low %v2312_v60, %v2458_v20  ;;  %v2536_v23 = vcombine.high %v2312_v60, %v2458_v20  ;;  %v2551_v61 = vcombine.low %v2385_v17, %v2531_v22  ;;  %v2552_v24 = vcombine.high %v2385_v17, %v2531_v22 }
 0x7f3   :  { %v6243_v6 = vpop.f32.mrf.mxu0  ;;  %v6248_v27 = vpop.f32.mrf.mxu1 }
 0x7f4   :  { %v2543_v9 = vrot.slane %v2535_v10, %v6679_v21  ;;  %v2550_v28 = vrot.slane %v2536_v23, %v6679_v21  ;;  %v2559_v31 = vrot.slane %v2551_v61, %v6679_v21  ;;  %v2566_v32 = vrot.slane %v2552_v24, %v6679_v21  ;;  %v6521_v61 = vld [vmem:[%s7633_s1 + $0x8] sm:$0xff] }
 0x7f6   :  { %v2567_v33 = vcombine.low %v2543_v9, %v2559_v31  ;;  %v2568_v36 = vcombine.high %v2543_v9, %v2559_v31  ;;  %v2583_v46 = vcombine.low %v2550_v28, %v2566_v32  ;;  %v2584_v37 = vcombine.high %v2550_v28, %v2566_v32 }
 0x7f8   :  { %v2575_v38 = vrot.slane %v2567_v33, %v6689_v29  ;;  %v2582_v8 = vrot.slane %v2568_v36, %v6689_v29  ;;  %v2591_v12 = vrot.slane %v2583_v46, %v6689_v29  ;;  %v2598_v39 = vrot.slane %v2584_v37, %v6689_v29  ;;  %v5969_v36 = vld [vmem:[%s7637_s5] ss:$0 sm:$0xff] }
 0x7fa   :  { %v2603_v40 = vcombine.low %v2575_v38, %v2582_v8  ;;  %v5965_v41 = vcombine.high %v2575_v38, %v2582_v8  ;;  %v2619_v42 = vcombine.low %v2591_v12, %v2598_v39  ;;  %v5966_v44 = vcombine.high %v2591_v12, %v2598_v39  ;;  %v5972_v38 = vld [vmem:[%s7638_s6] ss:$0 sm:$0xff] }
 0x7fc   :  { %v2610_v45 = vrot.slane %v2603_v40, %v6679_v21  ;;  %v2618_v47 = vrot.slane %v5965_v41, %v6679_v21  ;;  %v2626_v48 = vrot.slane %v2619_v42, %v6679_v21  ;;  %v2634_v50 = vrot.slane %v5966_v44, %v6679_v21  ;;  %v39_v42 = vld [vmem:[%s7632_s0] sm:$0xff] }
 0x7fe   :  { %v2636_v51 = vcombine.high %v2610_v45, %v2618_v47  ;;  %v2652_v52 = vcombine.high %v2626_v48, %v2634_v50  ;;  %v2635_v54 = vcombine.low %v2610_v45, %v2618_v47  ;;  %v2651_v55 = vcombine.low %v2626_v48, %v2634_v50 }
 0x800   :  { %v2650_v56 = vrot.slane %v2636_v51, %v6689_v29  ;;  %v2666_v57 = vrot.slane %v2652_v52, %v6689_v29  ;;  %v2643_v58 = vrot.slane %v2635_v54, %v6689_v29  ;;  %v2659_v25 = vrot.slane %v2651_v55, %v6689_v29  ;;  %v40_v51 = vld [vmem:[%s7632_s0 + $0x8] sm:$0xff] }
 0x802   :  { %v2669_v26 = vcombine.low %v2650_v56, %v2666_v57  ;;  %v2668_v30 = vcombine.high %v2643_v58, %v2659_v25  ;;  %v2667_v62 = vcombine.low %v2643_v58, %v2659_v25  ;;  %v2670_v14 = vcombine.high %v2650_v56, %v2666_v57 }
 0x804   :  { %2676 = vrot.lane.b32.xlu0 %v2669_v26, %s6560_s23  ;;  %2672 = vrot.lane.b32.xlu1 %v2668_v30, %s6561_s24 }
 0x808   :  { %2680 = vrot.lane.b32.xlu1 %v2670_v14, %s6562_s25 }
 0x823   :  { %2770 = vadd.xlane.f32.xlu0 %v2769_v3 }
 0x876   :  { %v2673_v4 = vpop.permute.xlu1 %2672  ;;  %v2677_v5 = vpop.permute.xlu0 %2676 }
 0x877   :  { %v2683_v13 = vsel %vm578_vm2, %v2667_v62, %v2673_v4 }
 0x878   :  { %v2684_v35 = vsel %vm1372_vm3, %v2683_v13, %v2677_v5 }
 0x87a   :  { %v2681_v34 = vpop.permute.xlu1 %2680 }
 0x87b   :  { %v2685_v16 = vsel %vm1374_vm4, %v2684_v35, %v2681_v34 }
 0x87c   :  { %6258 = vmatmul.mubr.msk.f32.vlgmr.msra.gmra.mxu0 %vm54_vm0, %v2685_v16 }
 0x87d   :  { %6279 = vmatprep.mubr.msk.f32.mxu0 %vm54_vm0, %v39_v42 }
 0x8ac   :  { %v2771_v0 = vpop.xlane.xlu0 %2770 }
 0x8ad   :  { %v2776_v7 = vmul.f32 0.03125, %v2771_v0 }
 0x8af   :  { %v2778_v60 = vsub.f32 %v2767_v2, %v2776_v7 }
 0x8b1   :  { %v2780_v17 = vmul.f32 %v2778_v60, %v2778_v60  ;;  %v2811_v46 = vmul.f32 %v5969_v36, %v2778_v60 }
 0x8b3   :  { %v2782_v18 = vsel %vm54_vm0, %v2780_v17, 0.0 }
 0x8b4   :  { %2783 = vadd.xlane.f32.xlu0 %v2782_v18 }
 0x93c   :  { %v2755_v19 = vpop.f32.mrf.mxu0 }
 0x93d   :  { %v2766_v20 = vadd.f32 %v5968_v15, %v2755_v19  ;;  %v2784_v22 = vpop.xlane.xlu0 %2783 }
 0x93e   :  { %v2789_v10 = vmul.f32 0.032258064, %v2784_v22  ;;  %v6259_v23 = vpop.f32.mrf.mxu0 }
 0x93f   :  { %v2768_v24 = vadd.f32 %v6521_v61, %v2766_v20 }
 0x940   :  { %6460 = vrsqrt.f32 %v2789_v10  ;;  %vm2793_vm5 = vcmp.eq.f32.partialorder %v2789_v10, inf  ;;  %v2796_v28 = vand.u32 2147483648, %v2789_v10  ;;  %vm2795_vm6 = vcmp.eq.f32.partialorder %v2789_v10, 0.0 }
 0x941   :  { %v2772_v6 = vsel %vm54_vm0, %v2768_v24, 0.0 }
 0x942   :  { %2773 = vadd.xlane.f32.xlu1 %v2772_v6 }
 0x94d   :  { %v6461_v27 = vpop.eup %6460 }
 0x94e   :  { %v2792_v9 = vmul.f32 %v6461_v27, %v2789_v10 }
 0x950   :  { %v2794_v31 = vsel %vm2793_vm5, %v2789_v10, %v2792_v9 }
 0x951   :  { %v2797_v32 = vsel %vm2795_vm6, %v2796_v28, %v2794_v31 }
 0x952   :  { %v5970_v33 = vadd.f32 -1e-06, %v2797_v32 }
 0x953   :  { %2918 = vrot.lane.b32.xlu1 %v7037_v59, %s6553_s12 }
 0x954   :  { %6462 = vrcp.f32 %v5970_v33 }
 0x957   :  { %2914 = vrot.lane.b32.xlu1 %v7055_v49, %s6553_s12 }
 0x95b   :  { %2912 = vrot.lane.b32.xlu1 %v7064_v53, %s6553_s12 }
 0x961   :  { %v6463_v37 = vpop.eup %6462 }
 0x962   :  { %v2816_v8 = vmul.f32 %v6463_v37, %v2811_v46 }
 0x964   :  { %v7117_v12 = vadd.f32 %v5972_v38, %v2816_v8 }
 0x966   :  { %6268 = vmatprep.mubr.msk.f32.mxu1 %vm54_vm0, %v7117_v12 }
 0x9cb   :  { %v2774_v59 = vpop.xlane.xlu1 %2773 }
 0x9cc   :  { %v2777_v49 = vmul.f32 0.03125, %v2774_v59 }
 0x9ce   :  { %v2779_v39 = vsub.f32 %v2768_v24, %v2777_v49 }
 0x9cf   :  { %v2919_v41 = vpop.permute.xlu1 %2918 }
 0x9d0   :  { %v2781_v53 = vmul.f32 %v2779_v39, %v2779_v39  ;;  %6271 = vmatprep.subr.mxu0 %v2919_v41  ;;  %v2812_v58 = vmul.f32 %v5969_v36, %v2779_v39 }
 0x9d1   :  { %6272 = vmatpush3.msra.mxu0 %v2919_v41 }
 0x9d2   :  { %v2785_v40 = vsel %vm54_vm0, %v2781_v53, 0.0 }
 0x9d3   :  { %2786 = vadd.xlane.f32.xlu0 %v2785_v40  ;;  %v2915_v45 = vpop.permute.xlu1 %2914 }
 0x9d7   :  { %v2913_v50 = vpop.permute.xlu1 %2912 }
 0x9e9   :  { %2916 = vrot.lane.b32.xlu0 %v7046_v43, %s6553_s12 }
 0xa5c   :  { %v2787_v44 = vpop.xlane.xlu0 %2786 }
 0xa5d   :  { %v2790_v47 = vmul.f32 0.032258064, %v2787_v44 }
 0xa5f   :  { %6464 = vrsqrt.f32 %v2790_v47  ;;  %vm2800_vm7 = vcmp.eq.f32.partialorder %v2790_v47, inf  ;;  %v2803_v54 = vand.u32 2147483648, %v2790_v47  ;;  %vm2802_vm8 = vcmp.eq.f32.partialorder %v2790_v47, 0.0 }
 0xa60   :  { %v2917_v48 = vpop.permute.xlu0 %2916 }
 0xa61   :  { %6273 = vmatprep.subr.mxu0 %v2917_v48 }
 0xa62   :  { %6274 = vmatpush3.msra.mxu0 %v2917_v48 }
 0xa63   :  { %6275 = vmatprep.subr.mxu0 %v2915_v45 }
 0xa64   :  { %6276 = vmatpush3.msra.mxu0 %v2915_v45 }
 0xa65   :  { %6277 = vmatprep.subr.mxu0 %v2913_v50 }
 0xa66   :  { %6278 = vmatpush3.msra.mxu0 %v2913_v50 }
 0xa67   :  { %6280 = vmatmul.mubr.msk.f32.vlgmr.msra.gmra.mxu0 %vm54_vm0, %v40_v51  ;;  %6292 = vmatprep.subr.mxu0 %v6555_v11 }
 0xa68   :  { %6294 = vmatprep.mubr.msk.f32.mxu0 %vm6556_vm1, %v6555_v11 }
 0xa6c   :  { %v6465_v43 = vpop.eup %6464 }
 0xa6d   :  { %v2799_v52 = vmul.f32 %v6465_v43, %v2790_v47 }
 0xa6f   :  { %v2801_v55 = vsel %vm2800_vm7, %v2790_v47, %v2799_v52 }
 0xa70   :  { %v2804_v56 = vsel %vm2802_vm8, %v2803_v54, %v2801_v55 }
 0xa71   :  { %v5971_v57 = vadd.f32 -1e-06, %v2804_v56 }
 0xa73   :  { %6466 = vrcp.f32 %v5971_v57 }
 0xa80   :  { %v6467_v25 = vpop.eup %6466 }
 0xa81   :  { %v2818_v26 = vmul.f32 %v6467_v25, %v2812_v58 }
 0xa83   :  { %v7135_v30 = vadd.f32 %v5972_v38, %v2818_v26 }
 0xa85   :  { %6269 = vmatmul.mubr.msk.f32.vlgmr.msra.gmra.mxu1 %vm54_vm0, %v7135_v30 }
 0xa86   :  { %6284 = vmatprep.mubr.msk.f32.mxu1 %vm6556_vm1, %v6555_v11 }
 0xb27   :  { %v7141_v62 = vpop.f32.mrf.mxu0 }
 0xb29   :  { %v7143_v14 = vpop.f32.mrf.mxu0 }
 0xb2a   :  { %3155 = vrot.lane.b32.xlu1 %v7143_v14, %s6554_s13  ;;  %3152 = vrot.lane.b32.xlu0 %v7143_v14, %s6552_s30 }
 0xb2e   :  { %3158 = vrot.lane.b32.xlu0 %v7143_v14, %s6551_s29 }
 0xb45   :  { %v7151_v15 = vpop.f32.mrf.mxu1 }
 0xb47   :  { %v2899_v63 = vpop.f32.mrf.mxu1 }
 0xb48   :  { %3006 = vrot.lane.b32.xlu1 %v2899_v63, %s6552_s30  ;;  %3009 = vrot.lane.b32.xlu0 %v2899_v63, %s6554_s13 }
 0xb4c   :  { %3012 = vrot.lane.b32.xlu1 %v2899_v63, %s6551_s29 }
 0xb9c   :  { %v7156_v1 = vpop.permute.xlu1 %3155  ;;  %v7158_v2 = vpop.permute.xlu0 %3152 }
 0xb9d   :  { %v3161_v3 = vcombine.low %v7143_v14, %v7156_v1  ;;  %v3162_v4 = vcombine.high %v7143_v14, %v7156_v1 }
 0xb9f   :  { %v3169_v35 = vrot.slane %v3161_v3, %v6679_v21  ;;  %v3176_v16 = vrot.slane %v3162_v4, %v6679_v21 }
 0xba0   :  { %v7164_v5 = vpop.permute.xlu0 %3158 }
 0xba1   :  { %v3177_v13 = vcombine.low %v7158_v2, %v7164_v5  ;;  %v3178_v34 = vcombine.high %v7158_v2, %v7164_v5 }
 0xba3   :  { %v3185_v0 = vrot.slane %v3177_v13, %v6679_v21  ;;  %v3192_v7 = vrot.slane %v3178_v34, %v6679_v21 }
 0xba5   :  { %v3193_v60 = vcombine.low %v3169_v35, %v3185_v0  ;;  %v3194_v17 = vcombine.high %v3169_v35, %v3185_v0  ;;  %v3209_v18 = vcombine.low %v3176_v16, %v3192_v7  ;;  %v3210_v19 = vcombine.high %v3176_v16, %v3192_v7 }
 0xba7   :  { %v3201_v20 = vrot.slane %v3193_v60, %v6689_v29  ;;  %v3208_v22 = vrot.slane %v3194_v17, %v6689_v29  ;;  %v3217_v10 = vrot.slane %v3209_v18, %v6689_v29  ;;  %v3224_v23 = vrot.slane %v3210_v19, %v6689_v29 }
 0xba9   :  { %v3229_v61 = vcombine.low %v3201_v20, %v3208_v22  ;;  %v5979_v24 = vcombine.high %v3201_v20, %v3208_v22  ;;  %v3245_v6 = vcombine.low %v3217_v10, %v3224_v23  ;;  %v5980_v27 = vcombine.high %v3217_v10, %v3224_v23 }
 0xbab   :  { %v3236_v9 = vrot.slane %v3229_v61, %v6679_v21  ;;  %v3244_v28 = vrot.slane %v5979_v24, %v6679_v21  ;;  %v3252_v31 = vrot.slane %v3245_v6, %v6679_v21  ;;  %v3260_v32 = vrot.slane %v5980_v27, %v6679_v21 }
 0xbad   :  { %v3261_v33 = vcombine.low %v3236_v9, %v3244_v28  ;;  %v3262_v36 = vcombine.high %v3236_v9, %v3244_v28  ;;  %v3277_v46 = vcombine.low %v3252_v31, %v3260_v32  ;;  %v3278_v37 = vcombine.high %v3252_v31, %v3260_v32 }
 0xbaf   :  { %v3269_v38 = vrot.slane %v3261_v33, %v6689_v29  ;;  %v3285_v8 = vrot.slane %v3277_v46, %v6689_v29  ;;  %v3276_v59 = vrot.slane %v3262_v36, %v6689_v29  ;;  %v3292_v49 = vrot.slane %v3278_v37, %v6689_v29 }
 0xbb1   :  { %v3293_v39 = vcombine.low %v3269_v38, %v3285_v8  ;;  %v3295_v53 = vcombine.low %v3276_v59, %v3292_v49  ;;  %v3294_v6 = vcombine.high %v3269_v38, %v3285_v8  ;;  %v3296_v9 = vcombine.high %v3276_v59, %v3292_v49 }
 0xbb3   :  { %6283 = vmatpush3.xpose.msk.msra.mxu1 %vm578_vm2, %v3293_v39  ;;  %6293 = vmatpush3.xpose.msk.msra.mxu0 %vm578_vm2, %v3295_v53 }
 0xbb4   :  { %6287 = vmatprep.subr.mxu1 %v6555_v11  ;;  %6302 = vmatprep.subr.mxu0 %v6555_v11 }
 0xbba   :  { %v3007_v40 = vpop.permute.xlu1 %3006  ;;  %v3010_v41 = vpop.permute.xlu0 %3009 }
 0xbbb   :  { %v3015_v42 = vcombine.low %v2899_v63, %v3010_v41  ;;  %v3016_v44 = vcombine.high %v2899_v63, %v3010_v41 }
 0xbbd   :  { %v3023_v50 = vrot.slane %v3015_v42, %v6679_v21  ;;  %v3030_v51 = vrot.slane %v3016_v44, %v6679_v21 }
 0xbbe   :  { %v3013_v45 = vpop.permute.xlu1 %3012 }
 0xbbf   :  { %v3031_v47 = vcombine.low %v3007_v40, %v3013_v45  ;;  %v3032_v48 = vcombine.high %v3007_v40, %v3013_v45 }
 0xbc1   :  { %v3039_v43 = vrot.slane %v3031_v47, %v6679_v21  ;;  %v3046_v52 = vrot.slane %v3032_v48, %v6679_v21 }
 0xbc3   :  { %v3047_v54 = vcombine.low %v3023_v50, %v3039_v43  ;;  %v3048_v55 = vcombine.high %v3023_v50, %v3039_v43  ;;  %v3063_v56 = vcombine.low %v3030_v51, %v3046_v52  ;;  %v3064_v57 = vcombine.high %v3030_v51, %v3046_v52 }
 0xbc5   :  { %v3055_v58 = vrot.slane %v3047_v54, %v6689_v29  ;;  %v3062_v25 = vrot.slane %v3048_v55, %v6689_v29  ;;  %v3071_v26 = vrot.slane %v3063_v56, %v6689_v29  ;;  %v3078_v63 = vrot.slane %v3064_v57, %v6689_v29 }
 0xbc7   :  { %v3083_v3 = vcombine.low %v3055_v58, %v3062_v25  ;;  %v5977_v4 = vcombine.high %v3055_v58, %v3062_v25  ;;  %v3099_v13 = vcombine.low %v3071_v26, %v3078_v63  ;;  %v5978_v34 = vcombine.high %v3071_v26, %v3078_v63 }
 0xbc9   :  { %v3090_v35 = vrot.slane %v3083_v3, %v6679_v21  ;;  %v3098_v16 = vrot.slane %v5977_v4, %v6679_v21  ;;  %v3106_v0 = vrot.slane %v3099_v13, %v6679_v21  ;;  %v3114_v7 = vrot.slane %v5978_v34, %v6679_v21 }
 0xbcb   :  { %v3115_v60 = vcombine.low %v3090_v35, %v3098_v16  ;;  %v3116_v17 = vcombine.high %v3090_v35, %v3098_v16  ;;  %v3131_v18 = vcombine.low %v3106_v0, %v3114_v7  ;;  %v3132_v19 = vcombine.high %v3106_v0, %v3114_v7 }
 0xbcd   :  { %v3123_v20 = vrot.slane %v3115_v60, %v6689_v29  ;;  %v3139_v22 = vrot.slane %v3131_v18, %v6689_v29  ;;  %v3130_v10 = vrot.slane %v3116_v17, %v6689_v29  ;;  %v3146_v23 = vrot.slane %v3132_v19, %v6689_v29 }
 0xbcf   :  { %v3147_v61 = vcombine.low %v3123_v20, %v3139_v22  ;;  %v3149_v24 = vcombine.low %v3130_v10, %v3146_v23  ;;  %v3148_v27 = vcombine.high %v3123_v20, %v3139_v22  ;;  %v3150_v28 = vcombine.high %v3130_v10, %v3146_v23 }
 0xbd1   :  { %6285 = vmatmul.mubr.msk.f32.vlgmr.msra.gmra.mxu1 %vm578_vm2, %v3147_v61  ;;  %6295 = vmatmul.mubr.msk.f32.vlgmr.msra.gmra.mxu0 %vm578_vm2, %v3149_v24 }
 0xbd2   :  { %6288 = vmatpush3.xpose.msk.msra.mxu1 %vm578_vm2, %v3294_v6  ;;  %6289 = vmatprep.mubr.msk.f32.mxu1 %vm6556_vm1, %v6555_v11 }
 0xbd3   :  { %6297 = vmatprep.subr.mxu1 %v6555_v11  ;;  %6304 = vmatprep.mubr.msk.f32.mxu0 %vm6556_vm1, %v6555_v11 }
 0xbd5   :  { %6290 = vmatmul.mubr.msk.f32.vlgmr.msra.gmra.mxu1 %vm578_vm2, %v3148_v27 }
 0xbd6   :  { %6298 = vmatpush3.xpose.msk.msra.mxu1 %vm578_vm2, %v3296_v9  ;;  %6299 = vmatprep.mubr.msk.f32.mxu1 %vm6556_vm1, %v6555_v11 }
 0xbd7   :  { %6307 = vmatprep.subr.mxu1 %v6555_v11 }
 0xbd9   :  { %6300 = vmatmul.mubr.msk.f32.vlgmr.msra.gmra.mxu1 %vm578_vm2, %v3150_v28 }
 0xbda   :  { %6309 = vmatprep.mubr.msk.f32.mxu1 %vm6556_vm1, %v6555_v11 }
 0xc91   :  { %v3517_v31 = vpop.f32.mrf.mxu1  ;;  %v3669_v32 = vpop.f32.mrf.mxu0 }
 0xc92   :  { %v3749_v33 = vmul.f32 0.35355338, %v3517_v31  ;;  %v3751_v37 = vmul.f32 0.35355338, %v3669_v32 }
 0xc93   :  { %v6286_v36 = vpop.f32.mrf.mxu1  ;;  %v6296_v46 = vpop.f32.mrf.mxu0 }
 0xc94   :  { %v3753_v38 = vsel %vm578_vm2, %v3749_v33, -inf  ;;  %v3759_v39 = vsel %vm578_vm2, %v3751_v37, -inf }
 0xc95   :  { %3754 = vmax.xlane.f32.xlu0 %v3753_v38  ;;  %v3593_v8 = vpop.f32.mrf.mxu1 }
 0xc96   :  { %v3750_v59 = vmul.f32 0.35355338, %v3593_v8 }
 0xc97   :  { %v6291_v49 = vpop.f32.mrf.mxu1 }
 0xc98   :  { %v3756_v53 = vsel %vm578_vm2, %v3750_v59, -inf }
 0xc99   :  { %3760 = vmax.xlane.f32.xlu0 %v3759_v39  ;;  %3757 = vmax.xlane.f32.xlu1 %v3756_v53  ;;  %v3745_v40 = vpop.f32.mrf.mxu1 }
 0xc9a   :  { %v3752_v41 = vmul.f32 0.35355338, %v3745_v40 }
 0xc9b   :  { %v6301_v42 = vpop.f32.mrf.mxu1 }
 0xc9c   :  { %v3762_v44 = vsel %vm578_vm2, %v3752_v41, -inf }
 0xc9d   :  { %3763 = vmax.xlane.f32.xlu0 %v3762_v44 }
 0xcaa   :  { %3297 = vrot.lane.b32.xlu1 %v7143_v14, %s6553_s12 }
 0xd1e   :  { %v3755_v45 = vpop.xlane.xlu0 %3754 }
 0xd1f   :  { %v3765_v47 = vsub.f32 %v3749_v33, %v3755_v45 }
 0xd21   :  { %v3769_v48 = vmul.f32 1.442695, %v3765_v47 }
 0xd22   :  { %v3761_v50 = vpop.xlane.xlu0 %3760  ;;  %v3758_v51 = vpop.xlane.xlu1 %3757 }
 0xd23   :  { %6468 = vpow2.f32 %v3769_v48  ;;  %v3767_v43 = vsub.f32 %v3751_v37, %v3761_v50  ;;  %v3766_v52 = vsub.f32 %v3750_v59, %v3758_v51 }
 0xd25   :  { %v3773_v54 = vmul.f32 1.442695, %v3767_v43  ;;  %v3771_v55 = vmul.f32 1.442695, %v3766_v52 }
 0xd26   :  { %v3764_v56 = vpop.xlane.xlu0 %3763 }
 0xd27   :  { %6470 = vpow2.f32 %v3773_v54  ;;  %v3768_v57 = vsub.f32 %v3752_v41, %v3764_v56 }
 0xd28   :  { %6472 = vpow2.f32 %v3771_v55 }
 0xd29   :  { %v3775_v58 = vmul.f32 1.442695, %v3768_v57 }
 0xd2b   :  { %6474 = vpow2.f32 %v3775_v58 }
 0xd30   :  { %v7228_v25 = vpop.eup %6468 }
 0xd31   :  { %v3777_v14 = vsel %vm578_vm2, %v7228_v25, 0.0 }
 0xd32   :  { %3778 = vadd.xlane.f32.xlu1 %v3777_v14 }
 0xd34   :  { %v7232_v26 = vpop.eup %6470 }
 0xd35   :  { %v7234_v63 = vpop.eup %6472  ;;  %v3783_v3 = vsel %vm578_vm2, %v7232_v26, 0.0 }
 0xd36   :  { %3784 = vadd.xlane.f32.xlu1 %v3783_v3  ;;  %v3780_v4 = vsel %vm578_vm2, %v7234_v63, 0.0 }
 0xd37   :  { %3781 = vadd.xlane.f32.xlu0 %v3780_v4 }
 0xd38   :  { %v7240_v13 = vpop.eup %6474 }
 0xd39   :  { %v3786_v34 = vsel %vm578_vm2, %v7240_v13, 0.0 }
 0xd3b   :  { %3787 = vadd.xlane.f32.xlu0 %v3786_v34 }
 0xd47   :  { %3301 = vrot.lane.b32.xlu1 %v7156_v1, %s6553_s12  ;;  %v3298_v1 = vpop.permute.xlu1 %3297 }
 0xd4b   :  { %3303 = vrot.lane.b32.xlu1 %v7164_v5, %s6553_s12 }
 0xd4f   :  { %4463 = vrot.lane.b32.xlu1 %v7141_v62, %s6554_s13 }
 0xd51   :  { %3299 = vrot.lane.b32.xlu0 %v7158_v2, %s6553_s12 }
 0xd53   :  { %4314 = vrot.lane.b32.xlu1 %v7151_v15, %s6552_s30 }
 0xd55   :  { %4460 = vrot.lane.b32.xlu0 %v7141_v62, %s6552_s30 }
 0xd57   :  { %4320 = vrot.lane.b32.xlu1 %v7151_v15, %s6551_s29 }
 0xd59   :  { %4466 = vrot.lane.b32.xlu0 %v7141_v62, %s6551_s29 }
 0xd5d   :  { %4317 = vrot.lane.b32.xlu0 %v7151_v15, %s6554_s13 }
 0xdbb   :  { %v3779_v5 = vpop.xlane.xlu1 %3778 }
 0xdbc   :  { %6476 = vrcp.f32 %v3779_v5 }
 0xdbf   :  { %v3785_v35 = vpop.xlane.xlu1 %3784 }
 0xdc0   :  { %v3782_v16 = vpop.xlane.xlu0 %3781  ;;  %6478 = vrcp.f32 %v3785_v35 }
 0xdc1   :  { %6480 = vrcp.f32 %v3782_v16 }
 0xdc3   :  { %v3302_v2 = vpop.permute.xlu1 %3301 }
 0xdc4   :  { %v3788_v0 = vpop.xlane.xlu0 %3787  ;;  %v3309_v7 = vcombine.low %v3298_v1, %v3302_v2  ;;  %v3310_v60 = vcombine.high %v3298_v1, %v3302_v2 }
 0xdc5   :  { %6482 = vrcp.f32 %v3788_v0 }
 0xdc6   :  { %v3317_v22 = vrot.slane %v3309_v7, %v6679_v21  ;;  %v3324_v10 = vrot.slane %v3310_v60, %v6679_v21 }
 0xdc7   :  { %v3304_v17 = vpop.permute.xlu1 %3303 }
 0xdc8   :  { %v3300_v18 = vpop.permute.xlu0 %3299 }
 0xdc9   :  { %v3325_v19 = vcombine.low %v3300_v18, %v3304_v17  ;;  %v3326_v20 = vcombine.high %v3300_v18, %v3304_v17  ;;  %v6477_v16 = vpop.eup %6476 }
 0xdcb   :  { %v3333_v23 = vrot.slane %v3325_v19, %v6679_v21  ;;  %v3340_v61 = vrot.slane %v3326_v20, %v6679_v21  ;;  %v7266_v24 = vpop.permute.xlu1 %4463 }
 0xdcc   :  { %v7268_v6 = vpop.permute.xlu0 %4460  ;;  %v4469_v32 = vcombine.low %v7141_v62, %v7266_v24  ;;  %v4470_v33 = vcombine.high %v7141_v62, %v7266_v24 }
 0xdcd   :  { %v3341_v27 = vcombine.low %v3317_v22, %v3333_v23  ;;  %v3342_v9 = vcombine.high %v3317_v22, %v3333_v23  ;;  %v3357_v28 = vcombine.low %v3324_v10, %v3340_v61  ;;  %v3358_v31 = vcombine.high %v3324_v10, %v3340_v61  ;;  %v6479_v20 = vpop.eup %6478 }
 0xdce   :  { %v4477_v41 = vrot.slane %v4469_v32, %v6679_v21  ;;  %v4484_v42 = vrot.slane %v4470_v33, %v6679_v21  ;;  %v6481_v32 = vpop.eup %6480 }
 0xdcf   :  { %v3349_v36 = vrot.slane %v3341_v27, %v6689_v29  ;;  %v3356_v46 = vrot.slane %v3342_v9, %v6689_v29  ;;  %v3365_v37 = vrot.slane %v3357_v28, %v6689_v29  ;;  %v3372_v38 = vrot.slane %v3358_v31, %v6689_v29  ;;  %v4315_v8 = vpop.permute.xlu1 %4314 }
 0xdd0   :  { %v7278_v59 = vpop.permute.xlu0 %4466 }
 0xdd1   :  { %v3377_v49 = vcombine.low %v3349_v36, %v3356_v46  ;;  %v5981_v39 = vcombine.high %v3349_v36, %v3356_v46  ;;  %v3393_v53 = vcombine.low %v3365_v37, %v3372_v38  ;;  %v5982_v40 = vcombine.high %v3365_v37, %v3372_v38 }
 0xdd2   :  { %v4485_v44 = vcombine.low %v7268_v6, %v7278_v59  ;;  %v4486_v45 = vcombine.high %v7268_v6, %v7278_v59 }
 0xdd3   :  { %v7287_v47 = vrot.slane %v3377_v49, %v6679_v21  ;;  %v7290_v48 = vrot.slane %v5981_v39, %v6679_v21  ;;  %v7293_v50 = vrot.slane %v3393_v53, %v6679_v21  ;;  %v7296_v51 = vrot.slane %v5982_v40, %v6679_v21  ;;  %v4321_v43 = vpop.permute.xlu1 %4320  ;;  %v6483_v53 = vpop.eup %6482 }
 0xdd4   :  { %v4493_v52 = vrot.slane %v4485_v44, %v6679_v21  ;;  %v4500_v54 = vrot.slane %v4486_v45, %v6679_v21  ;;  %v4339_v55 = vcombine.low %v4315_v8, %v4321_v43  ;;  %v4340_v56 = vcombine.high %v4315_v8, %v4321_v43  ;;  %v4318_v57 = vpop.permute.xlu0 %4317 }
 0xdd5   :  { %v4323_v58 = vcombine.low %v7151_v15, %v4318_v57  ;;  %v4324_v14 = vcombine.high %v7151_v15, %v4318_v57  ;;  %v3409_v3 = vcombine.low %v7287_v47, %v7290_v48  ;;  %v3425_v4 = vcombine.low %v7293_v50, %v7296_v51 }
 0xdd6   :  { %v4501_v34 = vcombine.low %v4477_v41, %v4493_v52  ;;  %v4502_v1 = vcombine.high %v4477_v41, %v4493_v52  ;;  %v4517_v5 = vcombine.low %v4484_v42, %v4500_v54  ;;  %v4518_v35 = vcombine.high %v4484_v42, %v4500_v54 }
 0xdd7   :  { %v4347_v2 = vrot.slane %v4339_v55, %v6679_v21  ;;  %v4354_v0 = vrot.slane %v4340_v56, %v6679_v21  ;;  %v4331_v7 = vrot.slane %v4323_v58, %v6679_v21  ;;  %v4338_v60 = vrot.slane %v4324_v14, %v6679_v21 }
 0xdd8   :  { %v4509_v15 = vrot.slane %v4501_v34, %v6689_v29  ;;  %v4516_v17 = vrot.slane %v4502_v1, %v6689_v29  ;;  %v4525_v18 = vrot.slane %v4517_v5, %v6689_v29  ;;  %v4532_v19 = vrot.slane %v4518_v35, %v6689_v29 }
 0xdd9   :  { %v4355_v22 = vcombine.low %v4331_v7, %v4347_v2  ;;  %v4356_v10 = vcombine.high %v4331_v7, %v4347_v2  ;;  %v4371_v23 = vcombine.low %v4338_v60, %v4354_v0  ;;  %v4372_v61 = vcombine.high %v4338_v60, %v4354_v0 }
 0xdda   :  { %v4537_v27 = vcombine.low %v4509_v15, %v4516_v17  ;;  %v6000_v9 = vcombine.high %v4509_v15, %v4516_v17  ;;  %v4553_v28 = vcombine.low %v4525_v18, %v4532_v19  ;;  %v6001_v31 = vcombine.high %v4525_v18, %v4532_v19 }
 0xddb   :  { %v4363_v33 = vrot.slane %v4355_v22, %v6689_v29  ;;  %v4370_v36 = vrot.slane %v4356_v10, %v6689_v29  ;;  %v4379_v46 = vrot.slane %v4371_v23, %v6689_v29  ;;  %v4386_v37 = vrot.slane %v4372_v61, %v6689_v29 }
 0xddc   :  { %v4544_v38 = vrot.slane %v4537_v27, %v6679_v21  ;;  %v4552_v8 = vrot.slane %v6000_v9, %v6679_v21  ;;  %v4560_v49 = vrot.slane %v4553_v28, %v6679_v21  ;;  %v4568_v39 = vrot.slane %v6001_v31, %v6679_v21  ;;  %v7377_v9 = vld [vmem:[%s7635_s3 + $0x18] sm:$0xff]  ;;  %v7387_v31 = vld [vmem:[%s7635_s3 + $0x10] sm:$0xff] }
 0xddd   :  { %v4391_v40 = vcombine.low %v4363_v33, %v4370_v36  ;;  %v5998_v41 = vcombine.high %v4363_v33, %v4370_v36  ;;  %v4407_v42 = vcombine.low %v4379_v46, %v4386_v37  ;;  %v5999_v44 = vcombine.high %v4379_v46, %v4386_v37  ;;  %v7400_v36 = vld [vmem:[%s7635_s3 + $0x8] sm:$0xff]  ;;  %v7413_v37 = vld [vmem:[%s7635_s3] sm:$0xff] }
 0xdde   :  { %v4569_v45 = vcombine.low %v4544_v38, %v4552_v8  ;;  %v4585_v43 = vcombine.low %v4560_v49, %v4568_v39  ;;  %v3793_v52 = vmul.f32 %v6477_v16, %v7228_v25  ;;  %v3794_v54 = vmul.f32 %v6481_v32, %v7234_v63 }
 0xddf   :  { %v4398_v55 = vrot.slane %v4391_v40, %v6679_v21  ;;  %v4406_v56 = vrot.slane %v5998_v41, %v6679_v21  ;;  %v4414_v57 = vrot.slane %v4407_v42, %v6679_v21  ;;  %v4422_v58 = vrot.slane %v5999_v44, %v6679_v21 }
 0xde0   :  { %v3417_v14 = vrot.slane %v3409_v3, %v6689_v29  ;;  %v3433_v34 = vrot.slane %v3425_v4, %v6689_v29  ;;  %v3410_v1 = vcombine.high %v7287_v47, %v7290_v48  ;;  %v3426_v25 = vcombine.high %v7293_v50, %v7296_v51 }
 0xde1   :  { %v4570_v5 = vcombine.high %v4544_v38, %v4552_v8  ;;  %v4586_v63 = vcombine.high %v4560_v49, %v4568_v39  ;;  %v4423_v35 = vcombine.low %v4398_v55, %v4406_v56  ;;  %v4439_v16 = vcombine.low %v4414_v57, %v4422_v58 }
 0xde2   :  { %v3441_v2 = vcombine.low %v3417_v14, %v3433_v34  ;;  %v3442_v0 = vcombine.high %v3417_v14, %v3433_v34  ;;  %v3424_v7 = vrot.slane %v3410_v1, %v6689_v29  ;;  %v3440_v60 = vrot.slane %v3426_v25, %v6689_v29 }
 0xde3   :  { %v4424_v15 = vcombine.high %v4398_v55, %v4406_v56  ;;  %v4440_v3 = vcombine.high %v4414_v57, %v4422_v58  ;;  %v4577_v4 = vrot.slane %v4569_v45, %v6689_v29  ;;  %v4593_v17 = vrot.slane %v4585_v43, %v6689_v29 }
 0xde4   :  { %6303 = vmatpush3.msra.mxu0 %v3441_v2  ;;  %6308 = vmatpush3.msra.mxu1 %v3442_v0  ;;  %v3795_v47 = vmul.f32 %v6479_v20, %v7232_v26  ;;  %v3796_v48 = vmul.f32 %v6483_v53, %v7240_v13  ;;  %v3443_v50 = vcombine.low %v3424_v7, %v3440_v60 }
 0xde5   :  { %6305 = vmatmul.mubr.msk.f32.vlgmr.msra.gmra.mxu0 %vm578_vm2, %v3793_v52  ;;  %6310 = vmatmul.mubr.msk.f32.vlgmr.msra.gmra.mxu1 %vm578_vm2, %v3794_v54  ;;  %v3444_v51 = vcombine.high %v3424_v7, %v3440_v60  ;;  %v7343_v18 = vrot.slane %v4570_v5, %v6689_v29  ;;  %v4431_v19 = vrot.slane %v4423_v35, %v6689_v29 }
 0xde6   :  { %6312 = vmatprep.subr.mxu0 %v6555_v11  ;;  %6317 = vmatprep.subr.mxu1 %v6555_v11  ;;  %v4447_v22 = vrot.slane %v4439_v16, %v6689_v29  ;;  %v7350_v26 = vrot.slane %v4586_v63, %v6689_v29  ;;  %v4601_v13 = vcombine.low %v4577_v4, %v4593_v17 }
 0xde7   :  { %6313 = vmatpush3.msra.mxu0 %v3443_v50  ;;  %6318 = vmatpush3.msra.mxu1 %v3444_v51  ;;  %v7353_v20 = vrot.slane %v4424_v15, %v6689_v29  ;;  %v7356_v10 = vrot.slane %v4440_v3, %v6689_v29  ;;  %v4602_v28 = vcombine.high %v4577_v4, %v4593_v17 }
 0xde8   :  { %6314 = vmatprep.mubr.msk.f32.mxu0 %vm6556_vm1, %v6555_v11  ;;  %6319 = vmatprep.mubr.msk.f32.mxu1 %vm6556_vm1, %v6555_v11  ;;  %v4603_v23 = vcombine.low %v7343_v18, %v7350_v26  ;;  %v4455_v27 = vcombine.low %v4431_v19, %v4447_v22  ;;  %v4456_v32 = vcombine.high %v4431_v19, %v4447_v22 }
 0xde9   :  { %6315 = vmatmul.mubr.msk.f32.vlgmr.msra.gmra.mxu0 %vm578_vm2, %v3795_v47  ;;  %6320 = vmatmul.mubr.msk.f32.vlgmr.msra.gmra.mxu1 %vm578_vm2, %v3796_v48  ;;  %v4457_v61 = vcombine.low %v7353_v20, %v7356_v10  ;;  %v4604_v33 = vcombine.high %v7343_v18, %v7350_v26  ;;  %v4458_v46 = vcombine.high %v7353_v20, %v7356_v10 }
 0xdea   :  { %6333 = vmatprep.subr.mxu1 %v6555_v11  ;;  %6335 = vmatprep.mubr.msk.f32.mxu1 %vm6556_vm1, %v6555_v11 }
 0xdeb   :  { %6334 = vmatpush3.xpose.msk.msra.mxu1 %vm578_vm2, %v4601_v13  ;;  %6322 = vmatprep.subr.mxu0 %v6555_v11 }
 0xdec   :  { %6338 = vmatprep.subr.mxu1 %v6555_v11  ;;  %6323 = vmatpush3.msra.mxu0 %v7377_v9 }
 0xded   :  { %6324 = vmatprep.subr.mxu0 %v6555_v11  ;;  %6330 = vmatprep.mubr.msk.f32.mxu0 %vm6556_vm1, %v6555_v11 }
 0xdee   :  { %6336 = vmatmul.mubr.msk.f32.vlgmr.msra.gmra.mxu1 %vm578_vm2, %v4455_v27  ;;  %6325 = vmatpush3.msra.mxu0 %v7387_v31 }
 0xdef   :  { %6339 = vmatpush3.xpose.msk.msra.mxu1 %vm578_vm2, %v4602_v28  ;;  %6340 = vmatprep.mubr.msk.f32.mxu1 %vm6556_vm1, %v6555_v11 }
 0xdf0   :  { %6348 = vmatprep.subr.mxu1 %v6555_v11  ;;  %6326 = vmatprep.subr.mxu0 %v6555_v11 }
 0xdf1   :  { %6327 = vmatpush3.msra.mxu0 %v7400_v36 }
 0xdf2   :  { %6341 = vmatmul.mubr.msk.f32.vlgmr.msra.gmra.mxu1 %vm578_vm2, %v4456_v32  ;;  %6328 = vmatprep.subr.mxu0 %v6555_v11 }
 0xdf3   :  { %6349 = vmatpush3.xpose.msk.msra.mxu1 %vm578_vm2, %v4604_v33  ;;  %6350 = vmatprep.mubr.msk.f32.mxu1 %vm6556_vm1, %v6555_v11 }
 0xdf4   :  { %6329 = vmatpush3.msra.mxu0 %v7413_v37  ;;  %6358 = vmatprep.subr.mxu1 %v6555_v11 }
 0xdf5   :  { %6343 = vmatprep.subr.mxu0 %v6555_v11 }
 0xdf6   :  { %6351 = vmatmul.mubr.msk.f32.vlgmr.msra.gmra.mxu1 %vm578_vm2, %v4458_v46 }
 0xdf7   :  { %6360 = vmatprep.mubr.msk.f32.mxu1 %vm6556_vm1, %v6555_v11 }
 0xea5   :  { %v3866_v38 = vpop.f32.mrf.mxu0  ;;  %v3939_v8 = vpop.f32.mrf.mxu1 }
 0xea7   :  { %v6306_v49 = vpop.f32.mrf.mxu0  ;;  %v6311_v39 = vpop.f32.mrf.mxu1 }
 0xea9   :  { %v4012_v53 = vpop.f32.mrf.mxu0  ;;  %v4085_v40 = vpop.f32.mrf.mxu1 }
 0xeaa   :  { %v4089_v41 = vcombine.low %v3866_v38, %v4012_v53  ;;  %v4090_v42 = vcombine.high %v3866_v38, %v4012_v53  ;;  %v4105_v44 = vcombine.low %v3939_v8, %v4085_v40  ;;  %v4106_v45 = vcombine.high %v3939_v8, %v4085_v40 }
 0xeab   :  { %v6316_v43 = vpop.f32.mrf.mxu0  ;;  %v6321_v52 = vpop.f32.mrf.mxu1 }
 0xeac   :  { %v4097_v54 = vrot.slane %v4089_v41, %v6679_v21  ;;  %v4104_v55 = vrot.slane %v4090_v42, %v6679_v21  ;;  %v4113_v56 = vrot.slane %v4105_v44, %v6679_v21  ;;  %v4120_v57 = vrot.slane %v4106_v45, %v6679_v21 }
 0xeae   :  { %v4121_v58 = vcombine.low %v4097_v54, %v4113_v56  ;;  %v4122_v14 = vcombine.high %v4097_v54, %v4113_v56  ;;  %v4137_v34 = vcombine.low %v4104_v55, %v4120_v57  ;;  %v4138_v1 = vcombine.high %v4104_v55, %v4120_v57  ;;  %v4825_v25 = vpop.f32.mrf.mxu1 }
 0xeaf   :  { %v5057_v41 = vmul.f32 0.35355338, %v4825_v25 }
 0xeb0   :  { %v4129_v5 = vrot.slane %v4121_v58, %v6689_v29  ;;  %v4136_v63 = vrot.slane %v4122_v14, %v6689_v29  ;;  %v4145_v35 = vrot.slane %v4137_v34, %v6689_v29  ;;  %v4152_v16 = vrot.slane %v4138_v1, %v6689_v29  ;;  %v6337_v2 = vpop.f32.mrf.mxu1 }
 0xeb1   :  { %v5061_v45 = vsel %vm578_vm2, %v5057_v41, -inf }
 0xeb2   :  { %v4157_v0 = vcombine.low %v4129_v5, %v4136_v63  ;;  %v5995_v7 = vcombine.high %v4129_v5, %v4136_v63  ;;  %v4173_v60 = vcombine.low %v4145_v35, %v4152_v16  ;;  %v5996_v15 = vcombine.high %v4145_v35, %v4152_v16  ;;  %v4901_v3 = vpop.f32.mrf.mxu1 }
 0xeb3   :  { %v5058_v40 = vmul.f32 0.35355338, %v4901_v3 }
 0xeb4   :  { %v6342_v4 = vpop.f32.mrf.mxu1  ;;  %v4164_v17 = vrot.slane %v4157_v0, %v6679_v21  ;;  %v4172_v47 = vrot.slane %v5995_v7, %v6679_v21  ;;  %v4180_v48 = vrot.slane %v4173_v60, %v6679_v21  ;;  %v4188_v50 = vrot.slane %v5996_v15, %v6679_v21 }
 0xeb5   :  { %v5064_v42 = vsel %vm578_vm2, %v5058_v40, -inf }
 0xeb6   :  { %v5053_v51 = vpop.f32.mrf.mxu1  ;;  %v4190_v19 = vcombine.high %v4164_v17, %v4172_v47  ;;  %v4206_v22 = vcombine.high %v4180_v48, %v4188_v50  ;;  %v4189_v13 = vcombine.low %v4164_v17, %v4172_v47  ;;  %v4205_v27 = vcombine.low %v4180_v48, %v4188_v50 }
 0xeb7   :  { %v5060_v44 = vmul.f32 0.35355338, %v5053_v51 }
 0xeb8   :  { %v6352_v28 = vpop.f32.mrf.mxu1  ;;  %v4204_v32 = vrot.slane %v4190_v19, %v6689_v29  ;;  %v4220_v33 = vrot.slane %v4206_v22, %v6689_v29  ;;  %v4197_v46 = vrot.slane %v4189_v13, %v6689_v29  ;;  %v4213_v38 = vrot.slane %v4205_v27, %v6689_v29 }
 0xeb9   :  { %v5070_v43 = vsel %vm578_vm2, %v5060_v44, -inf }
 0xeba   :  { %v4223_v8 = vcombine.low %v4204_v32, %v4220_v33  ;;  %v4222_v49 = vcombine.high %v4197_v46, %v4213_v38  ;;  %v4221_v39 = vcombine.low %v4197_v46, %v4213_v38  ;;  %v4224_v53 = vcombine.high %v4204_v32, %v4220_v33 }
 0xebc   :  { %4230 = vrot.lane.b32.xlu1 %v4223_v8, %s6560_s23  ;;  %4226 = vrot.lane.b32.xlu0 %v4222_v49, %s6561_s24 }
 0xec0   :  { %4234 = vrot.lane.b32.xlu0 %v4224_v53, %s6562_s25 }
 0xedf   :  { %5065 = vmax.xlane.f32.xlu0 %v5064_v42 }
 0xee0   :  { %5062 = vmax.xlane.f32.xlu1 %v5061_v45 }
 0xee4   :  { %5071 = vmax.xlane.f32.xlu1 %v5070_v43 }
 0xf2e   :  { %v4227_v52 = vpop.permute.xlu0 %4226  ;;  %v4231_v54 = vpop.permute.xlu1 %4230 }
 0xf2f   :  { %v4237_v55 = vsel %vm578_vm2, %v4221_v39, %v4227_v52 }
 0xf30   :  { %v4238_v57 = vsel %vm1372_vm3, %v4237_v55, %v4231_v54 }
 0xf32   :  { %v4235_v56 = vpop.permute.xlu0 %4234 }
 0xf33   :  { %v4239_v58 = vsel %vm1374_vm4, %v4238_v57, %v4235_v56 }
 0xf34   :  { %6331 = vmatmul.mubr.msk.f32.vlgmr.msra.gmra.mxu0 %vm54_vm0, %v4239_v58 }
 0xf35   :  { %6344 = vmatpush3.xpose.msk.msra.mxu0 %vm578_vm2, %v4603_v23  ;;  %6345 = vmatprep.mubr.msk.f32.mxu0 %vm6556_vm1, %v6555_v11 }
 0xf36   :  { %6353 = vmatprep.subr.mxu0 %v6555_v11 }
 0xf38   :  { %6346 = vmatmul.mubr.msk.f32.vlgmr.msra.gmra.mxu0 %vm578_vm2, %v4457_v61 }
 0xf39   :  { %6355 = vmatprep.mubr.msk.f32.mxu0 %vm6556_vm1, %v6555_v11 }
 0xf68   :  { %v5066_v14 = vpop.xlane.xlu0 %5065 }
 0xf69   :  { %v5074_v34 = vsub.f32 %v5058_v40, %v5066_v14  ;;  %v5063_v1 = vpop.xlane.xlu1 %5062 }
 0xf6a   :  { %v5073_v61 = vsub.f32 %v5057_v41, %v5063_v1 }
 0xf6b   :  { %v5079_v25 = vmul.f32 1.442695, %v5074_v34 }
 0xf6c   :  { %v5077_v35 = vmul.f32 1.442695, %v5073_v61 }
 0xf6d   :  { %6484 = vpow2.f32 %v5079_v25  ;;  %v5072_v18 = vpop.xlane.xlu1 %5071 }
 0xf6e   :  { %v5076_v26 = vsub.f32 %v5060_v44, %v5072_v18 }
 0xf70   :  { %v5083_v23 = vmul.f32 1.442695, %v5076_v26 }
 0xf72   :  { %6486 = vpow2.f32 %v5083_v23 }
 0xf73   :  { %6488 = vpow2.f32 %v5077_v35 }
 0xf7a   :  { %v7460_v5 = vpop.eup %6484 }
 0xf7b   :  { %v5088_v63 = vsel %vm578_vm2, %v7460_v5, 0.0 }
 0xf7c   :  { %5089 = vadd.xlane.f32.xlu1 %v5088_v63 }
 0xf7f   :  { %v7464_v20 = vpop.eup %6486 }
 0xf80   :  { %v5094_v10 = vsel %vm578_vm2, %v7464_v20, 0.0  ;;  %v6489_v3 = vpop.eup %6488 }
 0xf81   :  { %5095 = vadd.xlane.f32.xlu1 %v5094_v10  ;;  %v5085_v4 = vsel %vm578_vm2, %v6489_v3, 0.0 }
 0xf92   :  { %4607 = vrot.lane.b32.xlu1 %v7268_v6, %s6553_s12 }
 0xf96   :  { %4609 = vrot.lane.b32.xlu1 %v7266_v24, %s6553_s12 }
 0xff4   :  { %v7472_v16 = vpop.f32.mrf.mxu0 }
 0xff6   :  { %v6332_v2 = vpop.f32.mrf.mxu0 }
 0xff8   :  { %v4977_v0 = vpop.f32.mrf.mxu0 }
 0xff9   :  { %v5059_v7 = vmul.f32 0.35355338, %v4977_v0 }
 0xffa   :  { %v6347_v60 = vpop.f32.mrf.mxu0 }
 0xffb   :  { %v5067_v15 = vsel %vm578_vm2, %v5059_v7, -inf }
 0xffc   :  { %5068 = vmax.xlane.f32.xlu0 %v5067_v15 }
0x1000   :  { %5086 = vadd.xlane.f32.xlu0 %v5085_v4 }
0x1005   :  { %v5090_v50 = vpop.xlane.xlu1 %5089 }
0x100a   :  { %v5096_v51 = vpop.xlane.xlu1 %5095 }
0x100e   :  { %v4608_v22 = vpop.permute.xlu1 %4607 }
0x1016   :  { %4605 = vrot.lane.b32.xlu0 %v7141_v62, %s6553_s12  ;;  %v4610_v62 = vpop.permute.xlu1 %4609 }
0x1085   :  { %v5069_v24 = vpop.xlane.xlu0 %5068 }
0x1086   :  { %v5075_v6 = vsub.f32 %v5059_v7, %v5069_v24 }
0x1088   :  { %v5081_v17 = vmul.f32 1.442695, %v5075_v6 }
0x1089   :  { %v5087_v19 = vpop.xlane.xlu0 %5086 }
0x108a   :  { %6490 = vpow2.f32 %v5081_v17 }
0x108b   :  { %6492 = vrcp.f32 %v5090_v50 }
0x108c   :  { %6494 = vrcp.f32 %v5087_v19 }
0x108d   :  { %v4606_v13 = vpop.permute.xlu0 %4605  ;;  %6496 = vrcp.f32 %v5096_v51 }
0x108e   :  { %v4617_v28 = vcombine.low %v4606_v13, %v4610_v62  ;;  %v4618_v32 = vcombine.high %v4606_v13, %v4610_v62 }
0x1090   :  { %v4625_v8 = vrot.slane %v4617_v28, %v6679_v21  ;;  %v4632_v49 = vrot.slane %v4618_v32, %v6679_v21 }
0x1097   :  { %v7478_v47 = vpop.eup %6490 }
0x1098   :  { %v5091_v48 = vsel %vm578_vm2, %v7478_v47, 0.0  ;;  %v6493_v63 = vpop.eup %6492 }
0x1099   :  { %5092 = vadd.xlane.f32.xlu0 %v5091_v48  ;;  %v6495_v10 = vpop.eup %6494  ;;  %v5102_v24 = vmul.f32 %v6493_v63, %v7460_v5  ;;  %v6526_v63 = vld [vmem:[%s7636_s4] ss:$0 sm:$0xff] }
0x109a   :  { %v6497_v7 = vpop.eup %6496  ;;  %v5101_v4 = vmul.f32 %v6495_v10, %v6489_v3  ;;  %v5621_v10 = vadd.f32 %v6526_v63, %v7472_v16 }
0x109b   :  { %v5104_v3 = vmul.f32 %v6497_v7, %v7464_v20 }
0x10af   :  { %4611 = vrot.lane.b32.xlu0 %v7278_v59, %s6553_s12 }
0x1122   :  { %v5093_v27 = vpop.xlane.xlu0 %5092 }
0x1123   :  { %6498 = vrcp.f32 %v5093_v27 }
0x1126   :  { %v4612_v33 = vpop.permute.xlu0 %4611 }
0x1127   :  { %v4633_v46 = vcombine.low %v4608_v22, %v4612_v33  ;;  %v4634_v38 = vcombine.high %v4608_v22, %v4612_v33 }
0x1129   :  { %v4641_v59 = vrot.slane %v4633_v46, %v6679_v21  ;;  %v4648_v39 = vrot.slane %v4634_v38, %v6679_v21 }
0x112b   :  { %v4649_v53 = vcombine.low %v4625_v8, %v4641_v59  ;;  %v4650_v40 = vcombine.high %v4625_v8, %v4641_v59  ;;  %v4665_v41 = vcombine.low %v4632_v49, %v4648_v39  ;;  %v4666_v42 = vcombine.high %v4632_v49, %v4648_v39 }
0x112d   :  { %v4657_v44 = vrot.slane %v4649_v53, %v6689_v29  ;;  %v4664_v45 = vrot.slane %v4650_v40, %v6689_v29  ;;  %v4673_v43 = vrot.slane %v4665_v41, %v6689_v29  ;;  %v4680_v52 = vrot.slane %v4666_v42, %v6689_v29 }
0x112f   :  { %v4685_v54 = vcombine.low %v4657_v44, %v4664_v45  ;;  %v6002_v55 = vcombine.high %v4657_v44, %v4664_v45  ;;  %v4701_v56 = vcombine.low %v4673_v43, %v4680_v52  ;;  %v6003_v57 = vcombine.high %v4673_v43, %v4680_v52 }
0x1130   :  { %v6499_v6 = vpop.eup %6498 }
0x1131   :  { %v4692_v58 = vrot.slane %v4685_v54, %v6679_v21  ;;  %v4700_v14 = vrot.slane %v6002_v55, %v6679_v21  ;;  %v4708_v34 = vrot.slane %v4701_v56, %v6679_v21  ;;  %v4716_v1 = vrot.slane %v6003_v57, %v6679_v21 }
0x1132   :  { %v5103_v50 = vmul.f32 %v6499_v6, %v7478_v47 }
0x1133   :  { %v4717_v25 = vcombine.low %v4692_v58, %v4700_v14  ;;  %v4733_v18 = vcombine.low %v4708_v34, %v4716_v1  ;;  %v4718_v26 = vcombine.high %v4692_v58, %v4700_v14  ;;  %v4734_v23 = vcombine.high %v4708_v34, %v4716_v1 }
0x1135   :  { %v4725_v61 = vrot.slane %v4717_v25, %v6689_v29  ;;  %v4741_v35 = vrot.slane %v4733_v18, %v6689_v29  ;;  %v4732_v2 = vrot.slane %v4718_v26, %v6689_v29  ;;  %v4748_v0 = vrot.slane %v4734_v23, %v6689_v29 }
0x1137   :  { %v4749_v60 = vcombine.low %v4725_v61, %v4741_v35  ;;  %v4750_v15 = vcombine.high %v4725_v61, %v4741_v35  ;;  %v4751_v17 = vcombine.low %v4732_v2, %v4748_v0  ;;  %v4752_v48 = vcombine.high %v4732_v2, %v4748_v0 }
0x1138   :  { %v5623_v61 = vadd.f32 %v5621_v10, %v7117_v12 }
0x1139   :  { %6354 = vmatpush3.msra.mxu0 %v4749_v60  ;;  %6359 = vmatpush3.msra.mxu1 %v4750_v15 }
0x113a   :  { %6356 = vmatmul.mubr.msk.f32.vlgmr.msra.gmra.mxu0 %vm578_vm2, %v5101_v4  ;;  %6361 = vmatmul.mubr.msk.f32.vlgmr.msra.gmra.mxu1 %vm578_vm2, %v5102_v24 }
0x113b   :  { %6363 = vmatprep.subr.mxu0 %v6555_v11  ;;  %6368 = vmatprep.subr.mxu1 %v6555_v11 }
0x113c   :  { %6364 = vmatpush3.msra.mxu0 %v4751_v17  ;;  %6369 = vmatpush3.msra.mxu1 %v4752_v48 }
0x113d   :  { %6365 = vmatprep.mubr.msk.f32.mxu0 %vm6556_vm1, %v6555_v11  ;;  %6370 = vmatprep.mubr.msk.f32.mxu1 %vm6556_vm1, %v6555_v11 }
0x113e   :  { %6366 = vmatmul.mubr.msk.f32.vlgmr.msra.gmra.mxu0 %vm578_vm2, %v5103_v50  ;;  %6371 = vmatmul.mubr.msk.f32.vlgmr.msra.gmra.mxu1 %vm578_vm2, %v5104_v3 }
0x113f   :  { %6373 = vmatprep.subr.mxu0 %v6555_v11  ;;  %6381 = vmatprep.mubr.msk.f32.mxu0 %vm6556_vm1, %v6555_v11 }
0x1140   :  { %6374 = vmatpush3.msra.mxu0 %v7377_v9 }
0x1141   :  { %6375 = vmatprep.subr.mxu0 %v6555_v11 }
0x1142   :  { %6376 = vmatpush3.msra.mxu0 %v7387_v31 }
0x1143   :  { %6377 = vmatprep.subr.mxu0 %v6555_v11 }
0x1144   :  { %6378 = vmatpush3.msra.mxu0 %v7400_v36 }
0x1145   :  { %6379 = vmatprep.subr.mxu0 %v6555_v11 }
0x1146   :  { %6380 = vmatpush3.msra.mxu0 %v7413_v37 }
0x11fa   :  { %v5174_v5 = vpop.f32.mrf.mxu0  ;;  %v5247_v20 = vpop.f32.mrf.mxu1 }
0x11fc   :  { %v6357_v47 = vpop.f32.mrf.mxu0  ;;  %v6362_v51 = vpop.f32.mrf.mxu1 }
0x11fe   :  { %v5320_v19 = vpop.f32.mrf.mxu0  ;;  %v5393_v22 = vpop.f32.mrf.mxu1 }
0x11ff   :  { %v5397_v13 = vcombine.low %v5174_v5, %v5320_v19  ;;  %v5398_v9 = vcombine.high %v5174_v5, %v5320_v19  ;;  %v5413_v27 = vcombine.low %v5247_v20, %v5393_v22  ;;  %v5414_v62 = vcombine.high %v5247_v20, %v5393_v22 }
0x1200   :  { %v6367_v28 = vpop.f32.mrf.mxu0  ;;  %v6372_v31 = vpop.f32.mrf.mxu1 }
0x1201   :  { %v5405_v32 = vrot.slane %v5397_v13, %v6679_v21  ;;  %v5412_v36 = vrot.slane %v5398_v9, %v6679_v21  ;;  %v5421_v11 = vrot.slane %v5413_v27, %v6679_v21  ;;  %v5428_v37 = vrot.slane %v5414_v62, %v6679_v21  ;;  %v7558_v62 = vld [vmem:[%s7637_s5] ss:$0 sm:$0xff] }
0x1203   :  { %v5429_v33 = vcombine.low %v5405_v32, %v5421_v11  ;;  %v5430_v46 = vcombine.high %v5405_v32, %v5421_v11  ;;  %v5445_v38 = vcombine.low %v5412_v36, %v5428_v37  ;;  %v5446_v8 = vcombine.high %v5412_v36, %v5428_v37  ;;  %v7564_v32 = vld [vmem:[%s7638_s6] ss:$0 sm:$0xff] }
0x1205   :  { %v5437_v49 = vrot.slane %v5429_v33, %v6689_v29  ;;  %v5444_v59 = vrot.slane %v5430_v46, %v6689_v29  ;;  %v5453_v39 = vrot.slane %v5445_v38, %v6689_v29  ;;  %v5460_v53 = vrot.slane %v5446_v8, %v6689_v29  ;;  %v5672_v8 = vld [vmem:[%s7639_s7 + $0x18] sm:$0xff] }
0x1206   :  { %6384 = vmatprep.subr.mxu1 %v5672_v8 }
0x1207   :  { %v5465_v40 = vcombine.low %v5437_v49, %v5444_v59  ;;  %v6016_v41 = vcombine.high %v5437_v49, %v5444_v59  ;;  %v5481_v42 = vcombine.low %v5453_v39, %v5460_v53  ;;  %v6017_v44 = vcombine.high %v5453_v39, %v5460_v53  ;;  %v5671_v49 = vld [vmem:[%s7639_s7 + $0x10] sm:$0xff]  ;;  %6385 = vmatpush3.msra.mxu1 %v5672_v8  ;;  %v5670_v59 = vld [vmem:[%s7639_s7 + $0x8] sm:$0xff]  ;;  %v5669_v39 = vld [vmem:[%s7639_s7] sm:$0xff] }
0x1208   :  { %6386 = vmatprep.subr.mxu1 %v5671_v49  ;;  %v5770_v53 = vld [vmem:[%s7641_s9 + $0x38] sm:$0xff] }
0x1209   :  { %v5472_v45 = vrot.slane %v5465_v40, %v6679_v21  ;;  %v5480_v43 = vrot.slane %v6016_v41, %v6679_v21  ;;  %v5488_v52 = vrot.slane %v5481_v42, %v6679_v21  ;;  %v5496_v54 = vrot.slane %v6017_v44, %v6679_v21  ;;  %6387 = vmatpush3.msra.mxu1 %v5671_v49  ;;  %v5769_v40 = vld [vmem:[%s7641_s9 + $0x30] sm:$0xff]  ;;  %v5768_v41 = vld [vmem:[%s7641_s9 + $0x28] sm:$0xff]  ;;  %v5767_v42 = vld [vmem:[%s7641_s9 + $0x20] sm:$0xff] }
0x120a   :  { %6388 = vmatprep.subr.mxu1 %v5670_v59  ;;  %6395 = vmatprep.subr.mxu0 %v5770_v53 }
0x120b   :  { %v5498_v55 = vcombine.high %v5472_v45, %v5480_v43  ;;  %v5514_v56 = vcombine.high %v5488_v52, %v5496_v54  ;;  %v5497_v57 = vcombine.low %v5472_v45, %v5480_v43  ;;  %v5513_v58 = vcombine.low %v5488_v52, %v5496_v54  ;;  %6389 = vmatpush3.msra.mxu1 %v5670_v59 }
0x120c   :  { %6390 = vmatprep.subr.mxu1 %v5669_v39 }
0x120d   :  { %v5512_v14 = vrot.slane %v5498_v55, %v6689_v29  ;;  %v5528_v34 = vrot.slane %v5514_v56, %v6689_v29  ;;  %v5505_v1 = vrot.slane %v5497_v57, %v6689_v29  ;;  %v5521_v25 = vrot.slane %v5513_v58, %v6689_v29  ;;  %6391 = vmatpush3.msra.mxu1 %v5669_v39 }
0x120e   :  { %v5625_v29 = vsel %vm54_vm0, %v5623_v61, 0.0 }
0x120f   :  { %v5531_v18 = vcombine.low %v5512_v14, %v5528_v34  ;;  %v5530_v26 = vcombine.high %v5505_v1, %v5521_v25  ;;  %v5529_v23 = vcombine.low %v5505_v1, %v5521_v25  ;;  %v5532_v21 = vcombine.high %v5512_v14, %v5528_v34  ;;  %v5766_v25 = vld [vmem:[%s7641_s9 + $0x18] sm:$0xff] }
0x1211   :  { %5538 = vrot.lane.b32.xlu0 %v5531_v18, %s6560_s23  ;;  %5534 = vrot.lane.b32.xlu1 %v5530_v26, %s6561_s24  ;;  %v5765_v18 = vld [vmem:[%s7641_s9 + $0x10] sm:$0xff]  ;;  %v5764_v26 = vld [vmem:[%s7641_s9 + $0x8] sm:$0xff] }
0x1215   :  { %5542 = vrot.lane.b32.xlu1 %v5532_v21, %s6562_s25  ;;  %v6021_v21 = vld [vmem:[%s7640_s8] ss:$0 sm:$0xff]  ;;  %s6563_s8 = smov [#allocation2]  }
0x1230   :  { %5626 = vadd.xlane.f32.xlu0 %v5625_v29 }
0x1283   :  { %v5535_v35 = vpop.permute.xlu1 %5534  ;;  %v5539_v2 = vpop.permute.xlu0 %5538 }
0x1284   :  { %v5545_v0 = vsel %vm578_vm2, %v5529_v23, %v5535_v35  ;;  %v5763_v23 = vld [vmem:[%s7641_s9] sm:$0xff]  ;;  %s5913_s9 = sshll.u32 %s6563_s8, 4  ;;  %s5914_s9 = int_to_ptr.vmem [resolvable:$true] %s5913_s9 }
0x1285   :  { %v5546_v60 = vsel %vm1372_vm3, %v5545_v0, %v5539_v2  ;;  %v6024_v0 = vld [vmem:[%s7642_s10] ss:$0 sm:$0xff]  ;;  %s6529_s10 = scalar_lea.vmem %s5914_s9, 256  ;;  %p6534_p1 = scmp.lt.s32.totalorder %s5914_s9, %s5914_s9 }
0x1286   :  { %p6530_p0 = scmp.ne.s32.totalorder %s5914_s9, %s6529_s10  ;;  %p6535_p2 = scmp.lt.s32.totalorder %s6529_s10, %s6529_s10 }
0x1287   :  { %v5543_v7 = vpop.permute.xlu1 %5542 }
0x1288   :  { %v5547_v15 = vsel %vm1374_vm4, %v5546_v60, %v5543_v7  ;;  %p6536_p3 = por %p6535_p2, %p6534_p1 }
0x1289   :  { %6382 = vmatmul.mubr.msk.f32.vlgmr.msra.gmra.mxu0 %vm54_vm0, %v5547_v15 }
0x128a   :  { %6396 = vmatpush3.msra.mxu0 %v5770_v53  ;;  %p6537_p4 = pnand %p6536_p3, %p6530_p0 }
0x128b   :  { %6397 = vmatprep.subr.mxu0 %v5769_v40 }
0x128c   :  { %6398 = vmatpush3.msra.mxu0 %v5769_v40 }
0x128d   :  { %6399 = vmatprep.subr.mxu0 %v5768_v41 }
0x128e   :  { %6400 = vmatpush3.msra.mxu0 %v5768_v41 }
0x128f   :  { %6401 = vmatprep.subr.mxu0 %v5767_v42 }
0x1290   :  { %6402 = vmatpush3.msra.mxu0 %v5767_v42 }
0x1291   :  { %6403 = vmatprep.subr.mxu0 %v5766_v25 }
0x1292   :  { %6404 = vmatpush3.msra.mxu0 %v5766_v25 }
0x1293   :  { %6405 = vmatprep.subr.mxu0 %v5765_v18 }
0x1294   :  { %6406 = vmatpush3.msra.mxu0 %v5765_v18 }
0x1295   :  { %6407 = vmatprep.subr.mxu0 %v5764_v26 }
0x1296   :  { %6408 = vmatpush3.msra.mxu0 %v5764_v26 }
0x1297   :  { %6409 = vmatprep.subr.mxu0 %v5763_v23 }
0x1298   :  { %6410 = vmatpush3.msra.mxu0 %v5763_v23 }
0x12b9   :  { %v5627_v4 = vpop.xlane.xlu0 %5626 }
0x12ba   :  { %v5631_v24 = vmul.f32 0.03125, %v5627_v4 }
0x12bc   :  { %v5633_v6 = vsub.f32 %v5623_v61, %v5631_v24 }
0x12be   :  { %v5635_v16 = vmul.f32 %v5633_v6, %v5633_v6 }
0x12c0   :  { %v5637_v12 = vsel %vm54_vm0, %v5635_v16, 0.0 }
0x12c1   :  { %5638 = vadd.xlane.f32.xlu0 %v5637_v12 }
0x1349   :  { %v5617_v17 = vpop.f32.mrf.mxu0 }
0x134a   :  { %v5622_v48 = vadd.f32 %v6526_v63, %v5617_v17  ;;  %v5639_v50 = vpop.xlane.xlu0 %5638 }
0x134b   :  { %v5643_v3 = vmul.f32 0.032258064, %v5639_v50  ;;  %v6383_v5 = vpop.f32.mrf.mxu0 }
0x134c   :  { %v5624_v20 = vadd.f32 %v5622_v48, %v7135_v30  ;;  %v5659_v30 = vmul.f32 %v7558_v62, %v5633_v6 }
0x134d   :  { %6500 = vrsqrt.f32 %v5643_v3  ;;  %vm5647_vm9 = vcmp.eq.f32.partialorder %v5643_v3, inf  ;;  %v5650_v22 = vand.u32 2147483648, %v5643_v3  ;;  %vm5649_vm10 = vcmp.eq.f32.partialorder %v5643_v3, 0.0 }
0x134e   :  { %v5628_v47 = vsel %vm54_vm0, %v5624_v20, 0.0 }
0x134f   :  { %5629 = vadd.xlane.f32.xlu1 %v5628_v47 }
0x135a   :  { %v6501_v51 = vpop.eup %6500 }
0x135b   :  { %v5646_v19 = vmul.f32 %v6501_v51, %v5643_v3 }
0x135d   :  { %v5648_v13 = vsel %vm5647_vm9, %v5643_v3, %v5646_v19 }
0x135e   :  { %v5651_v9 = vsel %vm5649_vm10, %v5650_v22, %v5648_v13 }
0x135f   :  { %v6019_v27 = vadd.f32 -1e-06, %v5651_v9 }
0x1361   :  { %6502 = vrcp.f32 %v6019_v27 }
0x136e   :  { %v6503_v28 = vpop.eup %6502 }
0x136f   :  { %v5664_v31 = vmul.f32 %v6503_v28, %v5659_v30 }
0x1371   :  { %v7567_v36 = vadd.f32 %v7564_v32, %v5664_v31 }
0x1373   :  { %6392 = vmatprep.mubr.msk.f32.mxu1 %vm54_vm0, %v7567_v36 }
0x13d8   :  { %v5630_v11 = vpop.xlane.xlu1 %5629 }
0x13d9   :  { %v5632_v37 = vmul.f32 0.03125, %v5630_v11 }
0x13db   :  { %v5634_v33 = vsub.f32 %v5624_v20, %v5632_v37 }
0x13dd   :  { %v5636_v46 = vmul.f32 %v5634_v33, %v5634_v33  ;;  %v5660_v58 = vmul.f32 %v7558_v62, %v5634_v33 }
0x13df   :  { %v5640_v38 = vsel %vm54_vm0, %v5636_v46, 0.0 }
0x13e0   :  { %5641 = vadd.xlane.f32.xlu0 %v5640_v38 }
0x1469   :  { %v5642_v44 = vpop.xlane.xlu0 %5641 }
0x146a   :  { %v5644_v45 = vmul.f32 0.032258064, %v5642_v44 }
0x146c   :  { %6504 = vrsqrt.f32 %v5644_v45  ;;  %vm5654_vm11 = vcmp.eq.f32.partialorder %v5644_v45, inf  ;;  %v5657_v54 = vand.u32 2147483648, %v5644_v45  ;;  %vm5656_vm12 = vcmp.eq.f32.partialorder %v5644_v45, 0.0 }
0x1479   :  { %v6505_v43 = vpop.eup %6504 }
0x147a   :  { %v5653_v52 = vmul.f32 %v6505_v43, %v5644_v45 }
0x147c   :  { %v5655_v55 = vsel %vm5654_vm11, %v5644_v45, %v5653_v52 }
0x147d   :  { %v5658_v56 = vsel %vm5656_vm12, %v5657_v54, %v5655_v55 }
0x147e   :  { %v6020_v57 = vadd.f32 -1e-06, %v5658_v56 }
0x1480   :  { %6506 = vrcp.f32 %v6020_v57 }
0x148d   :  { %v6507_v14 = vpop.eup %6506 }
0x148e   :  { %v5666_v34 = vmul.f32 %v6507_v14, %v5660_v58 }
0x1490   :  { %v5668_v1 = vadd.f32 %v7564_v32, %v5666_v34 }
0x1492   :  { %6393 = vmatmul.mubr.msk.f32.vlgmr.msra.gmra.mxu1 %vm54_vm0, %v5668_v1 }
0x1552   :  { %v6394_v63 = vpop.f32.mrf.mxu1 }
0x1553   :  { %v5758_v10 = vadd.f32 %v6394_v63, %v6021_v21 }
0x1554   :  { %v5752_v61 = vpop.f32.mrf.mxu1 }
0x1555   :  { %v5753_v29 = vadd.f32 %v6021_v21, %v5752_v61  ;;  %v5762_v2 = vmax.f32 %v5758_v10, 0.0 }
0x1557   :  { %v5761_v35 = vmax.f32 %v5753_v29, 0.0 }
0x1559   :  { %6411 = vmatprep.mubr.msk.f32.mxu0 %vm5778_vm13, %v5761_v35 }
0x155a   :  { %6412 = vmatmul.mubr.msk.f32.vlgmr.msra.gmra.mxu0 %vm5778_vm13, %v5762_v2 }
0x161a   :  { %v6413_v7 = vpop.f32.mrf.mxu0 }
0x161b   :  { %v5857_v60 = vadd.f32 %v6413_v7, %v6024_v0 }
0x161c   :  { %v5851_v15 = vpop.f32.mrf.mxu0 }
0x161d   :  { %v5861_v4 = vadd.f32 %v5857_v60, %v5668_v1  ;;  %v5852_v24 = vadd.f32 %v6024_v0, %v5851_v15 }
0x161f   :  { %v5865_v6 = vsel %vm54_vm0, %v5861_v4, 0.0  ;;  %v5860_v16 = vadd.f32 %v5852_v24, %v7567_v36 }
0x1620   :  { %5866 = vadd.xlane.f32.xlu0 %v5865_v6 }
0x1621   :  { %v5862_v12 = vsel %vm54_vm0, %v5860_v16, 0.0 }
0x1622   :  { %5863 = vadd.xlane.f32.xlu1 %v5862_v12 }
0x16a9   :  { %v5867_v17 = vpop.xlane.xlu0 %5866 }
0x16aa   :  { %v5869_v48 = vmul.f32 0.03125, %v5867_v17 }
0x16ab   :  { %v5864_v50 = vpop.xlane.xlu1 %5863 }
0x16ac   :  { %v5871_v3 = vsub.f32 %v5861_v4, %v5869_v48  ;;  %v5868_v5 = vmul.f32 0.03125, %v5864_v50 }
0x16ae   :  { %v5870_v20 = vsub.f32 %v5860_v16, %v5868_v5  ;;  %v5873_v47 = vmul.f32 %v5871_v3, %v5871_v3  ;;  %v5897_v53 = vmul.f32 %v7558_v62, %v5871_v3 }
0x16b0   :  { %v5877_v51 = vsel %vm54_vm0, %v5873_v47, 0.0  ;;  %v5872_v19 = vmul.f32 %v5870_v20, %v5870_v20  ;;  %v5896_v42 = vmul.f32 %v7558_v62, %v5870_v20 }
0x16b1   :  { %5878 = vadd.xlane.f32.xlu0 %v5877_v51 }
0x16b2   :  { %v5874_v22 = vsel %vm54_vm0, %v5872_v19, 0.0 }
0x16b3   :  { %5875 = vadd.xlane.f32.xlu1 %v5874_v22 }
0x173a   :  { %v5879_v13 = vpop.xlane.xlu0 %5878 }
0x173b   :  { %v5881_v9 = vmul.f32 0.032258064, %v5879_v13 }
0x173c   :  { %v5876_v27 = vpop.xlane.xlu1 %5875 }
0x173d   :  { %6508 = vrsqrt.f32 %v5881_v9  ;;  %v5880_v30 = vmul.f32 0.032258064, %v5876_v27  ;;  %vm5891_vm14 = vcmp.eq.f32.partialorder %v5881_v9, inf  ;;  %v5894_v36 = vand.u32 2147483648, %v5881_v9 }
0x173e   :  { %vm5893_vm15 = vcmp.eq.f32.partialorder %v5881_v9, 0.0 }
0x173f   :  { %6510 = vrsqrt.f32 %v5880_v30  ;;  %vm5884_vm1 = vcmp.eq.f32.partialorder %v5880_v30, inf  ;;  %v5887_v8 = vand.u32 2147483648, %v5880_v30  ;;  %vm5886_vm2 = vcmp.eq.f32.partialorder %v5880_v30, 0.0 }
0x174a   :  { %v6509_v28 = vpop.eup %6508 }
0x174b   :  { %v5890_v31 = vmul.f32 %v6509_v28, %v5881_v9 }
0x174c   :  { %v6511_v11 = vpop.eup %6510 }
0x174d   :  { %v5892_v37 = vsel %vm5891_vm14, %v5881_v9, %v5890_v31  ;;  %v5883_v46 = vmul.f32 %v6511_v11, %v5880_v30 }
0x174e   :  { %v5895_v33 = vsel %vm5893_vm15, %v5894_v36, %v5892_v37 }
0x174f   :  { %v6028_v38 = vadd.f32 -1e-06, %v5895_v33  ;;  %v5885_v49 = vsel %vm5884_vm1, %v5880_v30, %v5883_v46 }
0x1750   :  { %v5888_v59 = vsel %vm5886_vm2, %v5887_v8, %v5885_v49 }
0x1751   :  { %6512 = vrcp.f32 %v6028_v38  ;;  %v6027_v39 = vadd.f32 -1e-06, %v5888_v59 }
0x1753   :  { %6514 = vrcp.f32 %v6027_v39 }
0x175e   :  { %v6513_v40 = vpop.eup %6512 }
0x175f   :  { %v5903_v41 = vmul.f32 %v6513_v40, %v5897_v53 }
0x1760   :  { %v6515_v44 = vpop.eup %6514 }
0x1761   :  { %v5905_v45 = vadd.f32 %v7564_v32, %v5903_v41  ;;  %v5901_v43 = vmul.f32 %v6515_v44, %v5896_v42 }
0x1763   :  { %5907 = vst.msk [vmem:[#allocation2 + $0x8] sm:$0xff] %vm54_vm0, %v5905_v45  ;;  %v5904_v52 = vadd.f32 %v7564_v32, %v5901_v43 }
0x1765   :  { %5906 = vst.msk [vmem:[#allocation2] sm:$0xff] %vm54_vm0, %v5904_v52 }
0x1766   :  { %6540 = shalt.err (!%p6537_p4)
}
0x1767   :  { %s6564_s1 = smov 128  }
0x1768   :  { %5919 = dma.vmem_to_hbm [thread:$0]  %s5914_s9, 256, %s7643_s11, [#allocation3], %s6564_s1, %s6564_s1, %s6561_s24  }
0x1769   :  { %6549 = dma.done.wait [#allocation3], 256  }
0x176a   :  { %6550 = vsyncadd [#allocation3], 4294967040 }
0x176b   :  { %5923 = vsyncpa [#allocation3], 1 }

// kernel: decoder_forward.2
= control target key start
LH: loop header
LB: loop body
LE: loop exit
PB: predicated region body
PF: predicated region fallthrough
CT: control target
= control target key end

     0   :  { %16 = vsyncpa [#allocation3], 0  ;;  %s7796_s0 = inlined_call_operand.vmem [shape: f32[16,32], index: 0, kind: input, shape index: {}]   ;;  %s7797_s1 = inlined_call_operand.hbm [shape: f32[16,32], index: 1, kind: input, shape index: {}]   ;;  %s7798_s2 = inlined_call_operand.vmem [shape: f32[32,96], index: 2, kind: input, shape index: {}]   ;;  %s7799_s3 = inlined_call_operand.vmem [shape: f32[32,32], index: 3, kind: input, shape index: {}]   ;;  %s7800_s4 = inlined_call_operand.hbm [shape: f32[1,32], index: 4, kind: input, shape index: {}]   ;;  %s7801_s5 = inlined_call_operand.hbm [shape: f32[1,32], index: 5, kind: input, shape index: {}]   ;;  %s7802_s6 = inlined_call_operand.hbm [shape: f32[1,32], index: 6, kind: input, shape index: {}]   ;;  %s7803_s7 = inlined_call_operand.vmem [shape: f32[32,64], index: 7, kind: input, shape index: {}]   ;;  %s7804_s8 = inlined_call_operand.hbm [shape: f32[1,64], index: 8, kind: input, shape index: {}]   ;;  %s7805_s9 = inlined_call_operand.vmem [shape: f32[64,32], index: 9, kind: input, shape index: {}]   ;;  %s7806_s10 = inlined_call_operand.hbm [shape: f32[1,32], index: 10, kind: input, shape index: {}]   ;;  %s7807_s11 = inlined_call_operand.vmem [shape: f32[16,32], index: 11, kind: output, shape index: {}]  }
   0x1   :  { %17 = vsyncpa [#allocation5], 0 }
   0x2   :  { %18 = vsyncpa [#allocation8], 0 }
   0x3   :  { %19 = vsyncpa [#allocation11], 0  ;;  %s6725_s17 = smov [#allocation4]   ;;  %s6726_s19 = smov [#allocation7]  }
   0x4   :  { %s44_s18 = sshll.u32 %s6725_s17, 4  ;;  %s64_s20 = sshll.u32 %s6726_s19, 4  ;;  %s45_s18 = int_to_ptr.vmem [resolvable:$true] %s44_s18  ;;  %s65_s20 = int_to_ptr.vmem [resolvable:$true] %s64_s20 }
   0x5   :  { %s6605_s21 = scalar_lea.vmem %s45_s18, 16  ;;  %s6609_s22 = scalar_lea.vmem %s45_s18, 32 }
   0x6   :  { %p6606_p0 = scmp.ne.s32.totalorder %s45_s18, %s6605_s21  ;;  %p6610_p1 = scmp.lt.s32.totalorder %s45_s18, %s45_s18 }
   0x7   :  { %p6611_p2 = scmp.lt.s32.totalorder %s6609_s22, %s6605_s21 }
   0x9   :  { %p6612_p3 = por %p6611_p2, %p6610_p1 }
   0xb   :  { %p6613_p4 = pnand %p6612_p3, %p6606_p0 }
   0xd   :  { %6616 = shalt.err (!%p6613_p4)
}
   0xe   :  { %47 = dma.hbm_to_vmem [thread:$0]  %s7800_s4, 16, %s45_s18, [#allocation5]  }
   0xf   :  { %s6625_s25 = scalar_lea.vmem %s65_s20, 16  ;;  %s6629_s26 = scalar_lea.vmem %s65_s20, 32 }
  0x10   :  { %p6626_p5 = scmp.ne.s32.totalorder %s65_s20, %s6625_s25  ;;  %p6630_p6 = scmp.lt.s32.totalorder %s65_s20, %s65_s20 }
  0x11   :  { %p6631_p7 = scmp.lt.s32.totalorder %s6629_s26, %s6625_s25 }
  0x13   :  { %p6632_p8 = por %p6631_p7, %p6630_p6 }
  0x15   :  { %p6633_p9 = pnand %p6632_p8, %p6626_p5 }
  0x17   :  { %6636 = shalt.err (!%p6633_p9)
}
  0x18   :  { %67 = dma.hbm_to_vmem [thread:$0]  %s7802_s6, 16, %s65_s20, [#allocation8]  }
  0x19   :  { %s6727_s29 = smov [#allocation2]  }
  0x1a   :  { %s27_s30 = sshll.u32 %s6727_s29, 4  ;;  %s28_s30 = int_to_ptr.vmem [resolvable:$true] %s27_s30 }
  0x1b   :  { %s6645_s12 = scalar_lea.vmem %s28_s30, 256  ;;  %p6650_p11 = scmp.lt.s32.totalorder %s28_s30, %s28_s30 }
  0x1c   :  { %p6646_p10 = scmp.ne.s32.totalorder %s28_s30, %s6645_s12  ;;  %p6651_p12 = scmp.lt.s32.totalorder %s6645_s12, %s6645_s12 }
  0x1e   :  { %p6652_p13 = por %p6651_p12, %p6650_p11 }
  0x20   :  { %p6653_p0 = pnand %p6652_p13, %p6646_p10 }
  0x22   :  { %6656 = shalt.err (!%p6653_p0)
}
  0x23   :  { %s6728_s4 = smov 128   ;;  %s6729_s13 = smov 8  }
  0x24   :  { %33 = dma.hbm_to_vmem [thread:$0]  %s7797_s1, 256, %s28_s30, [#allocation3], %s6728_s4, %s6728_s4, %s6729_s13  }
  0x25   :  { %s6730_s16 = smov [#allocation6]   ;;  %s6731_s6 = smov [#allocation9]  }
  0x26   :  { %s54_s17 = sshll.u32 %s6730_s16, 4  ;;  %s76_s18 = sshll.u32 %s6731_s6, 4  ;;  %s55_s17 = int_to_ptr.vmem [resolvable:$true] %s54_s17  ;;  %s77_s18 = int_to_ptr.vmem [resolvable:$true] %s76_s18 }
  0x27   :  { %s6665_s19 = scalar_lea.vmem %s55_s17, 16  ;;  %s6669_s20 = scalar_lea.vmem %s55_s17, 32 }
  0x28   :  { %p6666_p1 = scmp.ne.s32.totalorder %s55_s17, %s6665_s19  ;;  %p6670_p2 = scmp.lt.s32.totalorder %s55_s17, %s55_s17 }
  0x29   :  { %p6671_p3 = scmp.lt.s32.totalorder %s6669_s20, %s6665_s19 }
  0x2b   :  { %p6672_p4 = por %p6671_p3, %p6670_p2 }
  0x2d   :  { %p6673_p5 = pnand %p6672_p4, %p6666_p1 }
  0x2f   :  { %6676 = shalt.err (!%p6673_p5)
}
  0x30   :  { %57 = dma.hbm_to_vmem [thread:$0]  %s7801_s5, 16, %s55_s17, [#allocation5]  }
  0x31   :  { %s6685_s23 = scalar_lea.vmem %s77_s18, 16  ;;  %s6689_s1 = scalar_lea.vmem %s77_s18, 32 }
  0x32   :  { %p6686_p6 = scmp.ne.s32.totalorder %s77_s18, %s6685_s23  ;;  %p6690_p7 = scmp.lt.s32.totalorder %s77_s18, %s77_s18 }
  0x33   :  { %p6691_p8 = scmp.lt.s32.totalorder %s6689_s1, %s6685_s23 }
  0x35   :  { %p6692_p9 = por %p6691_p8, %p6690_p7 }
  0x37   :  { %p6693_p10 = pnand %p6692_p9, %p6686_p6 }
  0x39   :  { %6696 = shalt.err (!%p6693_p10)
}
  0x3a   :  { %79 = dma.hbm_to_vmem [thread:$0]  %s7804_s8, 16, %s77_s18, [#allocation8]  }
  0x3b   :  { %s6732_s26 = smov [#allocation10]  }
  0x3c   :  { %s88_s27 = sshll.u32 %s6732_s26, 4  ;;  %s89_s27 = int_to_ptr.vmem [resolvable:$true] %s88_s27 }
  0x3d   :  { %s6705_s28 = scalar_lea.vmem %s89_s27, 16  ;;  %s6709_s29 = scalar_lea.vmem %s89_s27, 32 }
  0x3e   :  { %p6706_p11 = scmp.ne.s32.totalorder %s89_s27, %s6705_s28  ;;  %p6710_p12 = scmp.lt.s32.totalorder %s89_s27, %s89_s27 }
  0x3f   :  { %p6711_p13 = scmp.lt.s32.totalorder %s6709_s29, %s6705_s28 }
  0x41   :  { %p6712_p0 = por %p6711_p13, %p6710_p12 }
  0x43   :  { %p6713_p1 = pnand %p6712_p0, %p6706_p11 }
  0x45   :  { %6716 = shalt.err (!%p6713_p1)
}
  0x46   :  { %91 = dma.hbm_to_vmem [thread:$0]  %s7806_s10, 16, %s89_s27, [#allocation11]  }
  0x47   :  { %6717 = dma.done.wait [#allocation3], 256  }
  0x48   :  { %6718 = vsyncadd [#allocation3], 4294967040 }
  0x49   :  { %6719 = dma.done.wait [#allocation5], 32  }
  0x4a   :  { %6720 = vsyncadd [#allocation5], 4294967264 }
  0x4b   :  { %6721 = dma.done.wait [#allocation8], 32  }
  0x4c   :  { %6722 = vsyncadd [#allocation8], 4294967264 }
  0x4d   :  { %6723 = dma.done.wait [#allocation11], 16  }
  0x4e   :  { %6724 = vsyncadd [#allocation11], 4294967280  ;;  %vm125_vm0 = vcmask 261120   ;;  %v117_v0 = vld [vmem:[%s7798_s2 + $0x18] sm:$0xff]  ;;  %v116_v1 = vld [vmem:[%s7798_s2 + $0x10] sm:$0xff]  ;;  %s6733_s6 = smov 104   ;;  %v222_v14 = vlaneseq }
  0x4f   :  { %6210 = vmatprep.subr.mxu1 %v117_v0  ;;  %v112_v2 = vld [vmem:[#allocation2] sm:$0xff]  ;;  %v115_v3 = vld [vmem:[%s7798_s2 + $0x8] sm:$0xff]  ;;  %s6734_s18 = smov 120   ;;  %s6735_s19 = smov 96   ;;  %v6737_v11 = vmov 0.0   ;;  %vm6738_vm1 = vmmov 0  }
  0x50   :  { %6211 = vmatpush3.msra.mxu1 %v117_v0  ;;  %6218 = vmatprep.mubr.msk.f32.mxu1 %vm125_vm0, %v112_v2  ;;  %v114_v4 = vld [vmem:[%s7798_s2] sm:$0xff]  ;;  %v113_v5 = vld [vmem:[#allocation2 + $0x8] sm:$0xff]  ;;  %s6736_s20 = smov 112   ;;  %v6739_v12 = vmov 1983009808   ;;  %v223_v16 = vshrl.u32 %v222_v14, 7 }
  0x51   :  { %6212 = vmatprep.subr.mxu1 %v116_v1  ;;  %6231 = vmatprep.subr.mxu0 %v6737_v11  ;;  %v220_v13 = vunpack.c.l.s4 %v6739_v12  ;;  %v6740_v17 = vmov 1934713408   ;;  %vm649_vm2 = vcmask 64512   ;;  %s6741_s21 = smov 64   ;;  %s6742_s29 = smov 16   ;;  %vm1443_vm3 = vcmask 130048  }
  0x52   :  { %6213 = vmatpush3.msra.mxu1 %v116_v1  ;;  %6233 = vmatprep.mubr.msk.f32.mxu0 %vm6738_vm1, %v6737_v11  ;;  %v252_v18 = vunpack.c.l.s4 %v6740_v17  ;;  %s6743_s5 = smov 24   ;;  %vm1445_vm4 = vcmask 195584   ;;  %vm5849_vm13 = vcmask 523264  }
  0x53   :  { %6214 = vmatprep.subr.mxu1 %v115_v3  ;;  %v221_v15 = vunpack.c.0.s8 %v220_v13 }
  0x54   :  { %6215 = vmatpush3.msra.mxu1 %v115_v3  ;;  %v253_v24 = vunpack.c.0.s8 %v252_v18 }
  0x55   :  { %6216 = vmatprep.subr.mxu1 %v114_v4  ;;  %v6871_v21 = vsub.s32 %v221_v15, %v223_v16 }
  0x56   :  { %6217 = vmatpush3.msra.mxu1 %v114_v4  ;;  %v6881_v29 = vsub.s32 %v253_v24, %v223_v16 }
  0x57   :  { %6219 = vmatmul.mubr.msk.f32.vlgmr.msra.gmra.mxu1 %vm125_vm0, %v113_v5  ;;  %6221 = vmatprep.subr.mxu1 %v6737_v11 }
  0x58   :  { %6223 = vmatprep.mubr.msk.f32.mxu1 %vm6738_vm1, %v6737_v11 }
 0x117   :  { %v6837_v6 = vpop.f32.mrf.mxu1 }
 0x119   :  { %v6839_v7 = vpop.f32.mrf.mxu1 }
 0x11a   :  { %214 = vrot.lane.b32.xlu1 %v6839_v7, %s6733_s6  ;;  %208 = vrot.lane.b32.xlu0 %v6839_v7, %s6734_s18 }
 0x11e   :  { %353 = vrot.lane.b32.xlu1 %v6839_v7, %s6735_s19  ;;  %211 = vrot.lane.b32.xlu0 %v6839_v7, %s6736_s20 }
 0x18c   :  { %v6849_v8 = vpop.permute.xlu0 %208  ;;  %v6853_v9 = vpop.permute.xlu1 %214 }
 0x18d   :  { %355 = vrot.lane.b32.xlu0 %v6849_v8, %s6735_s19  ;;  %v233_v22 = vcombine.low %v6849_v8, %v6853_v9  ;;  %v234_v23 = vcombine.high %v6849_v8, %v6853_v9 }
 0x18f   :  { %v241_v27 = vrot.slane %v233_v22, %v6871_v21  ;;  %v248_v28 = vrot.slane %v234_v23, %v6871_v21 }
 0x190   :  { %v6855_v10 = vpop.permute.xlu0 %211  ;;  %v354_v30 = vpop.permute.xlu1 %353 }
 0x191   :  { %359 = vrot.lane.b32.xlu0 %v6853_v9, %s6735_s19  ;;  %357 = vrot.lane.b32.xlu1 %v6855_v10, %s6735_s19  ;;  %v217_v19 = vcombine.low %v6839_v7, %v6855_v10  ;;  %v218_v20 = vcombine.high %v6839_v7, %v6855_v10 }
 0x193   :  { %v225_v25 = vrot.slane %v217_v19, %v6871_v21  ;;  %v232_v26 = vrot.slane %v218_v20, %v6871_v21 }
 0x195   :  { %v249_v31 = vcombine.low %v225_v25, %v241_v27  ;;  %v250_v32 = vcombine.high %v225_v25, %v241_v27  ;;  %v265_v33 = vcombine.low %v232_v26, %v248_v28  ;;  %v266_v34 = vcombine.high %v232_v26, %v248_v28 }
 0x197   :  { %v257_v36 = vrot.slane %v249_v31, %v6881_v29  ;;  %v264_v37 = vrot.slane %v250_v32, %v6881_v29  ;;  %v273_v38 = vrot.slane %v265_v33, %v6881_v29  ;;  %v280_v39 = vrot.slane %v266_v34, %v6881_v29 }
 0x199   :  { %v285_v50 = vcombine.low %v257_v36, %v264_v37  ;;  %v5989_v51 = vcombine.high %v257_v36, %v264_v37  ;;  %v301_v52 = vcombine.low %v273_v38, %v280_v39  ;;  %v5990_v53 = vcombine.high %v273_v38, %v280_v39 }
 0x19b   :  { %v292_v62 = vrot.slane %v285_v50, %v6871_v21  ;;  %v300_v63 = vrot.slane %v5989_v51, %v6871_v21  ;;  %v308_v0 = vrot.slane %v301_v52, %v6871_v21  ;;  %v316_v1 = vrot.slane %v5990_v53, %v6871_v21 }
 0x19d   :  { %v317_v16 = vcombine.low %v292_v62, %v300_v63  ;;  %v333_v17 = vcombine.low %v308_v0, %v316_v1  ;;  %v318_v18 = vcombine.high %v292_v62, %v300_v63  ;;  %v334_v19 = vcombine.high %v308_v0, %v316_v1 }
 0x19f   :  { %v341_v31 = vrot.slane %v333_v17, %v6881_v29  ;;  %v332_v32 = vrot.slane %v318_v18, %v6881_v29  ;;  %v348_v33 = vrot.slane %v334_v19, %v6881_v29 }
 0x1a1   :  { %v351_v37 = vcombine.low %v332_v32, %v348_v33 }
 0x1ff   :  { %v356_v35 = vpop.permute.xlu0 %355 }
 0x203   :  { %v358_v40 = vpop.permute.xlu1 %357  ;;  %v360_v41 = vpop.permute.xlu0 %359 }
 0x204   :  { %v365_v42 = vcombine.low %v354_v30, %v358_v40  ;;  %v366_v43 = vcombine.high %v354_v30, %v358_v40  ;;  %v381_v44 = vcombine.low %v356_v35, %v360_v41  ;;  %v382_v45 = vcombine.high %v356_v35, %v360_v41 }
 0x205   :  { %v325_v30 = vrot.slane %v317_v16, %v6881_v29  ;;  %v352_v41 = vcombine.high %v332_v32, %v348_v33 }
 0x206   :  { %v373_v46 = vrot.slane %v365_v42, %v6871_v21  ;;  %v380_v47 = vrot.slane %v366_v43, %v6871_v21  ;;  %v389_v48 = vrot.slane %v381_v44, %v6871_v21  ;;  %v396_v49 = vrot.slane %v382_v45, %v6871_v21 }
 0x207   :  { %v349_v36 = vcombine.low %v325_v30, %v341_v31  ;;  %v350_v39 = vcombine.high %v325_v30, %v341_v31 }
 0x208   :  { %v397_v54 = vcombine.low %v373_v46, %v389_v48  ;;  %v398_v55 = vcombine.high %v373_v46, %v389_v48  ;;  %v413_v56 = vcombine.low %v380_v47, %v396_v49  ;;  %v414_v57 = vcombine.high %v380_v47, %v396_v49 }
 0x20a   :  { %v405_v58 = vrot.slane %v397_v54, %v6881_v29  ;;  %v412_v59 = vrot.slane %v398_v55, %v6881_v29  ;;  %v421_v60 = vrot.slane %v413_v56, %v6881_v29  ;;  %v428_v61 = vrot.slane %v414_v57, %v6881_v29 }
 0x20c   :  { %v433_v2 = vcombine.low %v405_v58, %v412_v59  ;;  %v5991_v3 = vcombine.high %v405_v58, %v412_v59  ;;  %v449_v4 = vcombine.low %v421_v60, %v428_v61  ;;  %v5992_v5 = vcombine.high %v421_v60, %v428_v61 }
 0x20e   :  { %v440_v12 = vrot.slane %v433_v2, %v6871_v21  ;;  %v448_v13 = vrot.slane %v5991_v3, %v6871_v21  ;;  %v456_v14 = vrot.slane %v449_v4, %v6871_v21  ;;  %v464_v15 = vrot.slane %v5992_v5, %v6871_v21 }
 0x210   :  { %v465_v20 = vcombine.low %v440_v12, %v448_v13  ;;  %v481_v22 = vcombine.low %v456_v14, %v464_v15  ;;  %v466_v23 = vcombine.high %v440_v12, %v448_v13  ;;  %v482_v24 = vcombine.high %v456_v14, %v464_v15 }
 0x212   :  { %v473_v25 = vrot.slane %v465_v20, %v6881_v29  ;;  %v489_v26 = vrot.slane %v481_v22, %v6881_v29  ;;  %v480_v27 = vrot.slane %v466_v23, %v6881_v29  ;;  %v496_v28 = vrot.slane %v482_v24, %v6881_v29 }
 0x214   :  { %v497_v34 = vcombine.low %v473_v25, %v489_v26  ;;  %v499_v35 = vcombine.low %v480_v27, %v496_v28  ;;  %v498_v38 = vcombine.high %v473_v25, %v489_v26  ;;  %v500_v40 = vcombine.high %v480_v27, %v496_v28 }
 0x216   :  { %6222 = vmatpush3.xpose.msk.msra.mxu1 %vm649_vm2, %v497_v34  ;;  %6232 = vmatpush3.xpose.msk.msra.mxu0 %vm649_vm2, %v499_v35 }
 0x217   :  { %6226 = vmatprep.subr.mxu1 %v6737_v11  ;;  %6241 = vmatprep.subr.mxu0 %v6737_v11 }
 0x219   :  { %6224 = vmatmul.mubr.msk.f32.vlgmr.msra.gmra.mxu1 %vm649_vm2, %v349_v36  ;;  %6234 = vmatmul.mubr.msk.f32.vlgmr.msra.gmra.mxu0 %vm649_vm2, %v351_v37 }
 0x21a   :  { %6227 = vmatpush3.xpose.msk.msra.mxu1 %vm649_vm2, %v498_v38  ;;  %6228 = vmatprep.mubr.msk.f32.mxu1 %vm6738_vm1, %v6737_v11 }
 0x21b   :  { %6236 = vmatprep.subr.mxu1 %v6737_v11  ;;  %6243 = vmatprep.mubr.msk.f32.mxu0 %vm6738_vm1, %v6737_v11 }
 0x21d   :  { %6229 = vmatmul.mubr.msk.f32.vlgmr.msra.gmra.mxu1 %vm649_vm2, %v350_v39 }
 0x21e   :  { %6237 = vmatpush3.xpose.msk.msra.mxu1 %vm649_vm2, %v500_v40  ;;  %6238 = vmatprep.mubr.msk.f32.mxu1 %vm6738_vm1, %v6737_v11 }
 0x21f   :  { %6246 = vmatprep.subr.mxu1 %v6737_v11 }
 0x221   :  { %6239 = vmatmul.mubr.msk.f32.vlgmr.msra.gmra.mxu1 %vm649_vm2, %v352_v41 }
 0x222   :  { %6248 = vmatprep.mubr.msk.f32.mxu1 %vm6738_vm1, %v6737_v11 }
 0x2d9   :  { %v722_v42 = vpop.f32.mrf.mxu1  ;;  %v874_v43 = vpop.f32.mrf.mxu0 }
 0x2da   :  { %v954_v44 = vmul.f32 0.35355338, %v722_v42  ;;  %v956_v51 = vmul.f32 0.35355338, %v874_v43 }
 0x2db   :  { %v6225_v45 = vpop.f32.mrf.mxu1  ;;  %v6235_v46 = vpop.f32.mrf.mxu0 }
 0x2dc   :  { %v958_v47 = vsel %vm649_vm2, %v954_v44, -inf  ;;  %v964_v56 = vsel %vm649_vm2, %v956_v51, -inf }
 0x2dd   :  { %959 = vmax.xlane.f32.xlu1 %v958_v47  ;;  %v798_v48 = vpop.f32.mrf.mxu1 }
 0x2de   :  { %v955_v49 = vmul.f32 0.35355338, %v798_v48 }
 0x2df   :  { %v6230_v50 = vpop.f32.mrf.mxu1 }
 0x2e0   :  { %v961_v52 = vsel %vm649_vm2, %v955_v49, -inf }
 0x2e1   :  { %962 = vmax.xlane.f32.xlu0 %v961_v52  ;;  %v950_v53 = vpop.f32.mrf.mxu1 }
 0x2e2   :  { %v957_v54 = vmul.f32 0.35355338, %v950_v53 }
 0x2e3   :  { %v6240_v55 = vpop.f32.mrf.mxu1 }
 0x2e4   :  { %v967_v57 = vsel %vm649_vm2, %v957_v54, -inf }
 0x2e5   :  { %965 = vmax.xlane.f32.xlu0 %v964_v56  ;;  %968 = vmax.xlane.f32.xlu1 %v967_v57 }
 0x2f6   :  { %503 = vrot.lane.b32.xlu1 %v6849_v8, %s6741_s21 }
 0x2fb   :  { %501 = vrot.lane.b32.xlu0 %v6839_v7, %s6741_s21 }
 0x366   :  { %v960_v58 = vpop.xlane.xlu1 %959 }
 0x367   :  { %v970_v59 = vsub.f32 %v954_v44, %v960_v58 }
 0x369   :  { %v974_v60 = vmul.f32 1.442695, %v970_v59 }
 0x36a   :  { %v963_v61 = vpop.xlane.xlu0 %962 }
 0x36b   :  { %6496 = vpow2.f32 %v974_v60  ;;  %v971_v62 = vsub.f32 %v955_v49, %v963_v61 }
 0x36d   :  { %v976_v63 = vmul.f32 1.442695, %v971_v62 }
 0x36e   :  { %v966_v0 = vpop.xlane.xlu0 %965  ;;  %v969_v1 = vpop.xlane.xlu1 %968 }
 0x36f   :  { %6498 = vpow2.f32 %v976_v63  ;;  %v972_v2 = vsub.f32 %v956_v51, %v966_v0  ;;  %v973_v3 = vsub.f32 %v957_v54, %v969_v1 }
 0x371   :  { %v978_v4 = vmul.f32 1.442695, %v972_v2  ;;  %v980_v5 = vmul.f32 1.442695, %v973_v3 }
 0x372   :  { %v502_v18 = vpop.permute.xlu0 %501  ;;  %v504_v19 = vpop.permute.xlu1 %503 }
 0x373   :  { %6500 = vpow2.f32 %v978_v4 }
 0x374   :  { %6502 = vpow2.f32 %v980_v5 }
 0x378   :  { %v6939_v8 = vpop.eup %6496 }
 0x379   :  { %v982_v7 = vsel %vm649_vm2, %v6939_v8, 0.0 }
 0x37a   :  { %983 = vadd.xlane.f32.xlu0 %v982_v7 }
 0x37c   :  { %v6943_v12 = vpop.eup %6498 }
 0x37d   :  { %v985_v13 = vsel %vm649_vm2, %v6943_v12, 0.0 }
 0x37e   :  { %986 = vadd.xlane.f32.xlu1 %v985_v13 }
 0x380   :  { %v6947_v14 = vpop.eup %6500 }
 0x381   :  { %v6949_v15 = vpop.eup %6502  ;;  %v988_v16 = vsel %vm649_vm2, %v6947_v14, 0.0 }
 0x382   :  { %989 = vadd.xlane.f32.xlu0 %v988_v16  ;;  %v991_v17 = vsel %vm649_vm2, %v6949_v15, 0.0 }
 0x383   :  { %992 = vadd.xlane.f32.xlu1 %v991_v17 }
 0x394   :  { %505 = vrot.lane.b32.xlu1 %v6855_v10, %s6741_s21 }
 0x398   :  { %1521 = vrot.lane.b32.xlu1 %v6837_v6, %s6734_s18  ;;  %507 = vrot.lane.b32.xlu0 %v6853_v9, %s6741_s21 }
 0x39c   :  { %1527 = vrot.lane.b32.xlu1 %v6837_v6, %s6733_s6  ;;  %1524 = vrot.lane.b32.xlu0 %v6837_v6, %s6736_s20 }
 0x3a0   :  { %1666 = vrot.lane.b32.xlu0 %v6837_v6, %s6735_s19 }
 0x403   :  { %v984_v20 = vpop.xlane.xlu0 %983 }
 0x404   :  { %6504 = vrcp.f32 %v984_v20 }
 0x407   :  { %v987_v22 = vpop.xlane.xlu1 %986 }
 0x408   :  { %6506 = vrcp.f32 %v987_v22 }
 0x40b   :  { %v990_v10 = vpop.xlane.xlu0 %989 }
 0x40c   :  { %v993_v23 = vpop.xlane.xlu1 %992  ;;  %6508 = vrcp.f32 %v990_v10 }
 0x40d   :  { %6510 = vrcp.f32 %v993_v23 }
 0x40f   :  { %v508_v24 = vpop.permute.xlu0 %507 }
 0x410   :  { %v529_v25 = vcombine.low %v504_v19, %v508_v24  ;;  %v530_v26 = vcombine.high %v504_v19, %v508_v24  ;;  %v506_v27 = vpop.permute.xlu1 %505 }
 0x411   :  { %v513_v9 = vcombine.low %v502_v18, %v506_v27  ;;  %v514_v28 = vcombine.high %v502_v18, %v506_v27  ;;  %v6505_v1 = vpop.eup %6504 }
 0x412   :  { %v537_v30 = vrot.slane %v529_v25, %v6871_v21  ;;  %v544_v31 = vrot.slane %v530_v26, %v6871_v21  ;;  %v998_v26 = vmul.f32 %v6505_v1, %v6939_v8 }
 0x413   :  { %v521_v32 = vrot.slane %v513_v9, %v6871_v21  ;;  %v528_v33 = vrot.slane %v514_v28, %v6871_v21  ;;  %v6971_v34 = vpop.permute.xlu0 %1524 }
 0x414   :  { %v6973_v35 = vpop.permute.xlu1 %1521  ;;  %1670 = vrot.lane.b32.xlu0 %v6971_v34, %s6735_s19  ;;  %v1530_v44 = vcombine.low %v6837_v6, %v6971_v34  ;;  %v1531_v45 = vcombine.high %v6837_v6, %v6971_v34 }
 0x415   :  { %v545_v36 = vcombine.low %v521_v32, %v537_v30  ;;  %v546_v37 = vcombine.high %v521_v32, %v537_v30  ;;  %v561_v38 = vcombine.low %v528_v33, %v544_v31  ;;  %v562_v39 = vcombine.high %v528_v33, %v544_v31  ;;  %1668 = vrot.lane.b32.xlu1 %v6973_v35, %s6735_s19  ;;  %v6507_v18 = vpop.eup %6506 }
 0x416   :  { %v1538_v57 = vrot.slane %v1530_v44, %v6871_v21  ;;  %v1545_v58 = vrot.slane %v1531_v45, %v6871_v21  ;;  %v999_v32 = vmul.f32 %v6507_v18, %v6943_v12 }
 0x417   :  { %v553_v40 = vrot.slane %v545_v36, %v6881_v29  ;;  %v560_v41 = vrot.slane %v546_v37, %v6881_v29  ;;  %v569_v42 = vrot.slane %v561_v38, %v6881_v29  ;;  %v576_v43 = vrot.slane %v562_v39, %v6881_v29  ;;  %v1667_v44 = vpop.permute.xlu0 %1666 }
 0x418   :  { %v6987_v46 = vpop.permute.xlu1 %1527 }
 0x419   :  { %v581_v47 = vcombine.low %v553_v40, %v560_v41  ;;  %v5993_v48 = vcombine.high %v553_v40, %v560_v41  ;;  %v597_v49 = vcombine.low %v569_v42, %v576_v43  ;;  %v5994_v50 = vcombine.high %v569_v42, %v576_v43  ;;  %1672 = vrot.lane.b32.xlu1 %v6987_v46, %s6735_s19  ;;  %v6509_v23 = vpop.eup %6508 }
 0x41a   :  { %v1546_v51 = vcombine.low %v6973_v35, %v6987_v46  ;;  %v1547_v52 = vcombine.high %v6973_v35, %v6987_v46  ;;  %v6511_v31 = vpop.eup %6510  ;;  %v1000_v39 = vmul.f32 %v6509_v23, %v6947_v14 }
 0x41b   :  { %v588_v53 = vrot.slane %v581_v47, %v6871_v21  ;;  %v596_v54 = vrot.slane %v5993_v48, %v6871_v21  ;;  %v604_v55 = vrot.slane %v597_v49, %v6871_v21  ;;  %v612_v56 = vrot.slane %v5994_v50, %v6871_v21 }
 0x41c   :  { %v1554_v59 = vrot.slane %v1546_v51, %v6871_v21  ;;  %v1561_v60 = vrot.slane %v1547_v52, %v6871_v21  ;;  %v1001_v41 = vmul.f32 %v6511_v31, %v6949_v15 }
 0x41d   :  { %v613_v61 = vcombine.low %v588_v53, %v596_v54  ;;  %v629_v62 = vcombine.low %v604_v55, %v612_v56  ;;  %v614_v63 = vcombine.high %v588_v53, %v596_v54  ;;  %v630_v0 = vcombine.high %v604_v55, %v612_v56 }
 0x41e   :  { %v1562_v2 = vcombine.low %v1538_v57, %v1554_v59  ;;  %v1563_v3 = vcombine.high %v1538_v57, %v1554_v59  ;;  %v1578_v4 = vcombine.low %v1545_v58, %v1561_v60  ;;  %v1579_v5 = vcombine.high %v1545_v58, %v1561_v60 }
 0x41f   :  { %v621_v7 = vrot.slane %v613_v61, %v6881_v29  ;;  %v637_v13 = vrot.slane %v629_v62, %v6881_v29  ;;  %v628_v16 = vrot.slane %v614_v63, %v6881_v29  ;;  %v644_v17 = vrot.slane %v630_v0, %v6881_v29 }
 0x420   :  { %v1570_v19 = vrot.slane %v1562_v2, %v6881_v29  ;;  %v1577_v20 = vrot.slane %v1563_v3, %v6881_v29  ;;  %v1586_v22 = vrot.slane %v1578_v4, %v6881_v29  ;;  %v1593_v10 = vrot.slane %v1579_v5, %v6881_v29 }
 0x421   :  { %v645_v24 = vcombine.low %v621_v7, %v637_v13  ;;  %v646_v25 = vcombine.high %v621_v7, %v637_v13  ;;  %v647_v33 = vcombine.low %v628_v16, %v644_v17  ;;  %v648_v12 = vcombine.high %v628_v16, %v644_v17 }
 0x422   :  { %v1598_v27 = vcombine.low %v1570_v19, %v1577_v20  ;;  %v6010_v9 = vcombine.high %v1570_v19, %v1577_v20  ;;  %v1614_v28 = vcombine.low %v1586_v22, %v1593_v10  ;;  %v6011_v30 = vcombine.high %v1586_v22, %v1593_v10 }
 0x423   :  { %6242 = vmatpush3.msra.mxu0 %v645_v24  ;;  %6247 = vmatpush3.msra.mxu1 %v646_v25 }
 0x424   :  { %v7014_v36 = vrot.slane %v1598_v27, %v6871_v21  ;;  %v7017_v37 = vrot.slane %v6010_v9, %v6871_v21  ;;  %v7020_v38 = vrot.slane %v1614_v28, %v6871_v21  ;;  %v7023_v8 = vrot.slane %v6011_v30, %v6871_v21  ;;  %6244 = vmatmul.mubr.msk.f32.vlgmr.msra.gmra.mxu0 %vm649_vm2, %v998_v26 }
 0x425   :  { %6249 = vmatmul.mubr.msk.f32.vlgmr.msra.gmra.mxu1 %vm649_vm2, %v999_v32  ;;  %6251 = vmatprep.subr.mxu0 %v6737_v11 }
 0x426   :  { %6256 = vmatprep.subr.mxu1 %v6737_v11  ;;  %6252 = vmatpush3.msra.mxu0 %v647_v33  ;;  %v1631_v40 = vcombine.high %v7014_v36, %v7017_v37  ;;  %v1647_v42 = vcombine.high %v7020_v38, %v7023_v8  ;;  %v1630_v17 = vcombine.low %v7014_v36, %v7017_v37 }
 0x427   :  { %6257 = vmatpush3.msra.mxu1 %v648_v12  ;;  %6253 = vmatprep.mubr.msk.f32.mxu0 %vm6738_vm1, %v6737_v11  ;;  %v1646_v18 = vcombine.low %v7020_v38, %v7023_v8 }
 0x428   :  { %6258 = vmatprep.mubr.msk.f32.mxu1 %vm6738_vm1, %v6737_v11  ;;  %6254 = vmatmul.mubr.msk.f32.vlgmr.msra.gmra.mxu0 %vm649_vm2, %v1000_v39  ;;  %v7041_v43 = vrot.slane %v1631_v40, %v6881_v29  ;;  %v7046_v14 = vrot.slane %v1647_v42, %v6881_v29  ;;  %v1638_v27 = vrot.slane %v1630_v17, %v6881_v29 }
 0x429   :  { %6259 = vmatmul.mubr.msk.f32.vlgmr.msra.gmra.mxu1 %vm649_vm2, %v1001_v41  ;;  %6272 = vmatprep.subr.mxu1 %v6737_v11  ;;  %v1654_v9 = vrot.slane %v1646_v18, %v6881_v29 }
 0x42a   :  { %6274 = vmatprep.mubr.msk.f32.mxu1 %vm6738_vm1, %v6737_v11  ;;  %6261 = vmatprep.subr.mxu0 %v6737_v11  ;;  %v1664_v15 = vcombine.low %v7041_v43, %v7046_v14  ;;  %v1665_v37 = vcombine.high %v7041_v43, %v7046_v14 }
 0x42b   :  { %6269 = vmatprep.mubr.msk.f32.mxu0 %vm6738_vm1, %v6737_v11  ;;  %v1662_v31 = vcombine.low %v1638_v27, %v1654_v9  ;;  %v1663_v33 = vcombine.high %v1638_v27, %v1654_v9 }
 0x486   :  { %v1671_v45 = vpop.permute.xlu0 %1670 }
 0x487   :  { %v1669_v47 = vpop.permute.xlu1 %1668  ;;  %v1678_v48 = vcombine.low %v1667_v44, %v1671_v45  ;;  %v1679_v49 = vcombine.high %v1667_v44, %v1671_v45 }
 0x489   :  { %v1686_v53 = vrot.slane %v1678_v48, %v6871_v21  ;;  %v1693_v54 = vrot.slane %v1679_v49, %v6871_v21  ;;  %v7105_v49 = vld [vmem:[%s7799_s3 + $0x18] sm:$0xff] }
 0x48a   :  { %6262 = vmatpush3.msra.mxu0 %v7105_v49 }
 0x48b   :  { %v1673_v50 = vpop.permute.xlu1 %1672  ;;  %6263 = vmatprep.subr.mxu0 %v6737_v11 }
 0x48c   :  { %v1694_v51 = vcombine.low %v1669_v47, %v1673_v50  ;;  %v1695_v52 = vcombine.high %v1669_v47, %v1673_v50 }
 0x48e   :  { %v1702_v55 = vrot.slane %v1694_v51, %v6871_v21  ;;  %v1709_v56 = vrot.slane %v1695_v52, %v6871_v21 }
 0x490   :  { %v1710_v57 = vcombine.low %v1686_v53, %v1702_v55  ;;  %v1711_v58 = vcombine.high %v1686_v53, %v1702_v55  ;;  %v1726_v59 = vcombine.low %v1693_v54, %v1709_v56  ;;  %v1727_v60 = vcombine.high %v1693_v54, %v1709_v56  ;;  %v7113_v53 = vld [vmem:[%s7799_s3 + $0x10] sm:$0xff] }
 0x491   :  { %6264 = vmatpush3.msra.mxu0 %v7113_v53 }
 0x492   :  { %v1718_v61 = vrot.slane %v1710_v57, %v6881_v29  ;;  %v1725_v62 = vrot.slane %v1711_v58, %v6881_v29  ;;  %v1734_v63 = vrot.slane %v1726_v59, %v6881_v29  ;;  %v1741_v0 = vrot.slane %v1727_v60, %v6881_v29  ;;  %6265 = vmatprep.subr.mxu0 %v6737_v11  ;;  %v7123_v60 = vld [vmem:[%s7799_s3 + $0x8] sm:$0xff] }
 0x493   :  { %6266 = vmatpush3.msra.mxu0 %v7123_v60 }
 0x494   :  { %v1746_v1 = vcombine.low %v1718_v61, %v1725_v62  ;;  %v6012_v2 = vcombine.high %v1718_v61, %v1725_v62  ;;  %v1762_v3 = vcombine.low %v1734_v63, %v1741_v0  ;;  %v6013_v4 = vcombine.high %v1734_v63, %v1741_v0  ;;  %v7128_v61 = vld [vmem:[%s7799_s3] sm:$0xff]  ;;  %6267 = vmatprep.subr.mxu0 %v6737_v11 }
 0x495   :  { %6268 = vmatpush3.msra.mxu0 %v7128_v61 }
 0x496   :  { %v1753_v5 = vrot.slane %v1746_v1, %v6871_v21  ;;  %v1761_v7 = vrot.slane %v6012_v2, %v6871_v21  ;;  %v1769_v13 = vrot.slane %v1762_v3, %v6871_v21  ;;  %v1777_v16 = vrot.slane %v6013_v4, %v6871_v21  ;;  %6282 = vmatprep.subr.mxu0 %v6737_v11 }
 0x498   :  { %v1778_v19 = vcombine.low %v1753_v5, %v1761_v7  ;;  %v1779_v20 = vcombine.high %v1753_v5, %v1761_v7  ;;  %v1794_v22 = vcombine.low %v1769_v13, %v1777_v16  ;;  %v1795_v10 = vcombine.high %v1769_v13, %v1777_v16 }
 0x49a   :  { %v1786_v23 = vrot.slane %v1778_v19, %v6881_v29  ;;  %v1802_v24 = vrot.slane %v1794_v22, %v6881_v29  ;;  %v7074_v25 = vrot.slane %v1779_v20, %v6881_v29  ;;  %v7077_v26 = vrot.slane %v1795_v10, %v6881_v29 }
 0x49c   :  { %v1810_v28 = vcombine.low %v1786_v23, %v1802_v24  ;;  %v1812_v30 = vcombine.low %v7074_v25, %v7077_v26  ;;  %v1811_v32 = vcombine.high %v1786_v23, %v1802_v24  ;;  %v1813_v36 = vcombine.high %v7074_v25, %v7077_v26 }
 0x49e   :  { %6273 = vmatpush3.xpose.msk.msra.mxu1 %vm649_vm2, %v1810_v28 }
 0x49f   :  { %6277 = vmatprep.subr.mxu1 %v6737_v11 }
 0x4a1   :  { %6275 = vmatmul.mubr.msk.f32.vlgmr.msra.gmra.mxu1 %vm649_vm2, %v1662_v31 }
 0x4a2   :  { %6278 = vmatpush3.xpose.msk.msra.mxu1 %vm649_vm2, %v1811_v32  ;;  %6279 = vmatprep.mubr.msk.f32.mxu1 %vm6738_vm1, %v6737_v11 }
 0x4a3   :  { %6287 = vmatprep.subr.mxu1 %v6737_v11 }
 0x4a5   :  { %6280 = vmatmul.mubr.msk.f32.vlgmr.msra.gmra.mxu1 %vm649_vm2, %v1663_v33 }
 0x4a6   :  { %6288 = vmatpush3.xpose.msk.msra.mxu1 %vm649_vm2, %v1813_v36  ;;  %6289 = vmatprep.mubr.msk.f32.mxu1 %vm6738_vm1, %v6737_v11 }
 0x4a7   :  { %6297 = vmatprep.subr.mxu1 %v6737_v11 }
 0x4a9   :  { %6290 = vmatmul.mubr.msk.f32.vlgmr.msra.gmra.mxu1 %vm649_vm2, %v1665_v37 }
 0x4aa   :  { %6299 = vmatprep.mubr.msk.f32.mxu1 %vm6738_vm1, %v6737_v11 }
 0x4e4   :  { %v1071_v38 = vpop.f32.mrf.mxu0 }
 0x4e5   :  { %v1144_v8 = vpop.f32.mrf.mxu1 }
 0x4e6   :  { %v6245_v12 = vpop.f32.mrf.mxu0 }
 0x4e7   :  { %v6250_v39 = vpop.f32.mrf.mxu1 }
 0x4e8   :  { %v1217_v40 = vpop.f32.mrf.mxu0 }
 0x4e9   :  { %v1294_v41 = vcombine.low %v1071_v38, %v1217_v40  ;;  %v1295_v42 = vcombine.high %v1071_v38, %v1217_v40  ;;  %v1290_v44 = vpop.f32.mrf.mxu1 }
 0x4ea   :  { %v1310_v45 = vcombine.low %v1144_v8, %v1290_v44  ;;  %v1311_v47 = vcombine.high %v1144_v8, %v1290_v44  ;;  %v6255_v48 = vpop.f32.mrf.mxu0 }
 0x4eb   :  { %v1302_v50 = vrot.slane %v1294_v41, %v6871_v21  ;;  %v1309_v51 = vrot.slane %v1295_v42, %v6871_v21  ;;  %v6260_v52 = vpop.f32.mrf.mxu1 }
 0x4ec   :  { %v1318_v54 = vrot.slane %v1310_v45, %v6871_v21  ;;  %v1325_v55 = vrot.slane %v1311_v47, %v6871_v21 }
 0x4ee   :  { %v1326_v56 = vcombine.low %v1302_v50, %v1318_v54  ;;  %v1327_v57 = vcombine.high %v1302_v50, %v1318_v54  ;;  %v1342_v58 = vcombine.low %v1309_v51, %v1325_v55  ;;  %v1343_v59 = vcombine.high %v1309_v51, %v1325_v55 }
 0x4f0   :  { %v1334_v62 = vrot.slane %v1326_v56, %v6881_v29  ;;  %v1341_v63 = vrot.slane %v1327_v57, %v6881_v29  ;;  %v1350_v0 = vrot.slane %v1342_v58, %v6881_v29  ;;  %v1357_v1 = vrot.slane %v1343_v59, %v6881_v29 }
 0x4f2   :  { %v1362_v2 = vcombine.low %v1334_v62, %v1341_v63  ;;  %v6007_v3 = vcombine.high %v1334_v62, %v1341_v63  ;;  %v1378_v4 = vcombine.low %v1350_v0, %v1357_v1  ;;  %v6008_v5 = vcombine.high %v1350_v0, %v1357_v1 }
 0x4f4   :  { %v1369_v7 = vrot.slane %v1362_v2, %v6871_v21  ;;  %v1377_v13 = vrot.slane %v6007_v3, %v6871_v21  ;;  %v1385_v16 = vrot.slane %v1378_v4, %v6871_v21  ;;  %v1393_v17 = vrot.slane %v6008_v5, %v6871_v21 }
 0x4f6   :  { %v1395_v18 = vcombine.high %v1369_v7, %v1377_v13  ;;  %v1411_v19 = vcombine.high %v1385_v16, %v1393_v17  ;;  %v1394_v20 = vcombine.low %v1369_v7, %v1377_v13  ;;  %v1410_v22 = vcombine.low %v1385_v16, %v1393_v17 }
 0x4f8   :  { %v1409_v10 = vrot.slane %v1395_v18, %v6881_v29  ;;  %v1425_v23 = vrot.slane %v1411_v19, %v6881_v29  ;;  %v1402_v24 = vrot.slane %v1394_v20, %v6881_v29  ;;  %v1418_v27 = vrot.slane %v1410_v22, %v6881_v29 }
 0x4fa   :  { %v1428_v9 = vcombine.low %v1409_v10, %v1425_v23  ;;  %v1427_v28 = vcombine.high %v1402_v24, %v1418_v27  ;;  %v1426_v31 = vcombine.low %v1402_v24, %v1418_v27  ;;  %v1429_v32 = vcombine.high %v1409_v10, %v1425_v23 }
 0x4fc   :  { %1435 = vrot.lane.b32.xlu1 %v1428_v9, %s6742_s29  ;;  %1431 = vrot.lane.b32.xlu0 %v1427_v28, %s6729_s13 }
 0x500   :  { %1439 = vrot.lane.b32.xlu0 %v1429_v32, %s6743_s5 }
 0x561   :  { %v2034_v33 = vpop.f32.mrf.mxu1 }
 0x562   :  { %v2266_v36 = vmul.f32 0.35355338, %v2034_v33 }
 0x563   :  { %v6276_v37 = vpop.f32.mrf.mxu1 }
 0x564   :  { %v2270_v38 = vsel %vm649_vm2, %v2266_v36, -inf }
 0x565   :  { %2271 = vmax.xlane.f32.xlu1 %v2270_v38  ;;  %v2110_v8 = vpop.f32.mrf.mxu1 }
 0x566   :  { %v2267_v12 = vmul.f32 0.35355338, %v2110_v8 }
 0x567   :  { %v6281_v39 = vpop.f32.mrf.mxu1 }
 0x568   :  { %v2273_v40 = vsel %vm649_vm2, %v2267_v12, -inf }
 0x569   :  { %2274 = vmax.xlane.f32.xlu0 %v2273_v40  ;;  %v2262_v41 = vpop.f32.mrf.mxu1 }
 0x56a   :  { %v2269_v42 = vmul.f32 0.35355338, %v2262_v41 }
 0x56b   :  { %v6291_v44 = vpop.f32.mrf.mxu1 }
 0x56c   :  { %v2279_v45 = vsel %vm649_vm2, %v2269_v42, -inf }
 0x56d   :  { %2280 = vmax.xlane.f32.xlu1 %v2279_v45 }
 0x56e   :  { %v1432_v47 = vpop.permute.xlu0 %1431  ;;  %v1436_v48 = vpop.permute.xlu1 %1435 }
 0x56f   :  { %v1442_v50 = vsel %vm649_vm2, %v1426_v31, %v1432_v47 }
 0x570   :  { %v1444_v52 = vsel %vm1443_vm3, %v1442_v50, %v1436_v48 }
 0x572   :  { %v1440_v51 = vpop.permute.xlu0 %1439 }
 0x573   :  { %v1446_v54 = vsel %vm1445_vm4, %v1444_v52, %v1440_v51 }
 0x574   :  { %6270 = vmatmul.mubr.msk.f32.vlgmr.msra.gmra.mxu0 %vm125_vm0, %v1446_v54 }
 0x575   :  { %6283 = vmatpush3.xpose.msk.msra.mxu0 %vm649_vm2, %v1812_v30  ;;  %6284 = vmatprep.mubr.msk.f32.mxu0 %vm6738_vm1, %v6737_v11 }
 0x576   :  { %6292 = vmatprep.subr.mxu0 %v6737_v11 }
 0x578   :  { %6285 = vmatmul.mubr.msk.f32.vlgmr.msra.gmra.mxu0 %vm649_vm2, %v1664_v15 }
 0x579   :  { %6294 = vmatprep.mubr.msk.f32.mxu0 %vm6738_vm1, %v6737_v11 }
 0x5ee   :  { %v2272_v55 = vpop.xlane.xlu1 %2271 }
 0x5ef   :  { %v2282_v15 = vsub.f32 %v2266_v36, %v2272_v55 }
 0x5f1   :  { %v2286_v63 = vmul.f32 1.442695, %v2282_v15 }
 0x5f2   :  { %v2275_v56 = vpop.xlane.xlu0 %2274 }
 0x5f3   :  { %v2283_v57 = vsub.f32 %v2267_v12, %v2275_v56 }
 0x5f5   :  { %v2288_v58 = vmul.f32 1.442695, %v2283_v57 }
 0x5f6   :  { %v2281_v25 = vpop.xlane.xlu1 %2280 }
 0x5f7   :  { %6512 = vpow2.f32 %v2288_v58  ;;  %v2285_v26 = vsub.f32 %v2269_v42, %v2281_v25 }
 0x5f9   :  { %v2292_v30 = vmul.f32 1.442695, %v2285_v26 }
 0x5fb   :  { %6514 = vpow2.f32 %v2292_v30 }
 0x5fc   :  { %6516 = vpow2.f32 %v2286_v63 }
 0x604   :  { %v7169_v59 = vpop.eup %6512 }
 0x605   :  { %v2297_v62 = vsel %vm649_vm2, %v7169_v59, 0.0 }
 0x606   :  { %2298 = vadd.xlane.f32.xlu1 %v2297_v62 }
 0x608   :  { %v7173_v43 = vpop.eup %6514 }
 0x609   :  { %v2303_v14 = vsel %vm649_vm2, %v7173_v43, 0.0  ;;  %v6517_v7 = vpop.eup %6516 }
 0x60a   :  { %2304 = vadd.xlane.f32.xlu1 %v2303_v14  ;;  %v2294_v13 = vsel %vm649_vm2, %v6517_v7, 0.0 }
 0x61b   :  { %1816 = vrot.lane.b32.xlu1 %v6973_v35, %s6741_s21 }
 0x61f   :  { %1818 = vrot.lane.b32.xlu1 %v6971_v34, %s6741_s21 }
 0x634   :  { %v7181_v0 = vpop.f32.mrf.mxu0 }
 0x636   :  { %v6271_v1 = vpop.f32.mrf.mxu0 }
 0x638   :  { %v2186_v2 = vpop.f32.mrf.mxu0 }
 0x639   :  { %v2268_v3 = vmul.f32 0.35355338, %v2186_v2 }
 0x63a   :  { %v6286_v4 = vpop.f32.mrf.mxu0 }
 0x63b   :  { %v2276_v5 = vsel %vm649_vm2, %v2268_v3, -inf }
 0x63c   :  { %2277 = vmax.xlane.f32.xlu0 %v2276_v5 }
 0x640   :  { %2295 = vadd.xlane.f32.xlu0 %v2294_v13 }
 0x656   :  { %1814 = vrot.lane.b32.xlu0 %v6837_v6, %s6741_s21 }
 0x68f   :  { %v2299_v19 = vpop.xlane.xlu1 %2298 }
 0x693   :  { %v2305_v20 = vpop.xlane.xlu1 %2304 }
 0x697   :  { %v1817_v10 = vpop.permute.xlu1 %1816 }
 0x69b   :  { %v1819_v6 = vpop.permute.xlu1 %1818 }
 0x6c5   :  { %v2278_v34 = vpop.xlane.xlu0 %2277 }
 0x6c6   :  { %v2284_v35 = vsub.f32 %v2268_v3, %v2278_v34 }
 0x6c8   :  { %v2290_v16 = vmul.f32 1.442695, %v2284_v35 }
 0x6c9   :  { %v2296_v22 = vpop.xlane.xlu0 %2295 }
 0x6ca   :  { %6518 = vpow2.f32 %v2290_v16 }
 0x6cb   :  { %6520 = vrcp.f32 %v2299_v19 }
 0x6cc   :  { %6522 = vrcp.f32 %v2296_v22 }
 0x6cd   :  { %v1815_v23 = vpop.permute.xlu0 %1814  ;;  %6524 = vrcp.f32 %v2305_v20 }
 0x6ce   :  { %v1826_v27 = vcombine.low %v1815_v23, %v1819_v6  ;;  %v1827_v9 = vcombine.high %v1815_v23, %v1819_v6 }
 0x6d0   :  { %v1834_v33 = vrot.slane %v1826_v27, %v6871_v21  ;;  %v1841_v36 = vrot.slane %v1827_v9, %v6871_v21 }
 0x6d7   :  { %v7187_v17 = vpop.eup %6518 }
 0x6d8   :  { %v2300_v18 = vsel %vm649_vm2, %v7187_v17, 0.0  ;;  %v6521_v26 = vpop.eup %6520 }
 0x6d9   :  { %2301 = vadd.xlane.f32.xlu0 %v2300_v18  ;;  %v6523_v30 = vpop.eup %6522  ;;  %v2311_v5 = vmul.f32 %v6521_v26, %v7169_v59  ;;  %v7229_v59 = vld [vmem:[%s7798_s2 + $0x18] sm:$0xff] }
 0x6da   :  { %v6525_v1 = vpop.eup %6524  ;;  %v2310_v4 = vmul.f32 %v6523_v30, %v6517_v7 }
 0x6db   :  { %v2313_v7 = vmul.f32 %v6525_v1, %v7173_v43  ;;  %v7238_v43 = vld [vmem:[%s7798_s2 + $0x10] sm:$0xff]  ;;  %v6588_v1 = vld [vmem:[#allocation2] sm:$0xff] }
 0x6ef   :  { %1820 = vrot.lane.b32.xlu0 %v6987_v46, %s6741_s21 }
 0x762   :  { %v2302_v24 = vpop.xlane.xlu0 %2301 }
 0x763   :  { %6526 = vrcp.f32 %v2302_v24 }
 0x766   :  { %v1821_v28 = vpop.permute.xlu0 %1820 }
 0x767   :  { %v1842_v31 = vcombine.low %v1817_v10, %v1821_v28  ;;  %v1843_v32 = vcombine.high %v1817_v10, %v1821_v28 }
 0x769   :  { %v1850_v46 = vrot.slane %v1842_v31, %v6871_v21  ;;  %v1857_v37 = vrot.slane %v1843_v32, %v6871_v21 }
 0x76b   :  { %v1858_v38 = vcombine.low %v1834_v33, %v1850_v46  ;;  %v1859_v8 = vcombine.high %v1834_v33, %v1850_v46  ;;  %v1874_v12 = vcombine.low %v1841_v36, %v1857_v37  ;;  %v1875_v39 = vcombine.high %v1841_v36, %v1857_v37 }
 0x76d   :  { %v1866_v40 = vrot.slane %v1858_v38, %v6881_v29  ;;  %v1873_v41 = vrot.slane %v1859_v8, %v6881_v29  ;;  %v1882_v42 = vrot.slane %v1874_v12, %v6881_v29  ;;  %v1889_v44 = vrot.slane %v1875_v39, %v6881_v29 }
 0x76f   :  { %v1894_v45 = vcombine.low %v1866_v40, %v1873_v41  ;;  %v6014_v47 = vcombine.high %v1866_v40, %v1873_v41  ;;  %v1910_v48 = vcombine.low %v1882_v42, %v1889_v44  ;;  %v6015_v50 = vcombine.high %v1882_v42, %v1889_v44 }
 0x770   :  { %v6527_v13 = vpop.eup %6526 }
 0x771   :  { %v1901_v51 = vrot.slane %v1894_v45, %v6871_v21  ;;  %v1909_v52 = vrot.slane %v6014_v47, %v6871_v21  ;;  %v1917_v54 = vrot.slane %v1910_v48, %v6871_v21  ;;  %v1925_v55 = vrot.slane %v6015_v50, %v6871_v21 }
 0x772   :  { %v2312_v16 = vmul.f32 %v6527_v13, %v7187_v17 }
 0x773   :  { %v1926_v56 = vcombine.low %v1901_v51, %v1909_v52  ;;  %v1942_v57 = vcombine.low %v1917_v54, %v1925_v55  ;;  %v1927_v58 = vcombine.high %v1901_v51, %v1909_v52  ;;  %v1943_v25 = vcombine.high %v1917_v54, %v1925_v55 }
 0x775   :  { %v1934_v62 = vrot.slane %v1926_v56, %v6881_v29  ;;  %v1950_v14 = vrot.slane %v1942_v57, %v6881_v29  ;;  %v1941_v15 = vrot.slane %v1927_v58, %v6881_v29  ;;  %v1957_v63 = vrot.slane %v1943_v25, %v6881_v29 }
 0x777   :  { %v1958_v2 = vcombine.low %v1934_v62, %v1950_v14  ;;  %v1959_v3 = vcombine.high %v1934_v62, %v1950_v14  ;;  %v1960_v34 = vcombine.low %v1941_v15, %v1957_v63  ;;  %v1961_v35 = vcombine.high %v1941_v15, %v1957_v63  ;;  %v6031_v15 = vld [vmem:[#allocation4] ss:$0 sm:$0xff] }
 0x778   :  { %v2836_v63 = vadd.f32 %v6031_v15, %v7181_v0 }
 0x779   :  { %6293 = vmatpush3.msra.mxu0 %v1958_v2  ;;  %6298 = vmatpush3.msra.mxu1 %v1959_v3 }
 0x77a   :  { %6295 = vmatmul.mubr.msk.f32.vlgmr.msra.gmra.mxu0 %vm649_vm2, %v2310_v4  ;;  %6300 = vmatmul.mubr.msk.f32.vlgmr.msra.gmra.mxu1 %vm649_vm2, %v2311_v5  ;;  %v2838_v2 = vadd.f32 %v6588_v1, %v2836_v63 }
 0x77b   :  { %6302 = vmatprep.subr.mxu0 %v6737_v11  ;;  %6307 = vmatprep.subr.mxu1 %v6737_v11 }
 0x77c   :  { %6303 = vmatpush3.msra.mxu0 %v1960_v34  ;;  %6308 = vmatpush3.msra.mxu1 %v1961_v35  ;;  %v2840_v3 = vsel %vm125_vm0, %v2838_v2, 0.0 }
 0x77d   :  { %6304 = vmatprep.mubr.msk.f32.mxu0 %vm6738_vm1, %v6737_v11  ;;  %6309 = vmatprep.mubr.msk.f32.mxu1 %vm6738_vm1, %v6737_v11 }
 0x77e   :  { %6305 = vmatmul.mubr.msk.f32.vlgmr.msra.gmra.mxu0 %vm649_vm2, %v2312_v16  ;;  %6310 = vmatmul.mubr.msk.f32.vlgmr.msra.gmra.mxu1 %vm649_vm2, %v2313_v7 }
 0x77f   :  { %6312 = vmatprep.subr.mxu0 %v6737_v11  ;;  %6320 = vmatprep.mubr.msk.f32.mxu0 %vm6738_vm1, %v6737_v11 }
 0x780   :  { %6313 = vmatpush3.msra.mxu0 %v7105_v49  ;;  %6323 = vmatprep.subr.mxu1 %v7229_v59  ;;  %v7247_v49 = vld [vmem:[%s7798_s2 + $0x8] sm:$0xff] }
 0x781   :  { %6314 = vmatprep.subr.mxu0 %v6737_v11  ;;  %6324 = vmatpush3.msra.mxu1 %v7229_v59 }
 0x782   :  { %6315 = vmatpush3.msra.mxu0 %v7113_v53  ;;  %6325 = vmatprep.subr.mxu1 %v7238_v43  ;;  %v7256_v53 = vld [vmem:[%s7798_s2] sm:$0xff] }
 0x783   :  { %6316 = vmatprep.subr.mxu0 %v6737_v11  ;;  %6326 = vmatpush3.msra.mxu1 %v7238_v43 }
 0x784   :  { %6317 = vmatpush3.msra.mxu0 %v7123_v60  ;;  %6327 = vmatprep.subr.mxu1 %v7247_v49 }
 0x785   :  { %6318 = vmatprep.subr.mxu0 %v6737_v11  ;;  %6328 = vmatpush3.msra.mxu1 %v7247_v49 }
 0x786   :  { %6319 = vmatpush3.msra.mxu0 %v7128_v61  ;;  %6329 = vmatprep.subr.mxu1 %v7256_v53 }
 0x787   :  { %6330 = vmatpush3.msra.mxu1 %v7256_v53 }
 0x788   :  { %6345 = vmatprep.subr.mxu1 %v6737_v11 }
 0x83a   :  { %v2383_v60 = vpop.f32.mrf.mxu0  ;;  %v2456_v17 = vpop.f32.mrf.mxu1 }
 0x83c   :  { %v6296_v18 = vpop.f32.mrf.mxu0  ;;  %v6301_v19 = vpop.f32.mrf.mxu1 }
 0x83e   :  { %v2529_v20 = vpop.f32.mrf.mxu0  ;;  %v2602_v22 = vpop.f32.mrf.mxu1 }
 0x83f   :  { %v2606_v10 = vcombine.low %v2383_v60, %v2529_v20  ;;  %v2607_v23 = vcombine.high %v2383_v60, %v2529_v20  ;;  %v2622_v61 = vcombine.low %v2456_v17, %v2602_v22  ;;  %v2623_v24 = vcombine.high %v2456_v17, %v2602_v22 }
 0x840   :  { %v6306_v6 = vpop.f32.mrf.mxu0  ;;  %v6311_v27 = vpop.f32.mrf.mxu1 }
 0x841   :  { %v2614_v9 = vrot.slane %v2606_v10, %v6871_v21  ;;  %v2621_v28 = vrot.slane %v2607_v23, %v6871_v21  ;;  %v2630_v31 = vrot.slane %v2622_v61, %v6871_v21  ;;  %v2637_v32 = vrot.slane %v2623_v24, %v6871_v21  ;;  %v6589_v61 = vld [vmem:[#allocation2 + $0x8] sm:$0xff] }
 0x843   :  { %v2638_v33 = vcombine.low %v2614_v9, %v2630_v31  ;;  %v2639_v36 = vcombine.high %v2614_v9, %v2630_v31  ;;  %v2654_v46 = vcombine.low %v2621_v28, %v2637_v32  ;;  %v2655_v37 = vcombine.high %v2621_v28, %v2637_v32 }
 0x845   :  { %v2646_v38 = vrot.slane %v2638_v33, %v6881_v29  ;;  %v2653_v8 = vrot.slane %v2639_v36, %v6881_v29  ;;  %v2662_v12 = vrot.slane %v2654_v46, %v6881_v29  ;;  %v2669_v39 = vrot.slane %v2655_v37, %v6881_v29  ;;  %v6032_v36 = vld [vmem:[#allocation6] ss:$0 sm:$0xff] }
 0x847   :  { %v2674_v40 = vcombine.low %v2646_v38, %v2653_v8  ;;  %v6028_v41 = vcombine.high %v2646_v38, %v2653_v8  ;;  %v2690_v42 = vcombine.low %v2662_v12, %v2669_v39  ;;  %v6029_v44 = vcombine.high %v2662_v12, %v2669_v39  ;;  %v6035_v38 = vld [vmem:[#allocation7] ss:$0 sm:$0xff] }
 0x849   :  { %v2681_v45 = vrot.slane %v2674_v40, %v6871_v21  ;;  %v2689_v47 = vrot.slane %v6028_v41, %v6871_v21  ;;  %v2697_v48 = vrot.slane %v2690_v42, %v6871_v21  ;;  %v2705_v50 = vrot.slane %v6029_v44, %v6871_v21 }
 0x84b   :  { %v2707_v51 = vcombine.high %v2681_v45, %v2689_v47  ;;  %v2723_v52 = vcombine.high %v2697_v48, %v2705_v50  ;;  %v2706_v54 = vcombine.low %v2681_v45, %v2689_v47  ;;  %v2722_v55 = vcombine.low %v2697_v48, %v2705_v50 }
 0x84d   :  { %v2721_v56 = vrot.slane %v2707_v51, %v6881_v29  ;;  %v2737_v57 = vrot.slane %v2723_v52, %v6881_v29  ;;  %v2714_v58 = vrot.slane %v2706_v54, %v6881_v29  ;;  %v2730_v25 = vrot.slane %v2722_v55, %v6881_v29  ;;  %v111_v51 = vld [vmem:[%s7796_s0 + $0x8] sm:$0xff] }
 0x84f   :  { %v2740_v26 = vcombine.low %v2721_v56, %v2737_v57  ;;  %v2739_v30 = vcombine.high %v2714_v58, %v2730_v25  ;;  %v2738_v62 = vcombine.low %v2714_v58, %v2730_v25  ;;  %v2741_v14 = vcombine.high %v2721_v56, %v2737_v57 }
 0x851   :  { %2747 = vrot.lane.b32.xlu0 %v2740_v26, %s6742_s29  ;;  %2743 = vrot.lane.b32.xlu1 %v2739_v30, %s6729_s13 }
 0x855   :  { %2751 = vrot.lane.b32.xlu1 %v2741_v14, %s6743_s5 }
 0x870   :  { %2841 = vadd.xlane.f32.xlu0 %v2840_v3 }
 0x8c3   :  { %v2744_v4 = vpop.permute.xlu1 %2743  ;;  %v2748_v5 = vpop.permute.xlu0 %2747 }
 0x8c4   :  { %v2754_v13 = vsel %vm649_vm2, %v2738_v62, %v2744_v4 }
 0x8c5   :  { %v2755_v35 = vsel %vm1443_vm3, %v2754_v13, %v2748_v5 }
 0x8c7   :  { %v2752_v34 = vpop.permute.xlu1 %2751 }
 0x8c8   :  { %v2756_v16 = vsel %vm1445_vm4, %v2755_v35, %v2752_v34 }
 0x8c9   :  { %6321 = vmatmul.mubr.msk.f32.vlgmr.msra.gmra.mxu0 %vm125_vm0, %v2756_v16 }
 0x8f9   :  { %v2842_v7 = vpop.xlane.xlu0 %2841 }
 0x8fa   :  { %v2847_v60 = vmul.f32 0.03125, %v2842_v7 }
 0x8fc   :  { %v2849_v17 = vsub.f32 %v2838_v2, %v2847_v60 }
 0x8fe   :  { %v2851_v0 = vmul.f32 %v2849_v17, %v2849_v17  ;;  %v2882_v46 = vmul.f32 %v6032_v36, %v2849_v17 }
 0x900   :  { %v2853_v18 = vsel %vm125_vm0, %v2851_v0, 0.0 }
 0x901   :  { %2854 = vadd.xlane.f32.xlu0 %v2853_v18 }
 0x989   :  { %v2826_v19 = vpop.f32.mrf.mxu0 }
 0x98a   :  { %v2837_v20 = vadd.f32 %v6031_v15, %v2826_v19  ;;  %v2855_v22 = vpop.xlane.xlu0 %2854 }
 0x98b   :  { %v2860_v10 = vmul.f32 0.032258064, %v2855_v22  ;;  %v6322_v23 = vpop.f32.mrf.mxu0 }
 0x98c   :  { %v2839_v24 = vadd.f32 %v6589_v61, %v2837_v20 }
 0x98d   :  { %6528 = vrsqrt.f32 %v2860_v10  ;;  %vm2864_vm5 = vcmp.eq.f32.partialorder %v2860_v10, inf  ;;  %v2867_v28 = vand.u32 2147483648, %v2860_v10  ;;  %vm2866_vm6 = vcmp.eq.f32.partialorder %v2860_v10, 0.0 }
 0x98e   :  { %v2843_v6 = vsel %vm125_vm0, %v2839_v24, 0.0 }
 0x98f   :  { %2844 = vadd.xlane.f32.xlu1 %v2843_v6 }
 0x99a   :  { %v6529_v27 = vpop.eup %6528 }
 0x99b   :  { %v2863_v9 = vmul.f32 %v6529_v27, %v2860_v10 }
 0x99d   :  { %v2865_v31 = vsel %vm2864_vm5, %v2860_v10, %v2863_v9 }
 0x99e   :  { %v2868_v32 = vsel %vm2866_vm6, %v2867_v28, %v2865_v31 }
 0x99f   :  { %v6033_v33 = vadd.f32 -1e-06, %v2868_v32 }
 0x9a0   :  { %2989 = vrot.lane.b32.xlu1 %v7229_v59, %s6735_s19 }
 0x9a1   :  { %6530 = vrcp.f32 %v6033_v33 }
 0x9a4   :  { %2985 = vrot.lane.b32.xlu1 %v7247_v49, %s6735_s19 }
 0x9a8   :  { %2983 = vrot.lane.b32.xlu1 %v7256_v53, %s6735_s19  ;;  %v110_v53 = vld [vmem:[%s7796_s0] sm:$0xff] }
 0x9a9   :  { %6342 = vmatprep.mubr.msk.f32.mxu0 %vm125_vm0, %v110_v53 }
 0x9ae   :  { %v6531_v37 = vpop.eup %6530 }
 0x9af   :  { %v2887_v8 = vmul.f32 %v6531_v37, %v2882_v46 }
 0x9b1   :  { %v7294_v12 = vadd.f32 %v6035_v38, %v2887_v8 }
 0x9b3   :  { %6331 = vmatprep.mubr.msk.f32.mxu1 %vm125_vm0, %v7294_v12 }
 0xa18   :  { %v2845_v39 = vpop.xlane.xlu1 %2844 }
 0xa19   :  { %v2848_v40 = vmul.f32 0.03125, %v2845_v39 }
 0xa1b   :  { %v2850_v59 = vsub.f32 %v2839_v24, %v2848_v40 }
 0xa1c   :  { %v2990_v49 = vpop.permute.xlu1 %2989 }
 0xa1d   :  { %v2852_v41 = vmul.f32 %v2850_v59, %v2850_v59  ;;  %6334 = vmatprep.subr.mxu0 %v2990_v49  ;;  %v2883_v58 = vmul.f32 %v6032_v36, %v2850_v59 }
 0xa1e   :  { %6335 = vmatpush3.msra.mxu0 %v2990_v49 }
 0xa1f   :  { %v2856_v42 = vsel %vm125_vm0, %v2852_v41, 0.0 }
 0xa20   :  { %2857 = vadd.xlane.f32.xlu0 %v2856_v42  ;;  %v2986_v45 = vpop.permute.xlu1 %2985 }
 0xa24   :  { %v2984_v50 = vpop.permute.xlu1 %2983 }
 0xa36   :  { %2987 = vrot.lane.b32.xlu0 %v7238_v43, %s6735_s19 }
 0xaa9   :  { %v2858_v44 = vpop.xlane.xlu0 %2857 }
 0xaaa   :  { %v2861_v47 = vmul.f32 0.032258064, %v2858_v44 }
 0xaac   :  { %6532 = vrsqrt.f32 %v2861_v47  ;;  %vm2871_vm7 = vcmp.eq.f32.partialorder %v2861_v47, inf  ;;  %v2874_v54 = vand.u32 2147483648, %v2861_v47  ;;  %vm2873_vm8 = vcmp.eq.f32.partialorder %v2861_v47, 0.0 }
 0xaad   :  { %v2988_v48 = vpop.permute.xlu0 %2987 }
 0xaae   :  { %6336 = vmatprep.subr.mxu0 %v2988_v48 }
 0xaaf   :  { %6337 = vmatpush3.msra.mxu0 %v2988_v48 }
 0xab0   :  { %6338 = vmatprep.subr.mxu0 %v2986_v45 }
 0xab1   :  { %6339 = vmatpush3.msra.mxu0 %v2986_v45 }
 0xab2   :  { %6340 = vmatprep.subr.mxu0 %v2984_v50 }
 0xab3   :  { %6341 = vmatpush3.msra.mxu0 %v2984_v50 }
 0xab4   :  { %6343 = vmatmul.mubr.msk.f32.vlgmr.msra.gmra.mxu0 %vm125_vm0, %v111_v51  ;;  %6355 = vmatprep.subr.mxu0 %v6737_v11 }
 0xab5   :  { %6357 = vmatprep.mubr.msk.f32.mxu0 %vm6738_vm1, %v6737_v11 }
 0xab9   :  { %v6533_v43 = vpop.eup %6532 }
 0xaba   :  { %v2870_v52 = vmul.f32 %v6533_v43, %v2861_v47 }
 0xabc   :  { %v2872_v55 = vsel %vm2871_vm7, %v2861_v47, %v2870_v52 }
 0xabd   :  { %v2875_v56 = vsel %vm2873_vm8, %v2874_v54, %v2872_v55 }
 0xabe   :  { %v6034_v57 = vadd.f32 -1e-06, %v2875_v56 }
 0xac0   :  { %6534 = vrcp.f32 %v6034_v57 }
 0xacd   :  { %v6535_v25 = vpop.eup %6534 }
 0xace   :  { %v2889_v26 = vmul.f32 %v6535_v25, %v2883_v58 }
 0xad0   :  { %v7312_v30 = vadd.f32 %v6035_v38, %v2889_v26 }
 0xad2   :  { %6332 = vmatmul.mubr.msk.f32.vlgmr.msra.gmra.mxu1 %vm125_vm0, %v7312_v30 }
 0xad3   :  { %6347 = vmatprep.mubr.msk.f32.mxu1 %vm6738_vm1, %v6737_v11 }
 0xb74   :  { %v7318_v62 = vpop.f32.mrf.mxu0 }
 0xb76   :  { %v7320_v14 = vpop.f32.mrf.mxu0 }
 0xb77   :  { %3226 = vrot.lane.b32.xlu1 %v7320_v14, %s6736_s20  ;;  %3223 = vrot.lane.b32.xlu0 %v7320_v14, %s6734_s18 }
 0xb7b   :  { %3229 = vrot.lane.b32.xlu0 %v7320_v14, %s6733_s6 }
 0xb92   :  { %v7328_v15 = vpop.f32.mrf.mxu1 }
 0xb94   :  { %v2970_v63 = vpop.f32.mrf.mxu1 }
 0xb95   :  { %3077 = vrot.lane.b32.xlu1 %v2970_v63, %s6734_s18  ;;  %3080 = vrot.lane.b32.xlu0 %v2970_v63, %s6736_s20 }
 0xb99   :  { %3083 = vrot.lane.b32.xlu1 %v2970_v63, %s6733_s6 }
 0xbe9   :  { %v7333_v1 = vpop.permute.xlu1 %3226  ;;  %v7335_v2 = vpop.permute.xlu0 %3223 }
 0xbea   :  { %v3232_v3 = vcombine.low %v7320_v14, %v7333_v1  ;;  %v3233_v4 = vcombine.high %v7320_v14, %v7333_v1 }
 0xbec   :  { %v3240_v35 = vrot.slane %v3232_v3, %v6871_v21  ;;  %v3247_v16 = vrot.slane %v3233_v4, %v6871_v21 }
 0xbed   :  { %v7341_v5 = vpop.permute.xlu0 %3229 }
 0xbee   :  { %v3248_v13 = vcombine.low %v7335_v2, %v7341_v5  ;;  %v3249_v34 = vcombine.high %v7335_v2, %v7341_v5 }
 0xbf0   :  { %v3256_v7 = vrot.slane %v3248_v13, %v6871_v21  ;;  %v3263_v60 = vrot.slane %v3249_v34, %v6871_v21 }
 0xbf2   :  { %v3264_v17 = vcombine.low %v3240_v35, %v3256_v7  ;;  %v3265_v0 = vcombine.high %v3240_v35, %v3256_v7  ;;  %v3280_v18 = vcombine.low %v3247_v16, %v3263_v60  ;;  %v3281_v19 = vcombine.high %v3247_v16, %v3263_v60 }
 0xbf4   :  { %v3272_v20 = vrot.slane %v3264_v17, %v6881_v29  ;;  %v3279_v22 = vrot.slane %v3265_v0, %v6881_v29  ;;  %v3288_v10 = vrot.slane %v3280_v18, %v6881_v29  ;;  %v3295_v23 = vrot.slane %v3281_v19, %v6881_v29 }
 0xbf6   :  { %v3300_v61 = vcombine.low %v3272_v20, %v3279_v22  ;;  %v6042_v24 = vcombine.high %v3272_v20, %v3279_v22  ;;  %v3316_v6 = vcombine.low %v3288_v10, %v3295_v23  ;;  %v6043_v27 = vcombine.high %v3288_v10, %v3295_v23 }
 0xbf8   :  { %v3307_v9 = vrot.slane %v3300_v61, %v6871_v21  ;;  %v3315_v28 = vrot.slane %v6042_v24, %v6871_v21  ;;  %v3323_v31 = vrot.slane %v3316_v6, %v6871_v21  ;;  %v3331_v32 = vrot.slane %v6043_v27, %v6871_v21 }
 0xbfa   :  { %v3332_v33 = vcombine.low %v3307_v9, %v3315_v28  ;;  %v3333_v36 = vcombine.high %v3307_v9, %v3315_v28  ;;  %v3348_v46 = vcombine.low %v3323_v31, %v3331_v32  ;;  %v3349_v37 = vcombine.high %v3323_v31, %v3331_v32 }
 0xbfc   :  { %v3340_v38 = vrot.slane %v3332_v33, %v6881_v29  ;;  %v3356_v8 = vrot.slane %v3348_v46, %v6881_v29  ;;  %v3347_v39 = vrot.slane %v3333_v36, %v6881_v29  ;;  %v3363_v40 = vrot.slane %v3349_v37, %v6881_v29 }
 0xbfe   :  { %v3364_v59 = vcombine.low %v3340_v38, %v3356_v8  ;;  %v3366_v41 = vcombine.low %v3347_v39, %v3363_v40  ;;  %v3365_v6 = vcombine.high %v3340_v38, %v3356_v8  ;;  %v3367_v9 = vcombine.high %v3347_v39, %v3363_v40 }
 0xc00   :  { %6346 = vmatpush3.xpose.msk.msra.mxu1 %vm649_vm2, %v3364_v59  ;;  %6356 = vmatpush3.xpose.msk.msra.mxu0 %vm649_vm2, %v3366_v41 }
 0xc01   :  { %6350 = vmatprep.subr.mxu1 %v6737_v11  ;;  %6365 = vmatprep.subr.mxu0 %v6737_v11 }
 0xc07   :  { %v3078_v42 = vpop.permute.xlu1 %3077  ;;  %v3081_v49 = vpop.permute.xlu0 %3080 }
 0xc08   :  { %v3086_v53 = vcombine.low %v2970_v63, %v3081_v49  ;;  %v3087_v44 = vcombine.high %v2970_v63, %v3081_v49 }
 0xc0a   :  { %v3094_v50 = vrot.slane %v3086_v53, %v6871_v21  ;;  %v3101_v51 = vrot.slane %v3087_v44, %v6871_v21 }
 0xc0b   :  { %v3084_v45 = vpop.permute.xlu1 %3083 }
 0xc0c   :  { %v3102_v47 = vcombine.low %v3078_v42, %v3084_v45  ;;  %v3103_v48 = vcombine.high %v3078_v42, %v3084_v45 }
 0xc0e   :  { %v3110_v43 = vrot.slane %v3102_v47, %v6871_v21  ;;  %v3117_v52 = vrot.slane %v3103_v48, %v6871_v21 }
 0xc10   :  { %v3118_v54 = vcombine.low %v3094_v50, %v3110_v43  ;;  %v3119_v55 = vcombine.high %v3094_v50, %v3110_v43  ;;  %v3134_v56 = vcombine.low %v3101_v51, %v3117_v52  ;;  %v3135_v57 = vcombine.high %v3101_v51, %v3117_v52 }
 0xc12   :  { %v3126_v58 = vrot.slane %v3118_v54, %v6881_v29  ;;  %v3133_v25 = vrot.slane %v3119_v55, %v6881_v29  ;;  %v3142_v26 = vrot.slane %v3134_v56, %v6881_v29  ;;  %v3149_v63 = vrot.slane %v3135_v57, %v6881_v29 }
 0xc14   :  { %v3154_v3 = vcombine.low %v3126_v58, %v3133_v25  ;;  %v6040_v4 = vcombine.high %v3126_v58, %v3133_v25  ;;  %v3170_v13 = vcombine.low %v3142_v26, %v3149_v63  ;;  %v6041_v34 = vcombine.high %v3142_v26, %v3149_v63 }
 0xc16   :  { %v3161_v35 = vrot.slane %v3154_v3, %v6871_v21  ;;  %v3169_v16 = vrot.slane %v6040_v4, %v6871_v21  ;;  %v3177_v7 = vrot.slane %v3170_v13, %v6871_v21  ;;  %v3185_v60 = vrot.slane %v6041_v34, %v6871_v21 }
 0xc18   :  { %v3186_v17 = vcombine.low %v3161_v35, %v3169_v16  ;;  %v3187_v0 = vcombine.high %v3161_v35, %v3169_v16  ;;  %v3202_v18 = vcombine.low %v3177_v7, %v3185_v60  ;;  %v3203_v19 = vcombine.high %v3177_v7, %v3185_v60 }
 0xc1a   :  { %v3194_v20 = vrot.slane %v3186_v17, %v6881_v29  ;;  %v3210_v22 = vrot.slane %v3202_v18, %v6881_v29  ;;  %v3201_v10 = vrot.slane %v3187_v0, %v6881_v29  ;;  %v3217_v23 = vrot.slane %v3203_v19, %v6881_v29 }
 0xc1c   :  { %v3218_v61 = vcombine.low %v3194_v20, %v3210_v22  ;;  %v3220_v24 = vcombine.low %v3201_v10, %v3217_v23  ;;  %v3219_v27 = vcombine.high %v3194_v20, %v3210_v22  ;;  %v3221_v28 = vcombine.high %v3201_v10, %v3217_v23 }
 0xc1e   :  { %6348 = vmatmul.mubr.msk.f32.vlgmr.msra.gmra.mxu1 %vm649_vm2, %v3218_v61  ;;  %6358 = vmatmul.mubr.msk.f32.vlgmr.msra.gmra.mxu0 %vm649_vm2, %v3220_v24 }
 0xc1f   :  { %6351 = vmatpush3.xpose.msk.msra.mxu1 %vm649_vm2, %v3365_v6  ;;  %6352 = vmatprep.mubr.msk.f32.mxu1 %vm6738_vm1, %v6737_v11 }
 0xc20   :  { %6360 = vmatprep.subr.mxu1 %v6737_v11  ;;  %6367 = vmatprep.mubr.msk.f32.mxu0 %vm6738_vm1, %v6737_v11 }
 0xc22   :  { %6353 = vmatmul.mubr.msk.f32.vlgmr.msra.gmra.mxu1 %vm649_vm2, %v3219_v27 }
 0xc23   :  { %6361 = vmatpush3.xpose.msk.msra.mxu1 %vm649_vm2, %v3367_v9  ;;  %6362 = vmatprep.mubr.msk.f32.mxu1 %vm6738_vm1, %v6737_v11 }
 0xc24   :  { %6370 = vmatprep.subr.mxu1 %v6737_v11 }
 0xc26   :  { %6363 = vmatmul.mubr.msk.f32.vlgmr.msra.gmra.mxu1 %vm649_vm2, %v3221_v28 }
 0xc27   :  { %6372 = vmatprep.mubr.msk.f32.mxu1 %vm6738_vm1, %v6737_v11 }
 0xcde   :  { %v3588_v31 = vpop.f32.mrf.mxu1  ;;  %v3740_v32 = vpop.f32.mrf.mxu0 }
 0xcdf   :  { %v3820_v33 = vmul.f32 0.35355338, %v3588_v31  ;;  %v3822_v37 = vmul.f32 0.35355338, %v3740_v32 }
 0xce0   :  { %v6349_v36 = vpop.f32.mrf.mxu1  ;;  %v6359_v46 = vpop.f32.mrf.mxu0 }
 0xce1   :  { %v3824_v38 = vsel %vm649_vm2, %v3820_v33, -inf  ;;  %v3830_v59 = vsel %vm649_vm2, %v3822_v37, -inf }
 0xce2   :  { %3825 = vmax.xlane.f32.xlu0 %v3824_v38  ;;  %v3664_v8 = vpop.f32.mrf.mxu1 }
 0xce3   :  { %v3821_v39 = vmul.f32 0.35355338, %v3664_v8 }
 0xce4   :  { %v6354_v40 = vpop.f32.mrf.mxu1 }
 0xce5   :  { %v3827_v41 = vsel %vm649_vm2, %v3821_v39, -inf }
 0xce6   :  { %3831 = vmax.xlane.f32.xlu0 %v3830_v59  ;;  %3828 = vmax.xlane.f32.xlu1 %v3827_v41  ;;  %v3816_v42 = vpop.f32.mrf.mxu1 }
 0xce7   :  { %v3823_v49 = vmul.f32 0.35355338, %v3816_v42 }
 0xce8   :  { %v6364_v53 = vpop.f32.mrf.mxu1 }
 0xce9   :  { %v3833_v44 = vsel %vm649_vm2, %v3823_v49, -inf }
 0xcea   :  { %3834 = vmax.xlane.f32.xlu0 %v3833_v44 }
 0xcf7   :  { %3368 = vrot.lane.b32.xlu1 %v7320_v14, %s6735_s19 }
 0xd6b   :  { %v3826_v45 = vpop.xlane.xlu0 %3825 }
 0xd6c   :  { %v3836_v47 = vsub.f32 %v3820_v33, %v3826_v45 }
 0xd6e   :  { %v3840_v48 = vmul.f32 1.442695, %v3836_v47 }
 0xd6f   :  { %v3832_v50 = vpop.xlane.xlu0 %3831  ;;  %v3829_v51 = vpop.xlane.xlu1 %3828 }
 0xd70   :  { %6536 = vpow2.f32 %v3840_v48  ;;  %v3838_v43 = vsub.f32 %v3822_v37, %v3832_v50  ;;  %v3837_v52 = vsub.f32 %v3821_v39, %v3829_v51 }
 0xd72   :  { %v3844_v54 = vmul.f32 1.442695, %v3838_v43  ;;  %v3842_v55 = vmul.f32 1.442695, %v3837_v52 }
 0xd73   :  { %v3835_v56 = vpop.xlane.xlu0 %3834 }
 0xd74   :  { %6538 = vpow2.f32 %v3844_v54  ;;  %v3839_v57 = vsub.f32 %v3823_v49, %v3835_v56 }
 0xd75   :  { %6540 = vpow2.f32 %v3842_v55 }
 0xd76   :  { %v3846_v58 = vmul.f32 1.442695, %v3839_v57 }
 0xd78   :  { %6542 = vpow2.f32 %v3846_v58 }
 0xd7d   :  { %v7405_v25 = vpop.eup %6536 }
 0xd7e   :  { %v3848_v14 = vsel %vm649_vm2, %v7405_v25, 0.0 }
 0xd7f   :  { %3849 = vadd.xlane.f32.xlu1 %v3848_v14 }
 0xd81   :  { %v7409_v26 = vpop.eup %6538 }
 0xd82   :  { %v7411_v63 = vpop.eup %6540  ;;  %v3854_v3 = vsel %vm649_vm2, %v7409_v26, 0.0 }
 0xd83   :  { %3855 = vadd.xlane.f32.xlu1 %v3854_v3  ;;  %v3851_v4 = vsel %vm649_vm2, %v7411_v63, 0.0 }
 0xd84   :  { %3852 = vadd.xlane.f32.xlu0 %v3851_v4 }
 0xd85   :  { %v7417_v13 = vpop.eup %6542 }
 0xd86   :  { %v3857_v34 = vsel %vm649_vm2, %v7417_v13, 0.0 }
 0xd88   :  { %3858 = vadd.xlane.f32.xlu0 %v3857_v34 }
 0xd94   :  { %3372 = vrot.lane.b32.xlu1 %v7333_v1, %s6735_s19  ;;  %v3369_v1 = vpop.permute.xlu1 %3368 }
 0xd98   :  { %3374 = vrot.lane.b32.xlu1 %v7341_v5, %s6735_s19 }
 0xd9c   :  { %4534 = vrot.lane.b32.xlu1 %v7318_v62, %s6736_s20 }
 0xd9e   :  { %3370 = vrot.lane.b32.xlu0 %v7335_v2, %s6735_s19 }
 0xda0   :  { %4385 = vrot.lane.b32.xlu1 %v7328_v15, %s6734_s18 }
 0xda2   :  { %4531 = vrot.lane.b32.xlu0 %v7318_v62, %s6734_s18 }
 0xda4   :  { %4391 = vrot.lane.b32.xlu1 %v7328_v15, %s6733_s6 }
 0xda6   :  { %4537 = vrot.lane.b32.xlu0 %v7318_v62, %s6733_s6 }
 0xdaa   :  { %4388 = vrot.lane.b32.xlu0 %v7328_v15, %s6736_s20 }
 0xe08   :  { %v3850_v5 = vpop.xlane.xlu1 %3849 }
 0xe09   :  { %6544 = vrcp.f32 %v3850_v5 }
 0xe0c   :  { %v3856_v35 = vpop.xlane.xlu1 %3855 }
 0xe0d   :  { %v3853_v16 = vpop.xlane.xlu0 %3852  ;;  %6546 = vrcp.f32 %v3856_v35 }
 0xe0e   :  { %6548 = vrcp.f32 %v3853_v16 }
 0xe10   :  { %v3373_v2 = vpop.permute.xlu1 %3372 }
 0xe11   :  { %v3859_v7 = vpop.xlane.xlu0 %3858  ;;  %v3380_v60 = vcombine.low %v3369_v1, %v3373_v2  ;;  %v3381_v17 = vcombine.high %v3369_v1, %v3373_v2 }
 0xe12   :  { %6550 = vrcp.f32 %v3859_v7 }
 0xe13   :  { %v3388_v22 = vrot.slane %v3380_v60, %v6871_v21  ;;  %v3395_v10 = vrot.slane %v3381_v17, %v6871_v21 }
 0xe14   :  { %v3375_v0 = vpop.permute.xlu1 %3374 }
 0xe15   :  { %v3371_v18 = vpop.permute.xlu0 %3370 }
 0xe16   :  { %v3396_v19 = vcombine.low %v3371_v18, %v3375_v0  ;;  %v3397_v20 = vcombine.high %v3371_v18, %v3375_v0  ;;  %v6545_v16 = vpop.eup %6544 }
 0xe18   :  { %v3404_v23 = vrot.slane %v3396_v19, %v6871_v21  ;;  %v3411_v61 = vrot.slane %v3397_v20, %v6871_v21  ;;  %v7443_v24 = vpop.permute.xlu1 %4534 }
 0xe19   :  { %v7445_v6 = vpop.permute.xlu0 %4531  ;;  %v4540_v32 = vcombine.low %v7318_v62, %v7443_v24  ;;  %v4541_v33 = vcombine.high %v7318_v62, %v7443_v24 }
 0xe1a   :  { %v3412_v27 = vcombine.low %v3388_v22, %v3404_v23  ;;  %v3413_v9 = vcombine.high %v3388_v22, %v3404_v23  ;;  %v3428_v28 = vcombine.low %v3395_v10, %v3411_v61  ;;  %v3429_v31 = vcombine.high %v3395_v10, %v3411_v61  ;;  %v6547_v20 = vpop.eup %6546 }
 0xe1b   :  { %v4548_v49 = vrot.slane %v4540_v32, %v6871_v21  ;;  %v4555_v53 = vrot.slane %v4541_v33, %v6871_v21  ;;  %v6549_v32 = vpop.eup %6548 }
 0xe1c   :  { %v3420_v36 = vrot.slane %v3412_v27, %v6881_v29  ;;  %v3427_v46 = vrot.slane %v3413_v9, %v6881_v29  ;;  %v3436_v37 = vrot.slane %v3428_v28, %v6881_v29  ;;  %v3443_v38 = vrot.slane %v3429_v31, %v6881_v29  ;;  %v4386_v8 = vpop.permute.xlu1 %4385 }
 0xe1d   :  { %v7455_v39 = vpop.permute.xlu0 %4537 }
 0xe1e   :  { %v3448_v40 = vcombine.low %v3420_v36, %v3427_v46  ;;  %v6044_v59 = vcombine.high %v3420_v36, %v3427_v46  ;;  %v3464_v41 = vcombine.low %v3436_v37, %v3443_v38  ;;  %v6045_v42 = vcombine.high %v3436_v37, %v3443_v38 }
 0xe1f   :  { %v4556_v44 = vcombine.low %v7445_v6, %v7455_v39  ;;  %v4557_v45 = vcombine.high %v7445_v6, %v7455_v39 }
 0xe20   :  { %v7464_v47 = vrot.slane %v3448_v40, %v6871_v21  ;;  %v7467_v48 = vrot.slane %v6044_v59, %v6871_v21  ;;  %v7470_v50 = vrot.slane %v3464_v41, %v6871_v21  ;;  %v7473_v51 = vrot.slane %v6045_v42, %v6871_v21  ;;  %v4392_v43 = vpop.permute.xlu1 %4391  ;;  %v6551_v41 = vpop.eup %6550 }
 0xe21   :  { %v4564_v52 = vrot.slane %v4556_v44, %v6871_v21  ;;  %v4571_v54 = vrot.slane %v4557_v45, %v6871_v21  ;;  %v4410_v55 = vcombine.low %v4386_v8, %v4392_v43  ;;  %v4411_v56 = vcombine.high %v4386_v8, %v4392_v43  ;;  %v4389_v57 = vpop.permute.xlu0 %4388 }
 0xe22   :  { %v4394_v58 = vcombine.low %v7328_v15, %v4389_v57  ;;  %v4395_v14 = vcombine.high %v7328_v15, %v4389_v57  ;;  %v3480_v3 = vcombine.low %v7464_v47, %v7467_v48  ;;  %v3496_v4 = vcombine.low %v7470_v50, %v7473_v51 }
 0xe23   :  { %v4572_v34 = vcombine.low %v4548_v49, %v4564_v52  ;;  %v4573_v1 = vcombine.high %v4548_v49, %v4564_v52  ;;  %v4588_v5 = vcombine.low %v4555_v53, %v4571_v54  ;;  %v4589_v35 = vcombine.high %v4555_v53, %v4571_v54 }
 0xe24   :  { %v4418_v2 = vrot.slane %v4410_v55, %v6871_v21  ;;  %v4425_v7 = vrot.slane %v4411_v56, %v6871_v21  ;;  %v4402_v60 = vrot.slane %v4394_v58, %v6871_v21  ;;  %v4409_v17 = vrot.slane %v4395_v14, %v6871_v21 }
 0xe25   :  { %v4580_v15 = vrot.slane %v4572_v34, %v6881_v29  ;;  %v4587_v0 = vrot.slane %v4573_v1, %v6881_v29  ;;  %v4596_v18 = vrot.slane %v4588_v5, %v6881_v29  ;;  %v4603_v19 = vrot.slane %v4589_v35, %v6881_v29 }
 0xe26   :  { %v4426_v22 = vcombine.low %v4402_v60, %v4418_v2  ;;  %v4427_v10 = vcombine.high %v4402_v60, %v4418_v2  ;;  %v4442_v23 = vcombine.low %v4409_v17, %v4425_v7  ;;  %v4443_v61 = vcombine.high %v4409_v17, %v4425_v7 }
 0xe27   :  { %v4608_v27 = vcombine.low %v4580_v15, %v4587_v0  ;;  %v6063_v9 = vcombine.high %v4580_v15, %v4587_v0  ;;  %v4624_v28 = vcombine.low %v4596_v18, %v4603_v19  ;;  %v6064_v31 = vcombine.high %v4596_v18, %v4603_v19 }
 0xe28   :  { %v4434_v33 = vrot.slane %v4426_v22, %v6881_v29  ;;  %v4441_v36 = vrot.slane %v4427_v10, %v6881_v29  ;;  %v4450_v46 = vrot.slane %v4442_v23, %v6881_v29  ;;  %v4457_v37 = vrot.slane %v4443_v61, %v6881_v29 }
 0xe29   :  { %v4615_v38 = vrot.slane %v4608_v27, %v6871_v21  ;;  %v4623_v8 = vrot.slane %v6063_v9, %v6871_v21  ;;  %v4631_v40 = vrot.slane %v4624_v28, %v6871_v21  ;;  %v4639_v59 = vrot.slane %v6064_v31, %v6871_v21  ;;  %v7554_v9 = vld [vmem:[%s7799_s3 + $0x18] sm:$0xff]  ;;  %v7564_v31 = vld [vmem:[%s7799_s3 + $0x10] sm:$0xff] }
 0xe2a   :  { %v4462_v42 = vcombine.low %v4434_v33, %v4441_v36  ;;  %v6061_v49 = vcombine.high %v4434_v33, %v4441_v36  ;;  %v4478_v53 = vcombine.low %v4450_v46, %v4457_v37  ;;  %v6062_v44 = vcombine.high %v4450_v46, %v4457_v37  ;;  %v7577_v36 = vld [vmem:[%s7799_s3 + $0x8] sm:$0xff]  ;;  %v7590_v37 = vld [vmem:[%s7799_s3] sm:$0xff] }
 0xe2b   :  { %v4640_v45 = vcombine.low %v4615_v38, %v4623_v8  ;;  %v4656_v43 = vcombine.low %v4631_v40, %v4639_v59  ;;  %v3864_v52 = vmul.f32 %v6545_v16, %v7405_v25  ;;  %v3865_v54 = vmul.f32 %v6549_v32, %v7411_v63 }
 0xe2c   :  { %v4469_v55 = vrot.slane %v4462_v42, %v6871_v21  ;;  %v4477_v56 = vrot.slane %v6061_v49, %v6871_v21  ;;  %v4485_v57 = vrot.slane %v4478_v53, %v6871_v21  ;;  %v4493_v58 = vrot.slane %v6062_v44, %v6871_v21 }
 0xe2d   :  { %v3488_v14 = vrot.slane %v3480_v3, %v6881_v29  ;;  %v3504_v34 = vrot.slane %v3496_v4, %v6881_v29  ;;  %v3481_v1 = vcombine.high %v7464_v47, %v7467_v48  ;;  %v3497_v25 = vcombine.high %v7470_v50, %v7473_v51 }
 0xe2e   :  { %v4641_v5 = vcombine.high %v4615_v38, %v4623_v8  ;;  %v4657_v63 = vcombine.high %v4631_v40, %v4639_v59  ;;  %v4494_v35 = vcombine.low %v4469_v55, %v4477_v56  ;;  %v4510_v16 = vcombine.low %v4485_v57, %v4493_v58 }
 0xe2f   :  { %v3512_v2 = vcombine.low %v3488_v14, %v3504_v34  ;;  %v3513_v7 = vcombine.high %v3488_v14, %v3504_v34  ;;  %v3495_v60 = vrot.slane %v3481_v1, %v6881_v29  ;;  %v3511_v17 = vrot.slane %v3497_v25, %v6881_v29 }
 0xe30   :  { %v4495_v15 = vcombine.high %v4469_v55, %v4477_v56  ;;  %v4511_v3 = vcombine.high %v4485_v57, %v4493_v58  ;;  %v4648_v4 = vrot.slane %v4640_v45, %v6881_v29  ;;  %v4664_v0 = vrot.slane %v4656_v43, %v6881_v29 }
 0xe31   :  { %6366 = vmatpush3.msra.mxu0 %v3512_v2  ;;  %6371 = vmatpush3.msra.mxu1 %v3513_v7  ;;  %v3866_v47 = vmul.f32 %v6547_v20, %v7409_v26  ;;  %v3867_v48 = vmul.f32 %v6551_v41, %v7417_v13  ;;  %v3514_v50 = vcombine.low %v3495_v60, %v3511_v17 }
 0xe32   :  { %6368 = vmatmul.mubr.msk.f32.vlgmr.msra.gmra.mxu0 %vm649_vm2, %v3864_v52  ;;  %6373 = vmatmul.mubr.msk.f32.vlgmr.msra.gmra.mxu1 %vm649_vm2, %v3865_v54  ;;  %v3515_v51 = vcombine.high %v3495_v60, %v3511_v17  ;;  %v7520_v18 = vrot.slane %v4641_v5, %v6881_v29  ;;  %v4502_v19 = vrot.slane %v4494_v35, %v6881_v29 }
 0xe33   :  { %6375 = vmatprep.subr.mxu0 %v6737_v11  ;;  %6380 = vmatprep.subr.mxu1 %v6737_v11  ;;  %v4518_v22 = vrot.slane %v4510_v16, %v6881_v29  ;;  %v7527_v26 = vrot.slane %v4657_v63, %v6881_v29  ;;  %v4672_v13 = vcombine.low %v4648_v4, %v4664_v0 }
 0xe34   :  { %6376 = vmatpush3.msra.mxu0 %v3514_v50  ;;  %6381 = vmatpush3.msra.mxu1 %v3515_v51  ;;  %v7530_v20 = vrot.slane %v4495_v15, %v6881_v29  ;;  %v7533_v10 = vrot.slane %v4511_v3, %v6881_v29  ;;  %v4673_v28 = vcombine.high %v4648_v4, %v4664_v0 }
 0xe35   :  { %6377 = vmatprep.mubr.msk.f32.mxu0 %vm6738_vm1, %v6737_v11  ;;  %6382 = vmatprep.mubr.msk.f32.mxu1 %vm6738_vm1, %v6737_v11  ;;  %v4674_v23 = vcombine.low %v7520_v18, %v7527_v26  ;;  %v4526_v27 = vcombine.low %v4502_v19, %v4518_v22  ;;  %v4527_v32 = vcombine.high %v4502_v19, %v4518_v22 }
 0xe36   :  { %6378 = vmatmul.mubr.msk.f32.vlgmr.msra.gmra.mxu0 %vm649_vm2, %v3866_v47  ;;  %6383 = vmatmul.mubr.msk.f32.vlgmr.msra.gmra.mxu1 %vm649_vm2, %v3867_v48  ;;  %v4528_v61 = vcombine.low %v7530_v20, %v7533_v10  ;;  %v4675_v33 = vcombine.high %v7520_v18, %v7527_v26  ;;  %v4529_v46 = vcombine.high %v7530_v20, %v7533_v10 }
 0xe37   :  { %6396 = vmatprep.subr.mxu1 %v6737_v11  ;;  %6398 = vmatprep.mubr.msk.f32.mxu1 %vm6738_vm1, %v6737_v11 }
 0xe38   :  { %6397 = vmatpush3.xpose.msk.msra.mxu1 %vm649_vm2, %v4672_v13  ;;  %6385 = vmatprep.subr.mxu0 %v6737_v11 }
 0xe39   :  { %6401 = vmatprep.subr.mxu1 %v6737_v11  ;;  %6386 = vmatpush3.msra.mxu0 %v7554_v9 }
 0xe3a   :  { %6387 = vmatprep.subr.mxu0 %v6737_v11  ;;  %6393 = vmatprep.mubr.msk.f32.mxu0 %vm6738_vm1, %v6737_v11 }
 0xe3b   :  { %6399 = vmatmul.mubr.msk.f32.vlgmr.msra.gmra.mxu1 %vm649_vm2, %v4526_v27  ;;  %6388 = vmatpush3.msra.mxu0 %v7564_v31 }
 0xe3c   :  { %6402 = vmatpush3.xpose.msk.msra.mxu1 %vm649_vm2, %v4673_v28  ;;  %6403 = vmatprep.mubr.msk.f32.mxu1 %vm6738_vm1, %v6737_v11 }
 0xe3d   :  { %6411 = vmatprep.subr.mxu1 %v6737_v11  ;;  %6389 = vmatprep.subr.mxu0 %v6737_v11 }
 0xe3e   :  { %6390 = vmatpush3.msra.mxu0 %v7577_v36 }
 0xe3f   :  { %6404 = vmatmul.mubr.msk.f32.vlgmr.msra.gmra.mxu1 %vm649_vm2, %v4527_v32  ;;  %6391 = vmatprep.subr.mxu0 %v6737_v11 }
 0xe40   :  { %6412 = vmatpush3.xpose.msk.msra.mxu1 %vm649_vm2, %v4675_v33  ;;  %6413 = vmatprep.mubr.msk.f32.mxu1 %vm6738_vm1, %v6737_v11 }
 0xe41   :  { %6392 = vmatpush3.msra.mxu0 %v7590_v37  ;;  %6421 = vmatprep.subr.mxu1 %v6737_v11 }
 0xe42   :  { %6406 = vmatprep.subr.mxu0 %v6737_v11 }
 0xe43   :  { %6414 = vmatmul.mubr.msk.f32.vlgmr.msra.gmra.mxu1 %vm649_vm2, %v4529_v46 }
 0xe44   :  { %6423 = vmatprep.mubr.msk.f32.mxu1 %vm6738_vm1, %v6737_v11 }
 0xef2   :  { %v3937_v38 = vpop.f32.mrf.mxu0  ;;  %v4010_v8 = vpop.f32.mrf.mxu1 }
 0xef4   :  { %v6369_v40 = vpop.f32.mrf.mxu0  ;;  %v6374_v59 = vpop.f32.mrf.mxu1 }
 0xef6   :  { %v4083_v41 = vpop.f32.mrf.mxu0  ;;  %v4156_v42 = vpop.f32.mrf.mxu1 }
 0xef7   :  { %v4160_v49 = vcombine.low %v3937_v38, %v4083_v41  ;;  %v4161_v53 = vcombine.high %v3937_v38, %v4083_v41  ;;  %v4176_v44 = vcombine.low %v4010_v8, %v4156_v42  ;;  %v4177_v45 = vcombine.high %v4010_v8, %v4156_v42 }
 0xef8   :  { %v6379_v43 = vpop.f32.mrf.mxu0  ;;  %v6384_v52 = vpop.f32.mrf.mxu1 }
 0xef9   :  { %v4168_v54 = vrot.slane %v4160_v49, %v6871_v21  ;;  %v4175_v55 = vrot.slane %v4161_v53, %v6871_v21  ;;  %v4184_v56 = vrot.slane %v4176_v44, %v6871_v21  ;;  %v4191_v57 = vrot.slane %v4177_v45, %v6871_v21 }
 0xefb   :  { %v4192_v58 = vcombine.low %v4168_v54, %v4184_v56  ;;  %v4193_v14 = vcombine.high %v4168_v54, %v4184_v56  ;;  %v4208_v34 = vcombine.low %v4175_v55, %v4191_v57  ;;  %v4209_v1 = vcombine.high %v4175_v55, %v4191_v57  ;;  %v4896_v25 = vpop.f32.mrf.mxu1 }
 0xefc   :  { %v5128_v49 = vmul.f32 0.35355338, %v4896_v25 }
 0xefd   :  { %v4200_v5 = vrot.slane %v4192_v58, %v6881_v29  ;;  %v4207_v63 = vrot.slane %v4193_v14, %v6881_v29  ;;  %v4216_v35 = vrot.slane %v4208_v34, %v6881_v29  ;;  %v4223_v16 = vrot.slane %v4209_v1, %v6881_v29  ;;  %v6400_v2 = vpop.f32.mrf.mxu1 }
 0xefe   :  { %v5132_v45 = vsel %vm649_vm2, %v5128_v49, -inf }
 0xeff   :  { %v4228_v7 = vcombine.low %v4200_v5, %v4207_v63  ;;  %v6058_v60 = vcombine.high %v4200_v5, %v4207_v63  ;;  %v4244_v17 = vcombine.low %v4216_v35, %v4223_v16  ;;  %v6059_v15 = vcombine.high %v4216_v35, %v4223_v16  ;;  %v4972_v3 = vpop.f32.mrf.mxu1 }
 0xf00   :  { %v5129_v42 = vmul.f32 0.35355338, %v4972_v3 }
 0xf01   :  { %v6405_v4 = vpop.f32.mrf.mxu1  ;;  %v4235_v0 = vrot.slane %v4228_v7, %v6871_v21  ;;  %v4243_v47 = vrot.slane %v6058_v60, %v6871_v21  ;;  %v4251_v48 = vrot.slane %v4244_v17, %v6871_v21  ;;  %v4259_v50 = vrot.slane %v6059_v15, %v6871_v21 }
 0xf02   :  { %v5135_v53 = vsel %vm649_vm2, %v5129_v42, -inf }
 0xf03   :  { %v5124_v51 = vpop.f32.mrf.mxu1  ;;  %v4261_v19 = vcombine.high %v4235_v0, %v4243_v47  ;;  %v4277_v22 = vcombine.high %v4251_v48, %v4259_v50  ;;  %v4260_v13 = vcombine.low %v4235_v0, %v4243_v47  ;;  %v4276_v27 = vcombine.low %v4251_v48, %v4259_v50 }
 0xf04   :  { %v5131_v44 = vmul.f32 0.35355338, %v5124_v51 }
 0xf05   :  { %v6415_v28 = vpop.f32.mrf.mxu1  ;;  %v4275_v32 = vrot.slane %v4261_v19, %v6881_v29  ;;  %v4291_v33 = vrot.slane %v4277_v22, %v6881_v29  ;;  %v4268_v46 = vrot.slane %v4260_v13, %v6881_v29  ;;  %v4284_v38 = vrot.slane %v4276_v27, %v6881_v29 }
 0xf06   :  { %v5141_v43 = vsel %vm649_vm2, %v5131_v44, -inf }
 0xf07   :  { %v4294_v8 = vcombine.low %v4275_v32, %v4291_v33  ;;  %v4293_v40 = vcombine.high %v4268_v46, %v4284_v38  ;;  %v4292_v59 = vcombine.low %v4268_v46, %v4284_v38  ;;  %v4295_v41 = vcombine.high %v4275_v32, %v4291_v33 }
 0xf09   :  { %4301 = vrot.lane.b32.xlu1 %v4294_v8, %s6742_s29  ;;  %4297 = vrot.lane.b32.xlu0 %v4293_v40, %s6729_s13 }
 0xf0d   :  { %4305 = vrot.lane.b32.xlu0 %v4295_v41, %s6743_s5 }
 0xf2c   :  { %5136 = vmax.xlane.f32.xlu0 %v5135_v53 }
 0xf2d   :  { %5133 = vmax.xlane.f32.xlu1 %v5132_v45 }
 0xf31   :  { %5142 = vmax.xlane.f32.xlu1 %v5141_v43 }
 0xf7b   :  { %v4298_v52 = vpop.permute.xlu0 %4297  ;;  %v4302_v54 = vpop.permute.xlu1 %4301 }
 0xf7c   :  { %v4308_v55 = vsel %vm649_vm2, %v4292_v59, %v4298_v52 }
 0xf7d   :  { %v4309_v57 = vsel %vm1443_vm3, %v4308_v55, %v4302_v54 }
 0xf7f   :  { %v4306_v56 = vpop.permute.xlu0 %4305 }
 0xf80   :  { %v4310_v58 = vsel %vm1445_vm4, %v4309_v57, %v4306_v56 }
 0xf81   :  { %6394 = vmatmul.mubr.msk.f32.vlgmr.msra.gmra.mxu0 %vm125_vm0, %v4310_v58 }
 0xf82   :  { %6407 = vmatpush3.xpose.msk.msra.mxu0 %vm649_vm2, %v4674_v23  ;;  %6408 = vmatprep.mubr.msk.f32.mxu0 %vm6738_vm1, %v6737_v11 }
 0xf83   :  { %6416 = vmatprep.subr.mxu0 %v6737_v11 }
 0xf85   :  { %6409 = vmatmul.mubr.msk.f32.vlgmr.msra.gmra.mxu0 %vm649_vm2, %v4528_v61 }
 0xf86   :  { %6418 = vmatprep.mubr.msk.f32.mxu0 %vm6738_vm1, %v6737_v11 }
 0xfb5   :  { %v5137_v14 = vpop.xlane.xlu0 %5136 }
 0xfb6   :  { %v5145_v34 = vsub.f32 %v5129_v42, %v5137_v14  ;;  %v5134_v1 = vpop.xlane.xlu1 %5133 }
 0xfb7   :  { %v5144_v61 = vsub.f32 %v5128_v49, %v5134_v1 }
 0xfb8   :  { %v5150_v25 = vmul.f32 1.442695, %v5145_v34 }
 0xfb9   :  { %v5148_v35 = vmul.f32 1.442695, %v5144_v61 }
 0xfba   :  { %6552 = vpow2.f32 %v5150_v25  ;;  %v5143_v18 = vpop.xlane.xlu1 %5142 }
 0xfbb   :  { %v5147_v26 = vsub.f32 %v5131_v44, %v5143_v18 }
 0xfbd   :  { %v5154_v23 = vmul.f32 1.442695, %v5147_v26 }
 0xfbf   :  { %6554 = vpow2.f32 %v5154_v23 }
 0xfc0   :  { %6556 = vpow2.f32 %v5148_v35 }
 0xfc7   :  { %v7637_v5 = vpop.eup %6552 }
 0xfc8   :  { %v5159_v63 = vsel %vm649_vm2, %v7637_v5, 0.0 }
 0xfc9   :  { %5160 = vadd.xlane.f32.xlu1 %v5159_v63 }
 0xfcc   :  { %v7641_v20 = vpop.eup %6554 }
 0xfcd   :  { %v5165_v10 = vsel %vm649_vm2, %v7641_v20, 0.0  ;;  %v6557_v3 = vpop.eup %6556 }
 0xfce   :  { %5166 = vadd.xlane.f32.xlu1 %v5165_v10  ;;  %v5156_v4 = vsel %vm649_vm2, %v6557_v3, 0.0 }
 0xfdf   :  { %4678 = vrot.lane.b32.xlu1 %v7445_v6, %s6735_s19 }
 0xfe3   :  { %4680 = vrot.lane.b32.xlu1 %v7443_v24, %s6735_s19 }
0x1041   :  { %v7649_v16 = vpop.f32.mrf.mxu0 }
0x1043   :  { %v6395_v2 = vpop.f32.mrf.mxu0 }
0x1045   :  { %v5048_v7 = vpop.f32.mrf.mxu0 }
0x1046   :  { %v5130_v60 = vmul.f32 0.35355338, %v5048_v7 }
0x1047   :  { %v6410_v17 = vpop.f32.mrf.mxu0 }
0x1048   :  { %v5138_v15 = vsel %vm649_vm2, %v5130_v60, -inf }
0x1049   :  { %5139 = vmax.xlane.f32.xlu0 %v5138_v15 }
0x104d   :  { %5157 = vadd.xlane.f32.xlu0 %v5156_v4 }
0x1052   :  { %v5161_v50 = vpop.xlane.xlu1 %5160 }
0x1057   :  { %v5167_v51 = vpop.xlane.xlu1 %5166 }
0x105b   :  { %v4679_v22 = vpop.permute.xlu1 %4678 }
0x1063   :  { %4676 = vrot.lane.b32.xlu0 %v7318_v62, %s6735_s19  ;;  %v4681_v62 = vpop.permute.xlu1 %4680 }
0x10d2   :  { %v5140_v24 = vpop.xlane.xlu0 %5139 }
0x10d3   :  { %v5146_v6 = vsub.f32 %v5130_v60, %v5140_v24 }
0x10d5   :  { %v5152_v0 = vmul.f32 1.442695, %v5146_v6 }
0x10d6   :  { %v5158_v19 = vpop.xlane.xlu0 %5157 }
0x10d7   :  { %6558 = vpow2.f32 %v5152_v0 }
0x10d8   :  { %6560 = vrcp.f32 %v5161_v50 }
0x10d9   :  { %6562 = vrcp.f32 %v5158_v19 }
0x10da   :  { %v4677_v13 = vpop.permute.xlu0 %4676  ;;  %6564 = vrcp.f32 %v5167_v51 }
0x10db   :  { %v4688_v28 = vcombine.low %v4677_v13, %v4681_v62  ;;  %v4689_v32 = vcombine.high %v4677_v13, %v4681_v62 }
0x10dd   :  { %v4696_v8 = vrot.slane %v4688_v28, %v6871_v21  ;;  %v4703_v40 = vrot.slane %v4689_v32, %v6871_v21 }
0x10e4   :  { %v7655_v47 = vpop.eup %6558 }
0x10e5   :  { %v5162_v48 = vsel %vm649_vm2, %v7655_v47, 0.0  ;;  %v6561_v63 = vpop.eup %6560 }
0x10e6   :  { %5163 = vadd.xlane.f32.xlu0 %v5162_v48  ;;  %v6563_v10 = vpop.eup %6562  ;;  %v5173_v24 = vmul.f32 %v6561_v63, %v7637_v5  ;;  %v6594_v63 = vld [vmem:[#allocation4] ss:$0 sm:$0xff] }
0x10e7   :  { %v6565_v60 = vpop.eup %6564  ;;  %v5172_v4 = vmul.f32 %v6563_v10, %v6557_v3  ;;  %v5692_v10 = vadd.f32 %v6594_v63, %v7649_v16 }
0x10e8   :  { %v5175_v3 = vmul.f32 %v6565_v60, %v7641_v20 }
0x10fc   :  { %4682 = vrot.lane.b32.xlu0 %v7455_v39, %s6735_s19 }
0x116f   :  { %v5164_v27 = vpop.xlane.xlu0 %5163 }
0x1170   :  { %6566 = vrcp.f32 %v5164_v27 }
0x1173   :  { %v4683_v33 = vpop.permute.xlu0 %4682 }
0x1174   :  { %v4704_v46 = vcombine.low %v4679_v22, %v4683_v33  ;;  %v4705_v38 = vcombine.high %v4679_v22, %v4683_v33 }
0x1176   :  { %v4712_v39 = vrot.slane %v4704_v46, %v6871_v21  ;;  %v4719_v59 = vrot.slane %v4705_v38, %v6871_v21 }
0x1178   :  { %v4720_v41 = vcombine.low %v4696_v8, %v4712_v39  ;;  %v4721_v42 = vcombine.high %v4696_v8, %v4712_v39  ;;  %v4736_v49 = vcombine.low %v4703_v40, %v4719_v59  ;;  %v4737_v53 = vcombine.high %v4703_v40, %v4719_v59 }
0x117a   :  { %v4728_v44 = vrot.slane %v4720_v41, %v6881_v29  ;;  %v4735_v45 = vrot.slane %v4721_v42, %v6881_v29  ;;  %v4744_v43 = vrot.slane %v4736_v49, %v6881_v29  ;;  %v4751_v52 = vrot.slane %v4737_v53, %v6881_v29 }
0x117c   :  { %v4756_v54 = vcombine.low %v4728_v44, %v4735_v45  ;;  %v6065_v55 = vcombine.high %v4728_v44, %v4735_v45  ;;  %v4772_v56 = vcombine.low %v4744_v43, %v4751_v52  ;;  %v6066_v57 = vcombine.high %v4744_v43, %v4751_v52 }
0x117d   :  { %v6567_v6 = vpop.eup %6566 }
0x117e   :  { %v4763_v58 = vrot.slane %v4756_v54, %v6871_v21  ;;  %v4771_v14 = vrot.slane %v6065_v55, %v6871_v21  ;;  %v4779_v34 = vrot.slane %v4772_v56, %v6871_v21  ;;  %v4787_v1 = vrot.slane %v6066_v57, %v6871_v21 }
0x117f   :  { %v5174_v50 = vmul.f32 %v6567_v6, %v7655_v47 }
0x1180   :  { %v4788_v25 = vcombine.low %v4763_v58, %v4771_v14  ;;  %v4804_v18 = vcombine.low %v4779_v34, %v4787_v1  ;;  %v4789_v26 = vcombine.high %v4763_v58, %v4771_v14  ;;  %v4805_v23 = vcombine.high %v4779_v34, %v4787_v1 }
0x1182   :  { %v4796_v61 = vrot.slane %v4788_v25, %v6881_v29  ;;  %v4812_v35 = vrot.slane %v4804_v18, %v6881_v29  ;;  %v4803_v2 = vrot.slane %v4789_v26, %v6881_v29  ;;  %v4819_v7 = vrot.slane %v4805_v23, %v6881_v29 }
0x1184   :  { %v4820_v17 = vcombine.low %v4796_v61, %v4812_v35  ;;  %v4821_v15 = vcombine.high %v4796_v61, %v4812_v35  ;;  %v4822_v0 = vcombine.low %v4803_v2, %v4819_v7  ;;  %v4823_v48 = vcombine.high %v4803_v2, %v4819_v7 }
0x1185   :  { %v5694_v61 = vadd.f32 %v5692_v10, %v7294_v12 }
0x1186   :  { %6417 = vmatpush3.msra.mxu0 %v4820_v17  ;;  %6422 = vmatpush3.msra.mxu1 %v4821_v15 }
0x1187   :  { %6419 = vmatmul.mubr.msk.f32.vlgmr.msra.gmra.mxu0 %vm649_vm2, %v5172_v4  ;;  %6424 = vmatmul.mubr.msk.f32.vlgmr.msra.gmra.mxu1 %vm649_vm2, %v5173_v24  ;;  %v5696_v35 = vsel %vm125_vm0, %v5694_v61, 0.0 }
0x1188   :  { %6426 = vmatprep.subr.mxu0 %v6737_v11  ;;  %6431 = vmatprep.subr.mxu1 %v6737_v11 }
0x1189   :  { %6427 = vmatpush3.msra.mxu0 %v4822_v0  ;;  %6432 = vmatpush3.msra.mxu1 %v4823_v48 }
0x118a   :  { %6428 = vmatprep.mubr.msk.f32.mxu0 %vm6738_vm1, %v6737_v11  ;;  %6433 = vmatprep.mubr.msk.f32.mxu1 %vm6738_vm1, %v6737_v11 }
0x118b   :  { %6429 = vmatmul.mubr.msk.f32.vlgmr.msra.gmra.mxu0 %vm649_vm2, %v5174_v50  ;;  %6434 = vmatmul.mubr.msk.f32.vlgmr.msra.gmra.mxu1 %vm649_vm2, %v5175_v3 }
0x118c   :  { %6436 = vmatprep.subr.mxu0 %v6737_v11  ;;  %6444 = vmatprep.mubr.msk.f32.mxu0 %vm6738_vm1, %v6737_v11 }
0x118d   :  { %6437 = vmatpush3.msra.mxu0 %v7554_v9 }
0x118e   :  { %6438 = vmatprep.subr.mxu0 %v6737_v11 }
0x118f   :  { %6439 = vmatpush3.msra.mxu0 %v7564_v31 }
0x1190   :  { %6440 = vmatprep.subr.mxu0 %v6737_v11 }
0x1191   :  { %6441 = vmatpush3.msra.mxu0 %v7577_v36 }
0x1192   :  { %6442 = vmatprep.subr.mxu0 %v6737_v11 }
0x1193   :  { %6443 = vmatpush3.msra.mxu0 %v7590_v37 }
0x1247   :  { %v5245_v5 = vpop.f32.mrf.mxu0  ;;  %v5318_v20 = vpop.f32.mrf.mxu1 }
0x1249   :  { %v6420_v47 = vpop.f32.mrf.mxu0  ;;  %v6425_v51 = vpop.f32.mrf.mxu1 }
0x124b   :  { %v5391_v19 = vpop.f32.mrf.mxu0  ;;  %v5464_v22 = vpop.f32.mrf.mxu1 }
0x124c   :  { %v5468_v13 = vcombine.low %v5245_v5, %v5391_v19  ;;  %v5469_v9 = vcombine.high %v5245_v5, %v5391_v19  ;;  %v5484_v27 = vcombine.low %v5318_v20, %v5464_v22  ;;  %v5485_v62 = vcombine.high %v5318_v20, %v5464_v22 }
0x124d   :  { %v6430_v28 = vpop.f32.mrf.mxu0  ;;  %v6435_v31 = vpop.f32.mrf.mxu1 }
0x124e   :  { %v5476_v32 = vrot.slane %v5468_v13, %v6871_v21  ;;  %v5483_v36 = vrot.slane %v5469_v9, %v6871_v21  ;;  %v5492_v11 = vrot.slane %v5484_v27, %v6871_v21  ;;  %v5499_v37 = vrot.slane %v5485_v62, %v6871_v21  ;;  %v7729_v62 = vld [vmem:[#allocation6] ss:$0 sm:$0xff] }
0x1250   :  { %v5500_v33 = vcombine.low %v5476_v32, %v5492_v11  ;;  %v5501_v46 = vcombine.high %v5476_v32, %v5492_v11  ;;  %v5516_v38 = vcombine.low %v5483_v36, %v5499_v37  ;;  %v5517_v8 = vcombine.high %v5483_v36, %v5499_v37 }
0x1252   :  { %v5508_v40 = vrot.slane %v5500_v33, %v6881_v29  ;;  %v5515_v39 = vrot.slane %v5501_v46, %v6881_v29  ;;  %v5524_v59 = vrot.slane %v5516_v38, %v6881_v29  ;;  %v5531_v41 = vrot.slane %v5517_v8, %v6881_v29  ;;  %v5743_v8 = vld [vmem:[%s7803_s7 + $0x18] sm:$0xff] }
0x1253   :  { %6447 = vmatprep.subr.mxu1 %v5743_v8 }
0x1254   :  { %v5536_v42 = vcombine.low %v5508_v40, %v5515_v39  ;;  %v6079_v49 = vcombine.high %v5508_v40, %v5515_v39  ;;  %v5552_v53 = vcombine.low %v5524_v59, %v5531_v41  ;;  %v6080_v44 = vcombine.high %v5524_v59, %v5531_v41  ;;  %v5742_v40 = vld [vmem:[%s7803_s7 + $0x10] sm:$0xff]  ;;  %6448 = vmatpush3.msra.mxu1 %v5743_v8  ;;  %v5741_v39 = vld [vmem:[%s7803_s7 + $0x8] sm:$0xff]  ;;  %v5740_v59 = vld [vmem:[%s7803_s7] sm:$0xff] }
0x1255   :  { %6449 = vmatprep.subr.mxu1 %v5742_v40  ;;  %v5841_v41 = vld [vmem:[%s7805_s9 + $0x38] sm:$0xff] }
0x1256   :  { %v5543_v45 = vrot.slane %v5536_v42, %v6871_v21  ;;  %v5551_v43 = vrot.slane %v6079_v49, %v6871_v21  ;;  %v5559_v52 = vrot.slane %v5552_v53, %v6871_v21  ;;  %v5567_v54 = vrot.slane %v6080_v44, %v6871_v21  ;;  %6450 = vmatpush3.msra.mxu1 %v5742_v40  ;;  %v5840_v42 = vld [vmem:[%s7805_s9 + $0x30] sm:$0xff]  ;;  %v5839_v49 = vld [vmem:[%s7805_s9 + $0x28] sm:$0xff]  ;;  %v5838_v53 = vld [vmem:[%s7805_s9 + $0x20] sm:$0xff] }
0x1257   :  { %6451 = vmatprep.subr.mxu1 %v5741_v39  ;;  %6458 = vmatprep.subr.mxu0 %v5841_v41 }
0x1258   :  { %v5569_v55 = vcombine.high %v5543_v45, %v5551_v43  ;;  %v5585_v56 = vcombine.high %v5559_v52, %v5567_v54  ;;  %v5568_v57 = vcombine.low %v5543_v45, %v5551_v43  ;;  %v5584_v58 = vcombine.low %v5559_v52, %v5567_v54  ;;  %6452 = vmatpush3.msra.mxu1 %v5741_v39 }
0x1259   :  { %6453 = vmatprep.subr.mxu1 %v5740_v59 }
0x125a   :  { %v5583_v14 = vrot.slane %v5569_v55, %v6881_v29  ;;  %v5599_v34 = vrot.slane %v5585_v56, %v6881_v29  ;;  %v5576_v1 = vrot.slane %v5568_v57, %v6881_v29  ;;  %v5592_v25 = vrot.slane %v5584_v58, %v6881_v29  ;;  %6454 = vmatpush3.msra.mxu1 %v5740_v59 }
0x125c   :  { %v5602_v18 = vcombine.low %v5583_v14, %v5599_v34  ;;  %v5601_v26 = vcombine.high %v5576_v1, %v5592_v25  ;;  %v5600_v23 = vcombine.low %v5576_v1, %v5592_v25  ;;  %v5603_v21 = vcombine.high %v5583_v14, %v5599_v34  ;;  %v5837_v25 = vld [vmem:[%s7805_s9 + $0x18] sm:$0xff] }
0x125e   :  { %5609 = vrot.lane.b32.xlu0 %v5602_v18, %s6742_s29  ;;  %5605 = vrot.lane.b32.xlu1 %v5601_v26, %s6729_s13  ;;  %v5836_v18 = vld [vmem:[%s7805_s9 + $0x10] sm:$0xff]  ;;  %v5835_v26 = vld [vmem:[%s7805_s9 + $0x8] sm:$0xff] }
0x1262   :  { %5613 = vrot.lane.b32.xlu1 %v5603_v21, %s6743_s5  ;;  %v6084_v21 = vld [vmem:[#allocation9] ss:$0 sm:$0xff] }
0x127d   :  { %5697 = vadd.xlane.f32.xlu0 %v5696_v35 }
0x12d0   :  { %v5606_v2 = vpop.permute.xlu1 %5605  ;;  %v5610_v29 = vpop.permute.xlu0 %5609 }
0x12d1   :  { %v5616_v7 = vsel %vm649_vm2, %v5600_v23, %v5606_v2  ;;  %v5834_v23 = vld [vmem:[%s7805_s9] sm:$0xff] }
0x12d2   :  { %v5617_v17 = vsel %vm1443_vm3, %v5616_v7, %v5610_v29  ;;  %v6087_v7 = vld [vmem:[#allocation10] ss:$0 sm:$0xff] }
0x12d4   :  { %v5614_v60 = vpop.permute.xlu1 %5613 }
0x12d5   :  { %v5618_v15 = vsel %vm1445_vm4, %v5617_v17, %v5614_v60 }
0x12d6   :  { %6445 = vmatmul.mubr.msk.f32.vlgmr.msra.gmra.mxu0 %vm125_vm0, %v5618_v15 }
0x12d7   :  { %6459 = vmatpush3.msra.mxu0 %v5841_v41 }
0x12d8   :  { %6460 = vmatprep.subr.mxu0 %v5840_v42 }
0x12d9   :  { %6461 = vmatpush3.msra.mxu0 %v5840_v42 }
0x12da   :  { %6462 = vmatprep.subr.mxu0 %v5839_v49 }
0x12db   :  { %6463 = vmatpush3.msra.mxu0 %v5839_v49 }
0x12dc   :  { %6464 = vmatprep.subr.mxu0 %v5838_v53 }
0x12dd   :  { %6465 = vmatpush3.msra.mxu0 %v5838_v53 }
0x12de   :  { %6466 = vmatprep.subr.mxu0 %v5837_v25 }
0x12df   :  { %6467 = vmatpush3.msra.mxu0 %v5837_v25 }
0x12e0   :  { %6468 = vmatprep.subr.mxu0 %v5836_v18 }
0x12e1   :  { %6469 = vmatpush3.msra.mxu0 %v5836_v18 }
0x12e2   :  { %6470 = vmatprep.subr.mxu0 %v5835_v26 }
0x12e3   :  { %6471 = vmatpush3.msra.mxu0 %v5835_v26 }
0x12e4   :  { %6472 = vmatprep.subr.mxu0 %v5834_v23 }
0x12e5   :  { %6473 = vmatpush3.msra.mxu0 %v5834_v23 }
0x1306   :  { %v5698_v4 = vpop.xlane.xlu0 %5697 }
0x1307   :  { %v5702_v24 = vmul.f32 0.03125, %v5698_v4 }
0x1309   :  { %v5704_v6 = vsub.f32 %v5694_v61, %v5702_v24 }
0x130b   :  { %v5706_v16 = vmul.f32 %v5704_v6, %v5704_v6  ;;  %v5730_v28 = vmul.f32 %v7729_v62, %v5704_v6 }
0x130d   :  { %v5708_v12 = vsel %vm125_vm0, %v5706_v16, 0.0 }
0x130e   :  { %5709 = vadd.xlane.f32.xlu0 %v5708_v12 }
0x1396   :  { %v5688_v0 = vpop.f32.mrf.mxu0 }
0x1397   :  { %v5693_v48 = vadd.f32 %v6594_v63, %v5688_v0  ;;  %v5710_v50 = vpop.xlane.xlu0 %5709 }
0x1398   :  { %v5714_v3 = vmul.f32 0.032258064, %v5710_v50  ;;  %v6446_v5 = vpop.f32.mrf.mxu0 }
0x1399   :  { %v5695_v20 = vadd.f32 %v5693_v48, %v7312_v30  ;;  %v7732_v30 = vld [vmem:[#allocation7] ss:$0 sm:$0xff] }
0x139a   :  { %6568 = vrsqrt.f32 %v5714_v3  ;;  %vm5718_vm9 = vcmp.eq.f32.partialorder %v5714_v3, inf  ;;  %v5721_v22 = vand.u32 2147483648, %v5714_v3  ;;  %vm5720_vm10 = vcmp.eq.f32.partialorder %v5714_v3, 0.0 }
0x139b   :  { %v5699_v47 = vsel %vm125_vm0, %v5695_v20, 0.0 }
0x139c   :  { %5700 = vadd.xlane.f32.xlu1 %v5699_v47 }
0x13a7   :  { %v6569_v51 = vpop.eup %6568 }
0x13a8   :  { %v5717_v19 = vmul.f32 %v6569_v51, %v5714_v3 }
0x13aa   :  { %v5719_v13 = vsel %vm5718_vm9, %v5714_v3, %v5717_v19 }
0x13ab   :  { %v5722_v9 = vsel %vm5720_vm10, %v5721_v22, %v5719_v13 }
0x13ac   :  { %v6082_v27 = vadd.f32 -1e-06, %v5722_v9 }
0x13ae   :  { %6570 = vrcp.f32 %v6082_v27 }
0x13bb   :  { %v6571_v31 = vpop.eup %6570 }
0x13bc   :  { %v5735_v32 = vmul.f32 %v6571_v31, %v5730_v28 }
0x13be   :  { %v7735_v36 = vadd.f32 %v7732_v30, %v5735_v32 }
0x13c0   :  { %6455 = vmatprep.mubr.msk.f32.mxu1 %vm125_vm0, %v7735_v36 }
0x1425   :  { %v5701_v11 = vpop.xlane.xlu1 %5700 }
0x1426   :  { %v5703_v37 = vmul.f32 0.03125, %v5701_v11 }
0x1428   :  { %v5705_v33 = vsub.f32 %v5695_v20, %v5703_v37 }
0x142a   :  { %v5707_v46 = vmul.f32 %v5705_v33, %v5705_v33  ;;  %v5731_v58 = vmul.f32 %v7729_v62, %v5705_v33 }
0x142c   :  { %v5711_v38 = vsel %vm125_vm0, %v5707_v46, 0.0 }
0x142d   :  { %5712 = vadd.xlane.f32.xlu0 %v5711_v38 }
0x14b6   :  { %v5713_v44 = vpop.xlane.xlu0 %5712 }
0x14b7   :  { %v5715_v45 = vmul.f32 0.032258064, %v5713_v44 }
0x14b9   :  { %6572 = vrsqrt.f32 %v5715_v45  ;;  %vm5725_vm11 = vcmp.eq.f32.partialorder %v5715_v45, inf  ;;  %v5728_v54 = vand.u32 2147483648, %v5715_v45  ;;  %vm5727_vm12 = vcmp.eq.f32.partialorder %v5715_v45, 0.0 }
0x14c6   :  { %v6573_v43 = vpop.eup %6572 }
0x14c7   :  { %v5724_v52 = vmul.f32 %v6573_v43, %v5715_v45 }
0x14c9   :  { %v5726_v55 = vsel %vm5725_vm11, %v5715_v45, %v5724_v52 }
0x14ca   :  { %v5729_v56 = vsel %vm5727_vm12, %v5728_v54, %v5726_v55 }
0x14cb   :  { %v6083_v57 = vadd.f32 -1e-06, %v5729_v56 }
0x14cd   :  { %6574 = vrcp.f32 %v6083_v57 }
0x14da   :  { %v6575_v14 = vpop.eup %6574 }
0x14db   :  { %v5737_v34 = vmul.f32 %v6575_v14, %v5731_v58 }
0x14dd   :  { %v5739_v1 = vadd.f32 %v7732_v30, %v5737_v34 }
0x14df   :  { %6456 = vmatmul.mubr.msk.f32.vlgmr.msra.gmra.mxu1 %vm125_vm0, %v5739_v1 }
0x159f   :  { %v6457_v63 = vpop.f32.mrf.mxu1 }
0x15a0   :  { %v5829_v10 = vadd.f32 %v6457_v63, %v6084_v21 }
0x15a1   :  { %v5823_v61 = vpop.f32.mrf.mxu1 }
0x15a2   :  { %v5824_v35 = vadd.f32 %v6084_v21, %v5823_v61  ;;  %v5833_v29 = vmax.f32 %v5829_v10, 0.0 }
0x15a4   :  { %v5832_v2 = vmax.f32 %v5824_v35, 0.0 }
0x15a6   :  { %6474 = vmatprep.mubr.msk.f32.mxu0 %vm5849_vm13, %v5832_v2 }
0x15a7   :  { %6475 = vmatmul.mubr.msk.f32.vlgmr.msra.gmra.mxu0 %vm5849_vm13, %v5833_v29 }
0x1667   :  { %v6476_v60 = vpop.f32.mrf.mxu0 }
0x1668   :  { %v5928_v17 = vadd.f32 %v6476_v60, %v6087_v7 }
0x1669   :  { %v5922_v15 = vpop.f32.mrf.mxu0 }
0x166a   :  { %v5932_v4 = vadd.f32 %v5928_v17, %v5739_v1  ;;  %v5923_v24 = vadd.f32 %v6087_v7, %v5922_v15 }
0x166c   :  { %v5936_v6 = vsel %vm125_vm0, %v5932_v4, 0.0  ;;  %v5931_v16 = vadd.f32 %v5923_v24, %v7735_v36 }
0x166d   :  { %5937 = vadd.xlane.f32.xlu0 %v5936_v6 }
0x166e   :  { %v5933_v12 = vsel %vm125_vm0, %v5931_v16, 0.0 }
0x166f   :  { %5934 = vadd.xlane.f32.xlu1 %v5933_v12 }
0x16f6   :  { %v5938_v0 = vpop.xlane.xlu0 %5937 }
0x16f7   :  { %v5940_v48 = vmul.f32 0.03125, %v5938_v0 }
0x16f8   :  { %v5935_v50 = vpop.xlane.xlu1 %5934 }
0x16f9   :  { %v5942_v3 = vsub.f32 %v5932_v4, %v5940_v48  ;;  %v5939_v5 = vmul.f32 0.03125, %v5935_v50 }
0x16fb   :  { %v5941_v20 = vsub.f32 %v5931_v16, %v5939_v5  ;;  %v5944_v47 = vmul.f32 %v5942_v3, %v5942_v3  ;;  %v5968_v41 = vmul.f32 %v7729_v62, %v5942_v3 }
0x16fd   :  { %v5948_v51 = vsel %vm125_vm0, %v5944_v47, 0.0  ;;  %v5943_v19 = vmul.f32 %v5941_v20, %v5941_v20  ;;  %v5967_v53 = vmul.f32 %v7729_v62, %v5941_v20 }
0x16fe   :  { %5949 = vadd.xlane.f32.xlu0 %v5948_v51 }
0x16ff   :  { %v5945_v22 = vsel %vm125_vm0, %v5943_v19, 0.0 }
0x1700   :  { %5946 = vadd.xlane.f32.xlu1 %v5945_v22 }
0x1787   :  { %v5950_v13 = vpop.xlane.xlu0 %5949 }
0x1788   :  { %v5952_v9 = vmul.f32 0.032258064, %v5950_v13 }
0x1789   :  { %v5947_v27 = vpop.xlane.xlu1 %5946 }
0x178a   :  { %6576 = vrsqrt.f32 %v5952_v9  ;;  %v5951_v28 = vmul.f32 0.032258064, %v5947_v27  ;;  %vm5962_vm14 = vcmp.eq.f32.partialorder %v5952_v9, inf  ;;  %v5965_v36 = vand.u32 2147483648, %v5952_v9 }
0x178b   :  { %vm5964_vm15 = vcmp.eq.f32.partialorder %v5952_v9, 0.0 }
0x178c   :  { %6578 = vrsqrt.f32 %v5951_v28  ;;  %vm5955_vm1 = vcmp.eq.f32.partialorder %v5951_v28, inf  ;;  %v5958_v8 = vand.u32 2147483648, %v5951_v28  ;;  %vm5957_vm2 = vcmp.eq.f32.partialorder %v5951_v28, 0.0 }
0x1797   :  { %v6577_v31 = vpop.eup %6576 }
0x1798   :  { %v5961_v32 = vmul.f32 %v6577_v31, %v5952_v9 }
0x1799   :  { %v6579_v11 = vpop.eup %6578 }
0x179a   :  { %v5963_v37 = vsel %vm5962_vm14, %v5952_v9, %v5961_v32  ;;  %v5954_v46 = vmul.f32 %v6579_v11, %v5951_v28 }
0x179b   :  { %v5966_v33 = vsel %vm5964_vm15, %v5965_v36, %v5963_v37 }
0x179c   :  { %v6091_v38 = vadd.f32 -1e-06, %v5966_v33  ;;  %v5956_v40 = vsel %vm5955_vm1, %v5951_v28, %v5954_v46 }
0x179d   :  { %v5959_v39 = vsel %vm5957_vm2, %v5958_v8, %v5956_v40 }
0x179e   :  { %6580 = vrcp.f32 %v6091_v38  ;;  %v6090_v59 = vadd.f32 -1e-06, %v5959_v39 }
0x17a0   :  { %6582 = vrcp.f32 %v6090_v59 }
0x17ab   :  { %v6581_v42 = vpop.eup %6580 }
0x17ac   :  { %v5974_v49 = vmul.f32 %v6581_v42, %v5968_v41 }
0x17ad   :  { %v6583_v44 = vpop.eup %6582 }
0x17ae   :  { %v5976_v45 = vadd.f32 %v7732_v30, %v5974_v49  ;;  %v5972_v43 = vmul.f32 %v6583_v44, %v5967_v53 }
0x17b0   :  { %5978 = vst.msk [vmem:[%s7807_s11 + $0x8] sm:$0xff] %vm125_vm0, %v5976_v45  ;;  %v5975_v52 = vadd.f32 %v7732_v30, %v5972_v43 }
0x17b2   :  { %5977 = vst.msk [vmem:[%s7807_s11] sm:$0xff] %vm125_vm0, %v5975_v52 }
0x17b3   :  { %5983 = vsyncpa [#allocation3], 1 }
0x17b4   :  { %5984 = vsyncpa [#allocation5], 1 }
0x17b5   :  { %5985 = vsyncpa [#allocation8], 1 }
0x17b6   :  { %5986 = vsyncpa [#allocation11], 1 }

</bundles_post_ra>
